<compile_context>
chip_gen: v7x
topology: tpu7x:2x2x1
jax: 0.10.0
libtpu: 0.0.40
codegen_flags: <defaults>
</compile_context>

<pallas_src>
import functools

import jax
import jax.numpy as jnp
from jax.experimental import pallas as pl
from jax.experimental.pallas import tpu as pltpu


def _round_up(n, m):
    return ((n + m - 1) // m) * m


# ---------------------------------------------------------------------------
# Fused kernel: in-kernel im2col conv3x3 + ReLU + GAP + proj + fc_1 + fc_2
# ---------------------------------------------------------------------------
def _face_rec_kernel(x_ref, wconv_ref, wstack_ref, bias_ref, score_ref,
                     *, tb, h, w, cin_pad, f_pad):
    """One grid step = `tb` images of the batch.

    x_ref     : (tb, h+2, w+2, cin_pad)  bf16  zero-padded NHWC activation
    wconv_ref : (9, cin_pad, f_pad)      bf16  per-tap 3x3 conv weights
    wstack_ref: (3, f_pad, f_pad)        bf16  [w_proj/HW, w_fc1, w_fc2]
    bias_ref  : (4, f_pad)               f32   [b_conv, b_proj, b_fc1, b_fc2]
    score_ref : (tb, f_pad)              f32   padded class scores
    """
    hw = h * w
    m = tb * hw

    # ---- conv3x3 ('same', stride 1) as 9 accumulated MXU matmuls ----------
    # im2col happens here: 9 shifted windows of the padded activation block,
    # each flattened to (M, Cin_pad) and contracted against its tap weights.
    acc = jnp.zeros((m, f_pad), jnp.float32)
    for di in range(3):
        for dj in range(3):
            k = di * 3 + dj
            xs = x_ref[:, di:di + h, dj:dj + w, :].reshape(m, cin_pad)  # bf16
            acc = acc + jnp.dot(xs, wconv_ref[k],
                                preferred_element_type=jnp.float32)

    conv = jnp.maximum(acc + bias_ref[0:1, :], 0.0)            # bias+ReLU (f32)

    # ---- global average pool: 1/HW folded into w_proj -> plain sum --------
    pooled = jnp.sum(conv.reshape(tb, hw, f_pad), axis=1)      # (tb, f_pad) f32

    # ---- backbone embedding projection -------------------------------------
    feat = jnp.dot(pooled.astype(jnp.bfloat16), wstack_ref[0],
                   preferred_element_type=jnp.float32) + bias_ref[1:2, :]

    # ---- head: feat = relu(fc_1(feat)); score = fc_2(feat) ------------------
    hid = jnp.dot(feat.astype(jnp.bfloat16), wstack_ref[1],
                  preferred_element_type=jnp.float32) + bias_ref[2:3, :]
    hid = jnp.maximum(hid, 0.0)
    score = jnp.dot(hid.astype(jnp.bfloat16), wstack_ref[2],
                    preferred_element_type=jnp.float32) + bias_ref[3:4, :]

    score_ref[...] = score.astype(score_ref.dtype)


# ---------------------------------------------------------------------------
# Wrapper: layout prep (pad / pack / bf16-cast) + pallas_call with batch grid
# ---------------------------------------------------------------------------
def face_recognition_forward(x_nchw, params, *, tile_b=None):
    B, CIN, H, W = x_nchw.shape
    HW = H * W
    COUT = params['w_conv'].shape[1]
    EMB = params['w_proj'].shape[1]
    C1 = params['w2'].shape[1]

    CIN_PAD = _round_up(CIN, 8)
    F_PAD = _round_up(max(COUT, EMB, C1), 128)   # common lane-dense width

    if tile_b is None:
        tile_b = B if B <= 8 else 8
    assert B % tile_b == 0, "batch must be divisible by the batch tile"
    TB = tile_b

    # NCHW -> NHWC, spatial pad=1, channel pad, bf16 for the MXU.
    x = jnp.transpose(x_nchw, (0, 2, 3, 1))
    x = jnp.pad(x, ((0, 0), (1, 1), (1, 1), (0, CIN_PAD - CIN)))
    x = x.astype(jnp.bfloat16)                                 # (B, H+2, W+2, CIN_PAD)

    # conv weights -> per-tap layout (9, CIN_PAD, F_PAD), zero-padded, bf16.
    w_conv = params['w_conv'].reshape(9, CIN, COUT)
    w_conv = jnp.pad(w_conv, ((0, 0), (0, CIN_PAD - CIN), (0, F_PAD - COUT)))
    w_conv = w_conv.astype(jnp.bfloat16)

    def pad2(a, r, c):
        return jnp.pad(a, ((0, r - a.shape[0]), (0, c - a.shape[1])))

    # pack the three square weight matrices into one buffer; fold 1/HW of GAP.
    w_stack = jnp.stack([
        pad2(params['w_proj'] / HW, F_PAD, F_PAD),
        pad2(params['w1'], F_PAD, F_PAD),
        pad2(params['w2'], F_PAD, F_PAD),
    ]).astype(jnp.bfloat16)                                    # (3, F_PAD, F_PAD)

    def pad1(a, c):
        a = a.reshape(-1)
        return jnp.pad(a, ((0, c - a.shape[0]),))

    b_stack = jnp.stack([
        pad1(params['b_conv'], F_PAD),
        pad1(params['b_proj'], F_PAD),
        pad1(params['b1'], F_PAD),
        pad1(params['b2'], F_PAD),
    ]).astype(jnp.float32)                                     # (4, F_PAD)

    kernel = functools.partial(_face_rec_kernel, tb=TB, h=H, w=W,
                               cin_pad=CIN_PAD, f_pad=F_PAD)

    flops = 2 * B * HW * 9 * CIN_PAD * F_PAD + 2 * B * 3 * F_PAD * F_PAD
    bytes_accessed = (x.size * 2 + w_conv.size * 2 + w_stack.size * 2
                      + b_stack.size * 4 + B * F_PAD * 4)

    score_pad = pl.pallas_call(
        kernel,
        out_shape=jax.ShapeDtypeStruct((B, F_PAD), jnp.float32),
        grid_spec=pltpu.PrefetchScalarGridSpec(
            num_scalar_prefetch=0,
            grid=(B // TB,),
            in_specs=[
                pl.BlockSpec((TB, H + 2, W + 2, CIN_PAD),
                             lambda b: (b, 0, 0, 0)),
                pl.BlockSpec(w_conv.shape, lambda b: (0, 0, 0)),
                pl.BlockSpec(w_stack.shape, lambda b: (0, 0, 0)),
                pl.BlockSpec(b_stack.shape, lambda b: (0, 0)),
            ],
            out_specs=pl.BlockSpec((TB, F_PAD), lambda b: (b, 0)),
        ),
        compiler_params=pltpu.CompilerParams(
            dimension_semantics=("parallel",)),
        cost_estimate=pl.CostEstimate(flops=flops, transcendentals=0,
                                      bytes_accessed=bytes_accessed),
    )(x, w_conv, w_stack, b_stack)

    return score_pad[:, :C1]


# ---------------------------------------------------------------------------
# Pure-JAX reference (f32) for a sanity check
# ---------------------------------------------------------------------------
def _reference_forward(x_nchw, params):
    x = jnp.transpose(x_nchw, (0, 2, 3, 1))
    B, H, W, C = x.shape
    xp = jnp.pad(x, ((0, 0), (1, 1), (1, 1), (0, 0)))
    cols = [xp[:, di:di + H, dj:dj + W, :] for di in range(3) for dj in range(3)]
    patches = jnp.concatenate(cols, axis=-1).reshape(B, H * W, 9 * C)
    conv = jnp.maximum(jnp.einsum('bhp,pc->bhc', patches, params['w_conv'])
                       + params['b_conv'], 0.0)
    gap = jnp.mean(conv, axis=1)
    feat = gap @ params['w_proj'] + params['b_proj']
    h = jnp.maximum(feat @ params['w1'] + params['b1'], 0.0)
    return h @ params['w2'] + params['b2']


# ---------------------------------------------------------------------------
# Deterministic parameter construction (synthetic weights)
# ---------------------------------------------------------------------------
def make_params(key, cin, cout, embedding_size, num_classes):
    ks = jax.random.split(key, 8)
    p = 9 * cin
    c1 = num_classes + 1
    s = lambda fan_in: 1.0 / jnp.sqrt(jnp.float32(fan_in))
    return {
        'w_conv': jax.random.normal(ks[0], (p, cout), jnp.float32) * s(p),
        'b_conv': jax.random.normal(ks[1], (1, cout), jnp.float32) * 0.01,
        'w_proj': jax.random.normal(ks[2], (cout, embedding_size), jnp.float32) * s(cout),
        'b_proj': jax.random.normal(ks[3], (1, embedding_size), jnp.float32) * 0.01,
        'w1':     jax.random.normal(ks[4], (embedding_size, embedding_size), jnp.float32) * s(embedding_size),
        'b1':     jax.random.normal(ks[5], (1, embedding_size), jnp.float32) * 0.01,
        'w2':     jax.random.normal(ks[6], (embedding_size, c1), jnp.float32) * s(embedding_size),
        'b2':     jax.random.normal(ks[7], (1, c1), jnp.float32) * 0.01,
    }


if __name__ == "__main__":
    # small shapes: batch=2, channels=4, spatial=16x16, conv width=16,
    # embedding_size=32, num_classes=10  ->  score (2, 11)
    B, CIN, H, W = 2, 4, 16, 16
    COUT, EMB, NUM_CLASSES = 16, 32, 10

    key = jax.random.PRNGKey(0)
    kx, kp = jax.random.split(key)
    x = jax.random.normal(kx, (B, CIN, H, W), jnp.float32)
    params = make_params(kp, CIN, COUT, EMB, NUM_CLASSES)

    score = face_recognition_forward(x, params)
    jax.block_until_ready(score)
    assert score.shape == (B, NUM_CLASSES + 1)

    # bf16-MXU kernel vs f32 reference: relaxed tolerance.
    ref = _reference_forward(x, params)
    assert jnp.allclose(score, ref, atol=0.25, rtol=0.25)

    print("KERNEL_OK")
</pallas_src>

<mosaic_0001>
module attributes {stable_mosaic.version = 11 : i64} {
  func.func @_face_rec_kernel(%arg0: i32, %arg1: memref<2x18x18x8xbf16, #tpu.memory_space<vmem>>, %arg2: memref<9x8x128xbf16, #tpu.memory_space<vmem>>, %arg3: memref<3x128x128xbf16, #tpu.memory_space<vmem>>, %arg4: memref<4x128xf32, #tpu.memory_space<vmem>>, %arg5: memref<2x128xf32, #tpu.memory_space<vmem>>) attributes {dimension_semantics = [#tpu.dimension_semantics<parallel>], iteration_bounds = array<i64: 1>, scalar_prefetch = 0 : i64, scratch_operands = 0 : i64, tpu.core_type = #tpu.core_type<tc>, window_params = [{transform_indices = @transform_0, window_bounds = array<i64: 2, 18, 18, 8>}, {pipeline_mode = #tpu.pipeline_mode<synchronous>, transform_indices = @transform_1, window_bounds = array<i64: 9, 8, 128>}, {pipeline_mode = #tpu.pipeline_mode<synchronous>, transform_indices = @transform_2, window_bounds = array<i64: 3, 128, 128>}, {pipeline_mode = #tpu.pipeline_mode<synchronous>, transform_indices = @transform_3, window_bounds = array<i64: 4, 128>}, {transform_indices = @transform_4, window_bounds = array<i64: 2, 128>}]} {
    %cst = arith.constant 0.000000e+00 : f32
    %0 = vector.broadcast %cst : f32 to vector<512x128xf32>
    %c0 = arith.constant 0 : index
    %c0_0 = arith.constant 0 : index
    %c0_1 = arith.constant 0 : index
    %c0_2 = arith.constant 0 : index
    %1 = vector.load %arg1[%c0, %c0_0, %c0_1, %c0_2] : memref<2x18x18x8xbf16, #tpu.memory_space<vmem>>, vector<2x16x16x8xbf16>
    %2 = vector.shape_cast %1 : vector<2x16x16x8xbf16> to vector<512x8xbf16>
    %c0_3 = arith.constant 0 : index
    %c0_4 = arith.constant 0 : index
    %c0_5 = arith.constant 0 : index
    %3 = vector.load %arg2[%c0_3, %c0_4, %c0_5] : memref<9x8x128xbf16, #tpu.memory_space<vmem>>, vector<1x8x128xbf16>
    %4 = vector.shape_cast %3 : vector<1x8x128xbf16> to vector<8x128xbf16>
    %cst_6 = arith.constant dense<0.000000e+00> : vector<512x128xf32>
    %5 = tpu.matmul %2, %4, %cst_6 {dimension_numbers = #tpu.dot_dimension_numbers<[1], [0], [0], [1], [0, 0, 1, 1], [], []>} : vector<512x8xbf16>, vector<8x128xbf16>, vector<512x128xf32> -> vector<512x128xf32>
    %6 = arith.addf %0, %5 : vector<512x128xf32>
    %c0_7 = arith.constant 0 : index
    %c0_8 = arith.constant 0 : index
    %c1 = arith.constant 1 : index
    %c0_9 = arith.constant 0 : index
    %7 = vector.load %arg1[%c0_7, %c0_8, %c1, %c0_9] : memref<2x18x18x8xbf16, #tpu.memory_space<vmem>>, vector<2x16x16x8xbf16>
    %8 = vector.shape_cast %7 : vector<2x16x16x8xbf16> to vector<512x8xbf16>
    %c1_10 = arith.constant 1 : index
    %c0_11 = arith.constant 0 : index
    %c0_12 = arith.constant 0 : index
    %9 = vector.load %arg2[%c1_10, %c0_11, %c0_12] : memref<9x8x128xbf16, #tpu.memory_space<vmem>>, vector<1x8x128xbf16>
    %10 = vector.shape_cast %9 : vector<1x8x128xbf16> to vector<8x128xbf16>
    %cst_13 = arith.constant dense<0.000000e+00> : vector<512x128xf32>
    %11 = tpu.matmul %8, %10, %cst_13 {dimension_numbers = #tpu.dot_dimension_numbers<[1], [0], [0], [1], [0, 0, 1, 1], [], []>} : vector<512x8xbf16>, vector<8x128xbf16>, vector<512x128xf32> -> vector<512x128xf32>
    %12 = arith.addf %6, %11 : vector<512x128xf32>
    %c0_14 = arith.constant 0 : index
    %c0_15 = arith.constant 0 : index
    %c2 = arith.constant 2 : index
    %c0_16 = arith.constant 0 : index
    %13 = vector.load %arg1[%c0_14, %c0_15, %c2, %c0_16] : memref<2x18x18x8xbf16, #tpu.memory_space<vmem>>, vector<2x16x16x8xbf16>
    %14 = vector.shape_cast %13 : vector<2x16x16x8xbf16> to vector<512x8xbf16>
    %c2_17 = arith.constant 2 : index
    %c0_18 = arith.constant 0 : index
    %c0_19 = arith.constant 0 : index
    %15 = vector.load %arg2[%c2_17, %c0_18, %c0_19] : memref<9x8x128xbf16, #tpu.memory_space<vmem>>, vector<1x8x128xbf16>
    %16 = vector.shape_cast %15 : vector<1x8x128xbf16> to vector<8x128xbf16>
    %cst_20 = arith.constant dense<0.000000e+00> : vector<512x128xf32>
    %17 = tpu.matmul %14, %16, %cst_20 {dimension_numbers = #tpu.dot_dimension_numbers<[1], [0], [0], [1], [0, 0, 1, 1], [], []>} : vector<512x8xbf16>, vector<8x128xbf16>, vector<512x128xf32> -> vector<512x128xf32>
    %18 = arith.addf %12, %17 : vector<512x128xf32>
    %c0_21 = arith.constant 0 : index
    %c1_22 = arith.constant 1 : index
    %c0_23 = arith.constant 0 : index
    %c0_24 = arith.constant 0 : index
    %19 = vector.load %arg1[%c0_21, %c1_22, %c0_23, %c0_24] : memref<2x18x18x8xbf16, #tpu.memory_space<vmem>>, vector<2x16x16x8xbf16>
    %20 = vector.shape_cast %19 : vector<2x16x16x8xbf16> to vector<512x8xbf16>
    %c3 = arith.constant 3 : index
    %c0_25 = arith.constant 0 : index
    %c0_26 = arith.constant 0 : index
    %21 = vector.load %arg2[%c3, %c0_25, %c0_26] : memref<9x8x128xbf16, #tpu.memory_space<vmem>>, vector<1x8x128xbf16>
    %22 = vector.shape_cast %21 : vector<1x8x128xbf16> to vector<8x128xbf16>
    %cst_27 = arith.constant dense<0.000000e+00> : vector<512x128xf32>
    %23 = tpu.matmul %20, %22, %cst_27 {dimension_numbers = #tpu.dot_dimension_numbers<[1], [0], [0], [1], [0, 0, 1, 1], [], []>} : vector<512x8xbf16>, vector<8x128xbf16>, vector<512x128xf32> -> vector<512x128xf32>
    %24 = arith.addf %18, %23 : vector<512x128xf32>
    %c0_28 = arith.constant 0 : index
    %c1_29 = arith.constant 1 : index
    %c1_30 = arith.constant 1 : index
    %c0_31 = arith.constant 0 : index
    %25 = vector.load %arg1[%c0_28, %c1_29, %c1_30, %c0_31] : memref<2x18x18x8xbf16, #tpu.memory_space<vmem>>, vector<2x16x16x8xbf16>
    %26 = vector.shape_cast %25 : vector<2x16x16x8xbf16> to vector<512x8xbf16>
    %c4 = arith.constant 4 : index
    %c0_32 = arith.constant 0 : index
    %c0_33 = arith.constant 0 : index
    %27 = vector.load %arg2[%c4, %c0_32, %c0_33] : memref<9x8x128xbf16, #tpu.memory_space<vmem>>, vector<1x8x128xbf16>
    %28 = vector.shape_cast %27 : vector<1x8x128xbf16> to vector<8x128xbf16>
    %cst_34 = arith.constant dense<0.000000e+00> : vector<512x128xf32>
    %29 = tpu.matmul %26, %28, %cst_34 {dimension_numbers = #tpu.dot_dimension_numbers<[1], [0], [0], [1], [0, 0, 1, 1], [], []>} : vector<512x8xbf16>, vector<8x128xbf16>, vector<512x128xf32> -> vector<512x128xf32>
    %30 = arith.addf %24, %29 : vector<512x128xf32>
    %c0_35 = arith.constant 0 : index
    %c1_36 = arith.constant 1 : index
    %c2_37 = arith.constant 2 : index
    %c0_38 = arith.constant 0 : index
    %31 = vector.load %arg1[%c0_35, %c1_36, %c2_37, %c0_38] : memref<2x18x18x8xbf16, #tpu.memory_space<vmem>>, vector<2x16x16x8xbf16>
    %32 = vector.shape_cast %31 : vector<2x16x16x8xbf16> to vector<512x8xbf16>
    %c5 = arith.constant 5 : index
    %c0_39 = arith.constant 0 : index
    %c0_40 = arith.constant 0 : index
    %33 = vector.load %arg2[%c5, %c0_39, %c0_40] : memref<9x8x128xbf16, #tpu.memory_space<vmem>>, vector<1x8x128xbf16>
    %34 = vector.shape_cast %33 : vector<1x8x128xbf16> to vector<8x128xbf16>
    %cst_41 = arith.constant dense<0.000000e+00> : vector<512x128xf32>
    %35 = tpu.matmul %32, %34, %cst_41 {dimension_numbers = #tpu.dot_dimension_numbers<[1], [0], [0], [1], [0, 0, 1, 1], [], []>} : vector<512x8xbf16>, vector<8x128xbf16>, vector<512x128xf32> -> vector<512x128xf32>
    %36 = arith.addf %30, %35 : vector<512x128xf32>
    %c0_42 = arith.constant 0 : index
    %c2_43 = arith.constant 2 : index
    %c0_44 = arith.constant 0 : index
    %c0_45 = arith.constant 0 : index
    %37 = vector.load %arg1[%c0_42, %c2_43, %c0_44, %c0_45] : memref<2x18x18x8xbf16, #tpu.memory_space<vmem>>, vector<2x16x16x8xbf16>
    %38 = vector.shape_cast %37 : vector<2x16x16x8xbf16> to vector<512x8xbf16>
    %c6 = arith.constant 6 : index
    %c0_46 = arith.constant 0 : index
    %c0_47 = arith.constant 0 : index
    %39 = vector.load %arg2[%c6, %c0_46, %c0_47] : memref<9x8x128xbf16, #tpu.memory_space<vmem>>, vector<1x8x128xbf16>
    %40 = vector.shape_cast %39 : vector<1x8x128xbf16> to vector<8x128xbf16>
    %cst_48 = arith.constant dense<0.000000e+00> : vector<512x128xf32>
    %41 = tpu.matmul %38, %40, %cst_48 {dimension_numbers = #tpu.dot_dimension_numbers<[1], [0], [0], [1], [0, 0, 1, 1], [], []>} : vector<512x8xbf16>, vector<8x128xbf16>, vector<512x128xf32> -> vector<512x128xf32>
    %42 = arith.addf %36, %41 : vector<512x128xf32>
    %c0_49 = arith.constant 0 : index
    %c2_50 = arith.constant 2 : index
    %c1_51 = arith.constant 1 : index
    %c0_52 = arith.constant 0 : index
    %43 = vector.load %arg1[%c0_49, %c2_50, %c1_51, %c0_52] : memref<2x18x18x8xbf16, #tpu.memory_space<vmem>>, vector<2x16x16x8xbf16>
    %44 = vector.shape_cast %43 : vector<2x16x16x8xbf16> to vector<512x8xbf16>
    %c7 = arith.constant 7 : index
    %c0_53 = arith.constant 0 : index
    %c0_54 = arith.constant 0 : index
    %45 = vector.load %arg2[%c7, %c0_53, %c0_54] : memref<9x8x128xbf16, #tpu.memory_space<vmem>>, vector<1x8x128xbf16>
    %46 = vector.shape_cast %45 : vector<1x8x128xbf16> to vector<8x128xbf16>
    %cst_55 = arith.constant dense<0.000000e+00> : vector<512x128xf32>
    %47 = tpu.matmul %44, %46, %cst_55 {dimension_numbers = #tpu.dot_dimension_numbers<[1], [0], [0], [1], [0, 0, 1, 1], [], []>} : vector<512x8xbf16>, vector<8x128xbf16>, vector<512x128xf32> -> vector<512x128xf32>
    %48 = arith.addf %42, %47 : vector<512x128xf32>
    %c0_56 = arith.constant 0 : index
    %c2_57 = arith.constant 2 : index
    %c2_58 = arith.constant 2 : index
    %c0_59 = arith.constant 0 : index
    %49 = vector.load %arg1[%c0_56, %c2_57, %c2_58, %c0_59] : memref<2x18x18x8xbf16, #tpu.memory_space<vmem>>, vector<2x16x16x8xbf16>
    %50 = vector.shape_cast %49 : vector<2x16x16x8xbf16> to vector<512x8xbf16>
    %c8 = arith.constant 8 : index
    %c0_60 = arith.constant 0 : index
    %c0_61 = arith.constant 0 : index
    %51 = vector.load %arg2[%c8, %c0_60, %c0_61] : memref<9x8x128xbf16, #tpu.memory_space<vmem>>, vector<1x8x128xbf16>
    %52 = vector.shape_cast %51 : vector<1x8x128xbf16> to vector<8x128xbf16>
    %cst_62 = arith.constant dense<0.000000e+00> : vector<512x128xf32>
    %53 = tpu.matmul %50, %52, %cst_62 {dimension_numbers = #tpu.dot_dimension_numbers<[1], [0], [0], [1], [0, 0, 1, 1], [], []>} : vector<512x8xbf16>, vector<8x128xbf16>, vector<512x128xf32> -> vector<512x128xf32>
    %54 = arith.addf %48, %53 : vector<512x128xf32>
    %c0_63 = arith.constant 0 : index
    %c0_64 = arith.constant 0 : index
    %55 = vector.load %arg4[%c0_63, %c0_64] : memref<4x128xf32, #tpu.memory_space<vmem>>, vector<1x128xf32>
    %56 = vector.broadcast %55 : vector<1x128xf32> to vector<512x128xf32>
    %57 = arith.addf %54, %56 : vector<512x128xf32>
    %cst_65 = arith.constant 0.000000e+00 : f32
    %58 = vector.broadcast %cst_65 : f32 to vector<512x128xf32>
    %59 = arith.maximumf %57, %58 : vector<512x128xf32>
    %60 = vector.shape_cast %59 : vector<512x128xf32> to vector<2x256x128xf32>
    %cst_66 = arith.constant dense<0.000000e+00> : vector<2x128xf32>
    %61 = vector.multi_reduction <add>, %60, %cst_66 [1] : vector<2x256x128xf32> to vector<2x128xf32>
    %62 = arith.truncf %61 : vector<2x128xf32> to vector<2x128xbf16>
    %c0_67 = arith.constant 0 : index
    %c0_68 = arith.constant 0 : index
    %c0_69 = arith.constant 0 : index
    %63 = vector.load %arg3[%c0_67, %c0_68, %c0_69] : memref<3x128x128xbf16, #tpu.memory_space<vmem>>, vector<1x128x128xbf16>
    %64 = vector.shape_cast %63 : vector<1x128x128xbf16> to vector<128x128xbf16>
    %cst_70 = arith.constant dense<0.000000e+00> : vector<2x128xf32>
    %65 = tpu.matmul %62, %64, %cst_70 {dimension_numbers = #tpu.dot_dimension_numbers<[1], [0], [0], [1], [0, 0, 1, 1], [], []>} : vector<2x128xbf16>, vector<128x128xbf16>, vector<2x128xf32> -> vector<2x128xf32>
    %c1_71 = arith.constant 1 : index
    %c0_72 = arith.constant 0 : index
    %66 = vector.load %arg4[%c1_71, %c0_72] : memref<4x128xf32, #tpu.memory_space<vmem>>, vector<1x128xf32>
    %67 = vector.broadcast %66 : vector<1x128xf32> to vector<2x128xf32>
    %68 = arith.addf %65, %67 : vector<2x128xf32>
    %69 = arith.truncf %68 : vector<2x128xf32> to vector<2x128xbf16>
    %c1_73 = arith.constant 1 : index
    %c0_74 = arith.constant 0 : index
    %c0_75 = arith.constant 0 : index
    %70 = vector.load %arg3[%c1_73, %c0_74, %c0_75] : memref<3x128x128xbf16, #tpu.memory_space<vmem>>, vector<1x128x128xbf16>
    %71 = vector.shape_cast %70 : vector<1x128x128xbf16> to vector<128x128xbf16>
    %cst_76 = arith.constant dense<0.000000e+00> : vector<2x128xf32>
    %72 = tpu.matmul %69, %71, %cst_76 {dimension_numbers = #tpu.dot_dimension_numbers<[1], [0], [0], [1], [0, 0, 1, 1], [], []>} : vector<2x128xbf16>, vector<128x128xbf16>, vector<2x128xf32> -> vector<2x128xf32>
    %c2_77 = arith.constant 2 : index
    %c0_78 = arith.constant 0 : index
    %73 = vector.load %arg4[%c2_77, %c0_78] : memref<4x128xf32, #tpu.memory_space<vmem>>, vector<1x128xf32>
    %74 = vector.broadcast %73 : vector<1x128xf32> to vector<2x128xf32>
    %75 = arith.addf %72, %74 : vector<2x128xf32>
    %cst_79 = arith.constant 0.000000e+00 : f32
    %76 = vector.broadcast %cst_79 : f32 to vector<2x128xf32>
    %77 = arith.maximumf %75, %76 : vector<2x128xf32>
    %78 = arith.truncf %77 : vector<2x128xf32> to vector<2x128xbf16>
    %c2_80 = arith.constant 2 : index
    %c0_81 = arith.constant 0 : index
    %c0_82 = arith.constant 0 : index
    %79 = vector.load %arg3[%c2_80, %c0_81, %c0_82] : memref<3x128x128xbf16, #tpu.memory_space<vmem>>, vector<1x128x128xbf16>
    %80 = vector.shape_cast %79 : vector<1x128x128xbf16> to vector<128x128xbf16>
    %cst_83 = arith.constant dense<0.000000e+00> : vector<2x128xf32>
    %81 = tpu.matmul %78, %80, %cst_83 {dimension_numbers = #tpu.dot_dimension_numbers<[1], [0], [0], [1], [0, 0, 1, 1], [], []>} : vector<2x128xbf16>, vector<128x128xbf16>, vector<2x128xf32> -> vector<2x128xf32>
    %c3_84 = arith.constant 3 : index
    %c0_85 = arith.constant 0 : index
    %82 = vector.load %arg4[%c3_84, %c0_85] : memref<4x128xf32, #tpu.memory_space<vmem>>, vector<1x128xf32>
    %83 = vector.broadcast %82 : vector<1x128xf32> to vector<2x128xf32>
    %84 = arith.addf %81, %83 : vector<2x128xf32>
    %c0_86 = arith.constant 0 : index
    %c0_87 = arith.constant 0 : index
    %85 = vector.load %arg5[%c0_86, %c0_87] : memref<2x128xf32, #tpu.memory_space<vmem>>, vector<2x128xf32>
    tpu.vector_store %arg5[%c0_86, %c0_87], %84 {strides = array<i32>} : memref<2x128xf32, #tpu.memory_space<vmem>>, vector<2x128xf32>,
    return
  }
  func.func @transform_0(%arg0: i32) -> (i32, i32, i32, i32) {
    %c0_i32 = arith.constant 0 : i32
    %c0_i32_0 = arith.constant 0 : i32
    %c0_i32_1 = arith.constant 0 : i32
    %c0_i32_2 = arith.constant 0 : i32
    return %arg0, %c0_i32, %c0_i32_0, %c0_i32_1 : i32, i32, i32, i32
  }
  func.func @transform_1(%arg0: i32) -> (i32, i32, i32) {
    %c0_i32 = arith.constant 0 : i32
    %c0_i32_0 = arith.constant 0 : i32
    %c0_i32_1 = arith.constant 0 : i32
    %c0_i32_2 = arith.constant 0 : i32
    return %c0_i32, %c0_i32_0, %c0_i32_1 : i32, i32, i32
  }
  func.func @transform_2(%arg0: i32) -> (i32, i32, i32) {
    %c0_i32 = arith.constant 0 : i32
    %c0_i32_0 = arith.constant 0 : i32
    %c0_i32_1 = arith.constant 0 : i32
    %c0_i32_2 = arith.constant 0 : i32
    return %c0_i32, %c0_i32_0, %c0_i32_1 : i32, i32, i32
  }
  func.func @transform_3(%arg0: i32) -> (i32, i32) {
    %c0_i32 = arith.constant 0 : i32
    %c0_i32_0 = arith.constant 0 : i32
    %c0_i32_1 = arith.constant 0 : i32
    return %c0_i32, %c0_i32_0 : i32, i32
  }
  func.func @transform_4(%arg0: i32) -> (i32, i32) {
    %c0_i32 = arith.constant 0 : i32
    %c0_i32_0 = arith.constant 0 : i32
    return %arg0, %c0_i32 : i32, i32
  }
}

</mosaic_0001>

<bundles_post_ra>
// kernel: tpu_custom_call.1
= control target key start
LH: loop header
LB: loop body
LE: loop exit
PB: predicated region body
PF: predicated region fallthrough
CT: control target
= control target key end

     0   :  { %vm1082_vm0 = vcmask 1043456   ;;  %vm116_vm1 = vsmask.f32 3328  ;;  %vm117_vm2 = vsmask.f32 7440  ;;  %vm985_vm4 = vcmask 64512   ;;  %s16311_s0 = inlined_call_operand.vmem [shape: bf16[2,18,18,8], index: 0, kind: input, shape index: {}]   ;;  %s16312_s1 = inlined_call_operand.vmem [shape: bf16[9,8,128], index: 1, kind: input, shape index: {}]   ;;  %s16313_s2 = inlined_call_operand.vmem [shape: bf16[3,128,128], index: 2, kind: input, shape index: {}]   ;;  %s16314_s3 = inlined_call_operand.vmem [shape: f32[4,128], index: 3, kind: input, shape index: {}]   ;;  %s16315_s4 = inlined_call_operand.hbm [shape: f32[2,128], index: 4, kind: output, shape index: {}]  }
   0x1   :  { %v9801_v0 = vld [vmem:[%s16312_s1 + $0x10] sm:$0xf]  ;;  %v9350_v1 = vld [vmem:[%s16312_s1 + $0x4] sm:$0xf]  ;;  %v19_v4 = vld [vmem:[%s16311_s0] sm:$0xf] }
   0x2   :  { %11968 = vmatprep.subr.msk.bf16.mxu0 %vm1082_vm0, %v9801_v0  ;;  %11964 = vmatprep.subr.msk.bf16.mxu1 %vm1082_vm0, %v9350_v1  ;;  %v4534_v2 = vsel %vm1082_vm0, %v9801_v0, 0  ;;  %v1084_v3 = vsel %vm1082_vm0, %v9350_v1, 0  ;;  %v20_v5 = vld [vmem:[%s16311_s0 + $0x4] sm:$0xf]  ;;  %v84_v6 = vld [vmem:[%s16311_s0 + $0x8] sm:$0x1]  ;;  %vm12384_vm3 = vmor %vm116_vm1, %vm117_vm2 }
   0x3   :  { %11063 = vmatpush3.bf16.msra.mxu0 %v4534_v2  ;;  %10799 = vmatpush3.bf16.msra.mxu1 %v1084_v3  ;;  %v120_v7 = vshrl.u32 %v19_v4, 16  ;;  %v123_v8 = vshll.u32 %v19_v4, 16  ;;  %v129_v9 = vshll.u32 %v20_v5, 16  ;;  %v133_v10 = vshrl.u32 %v20_v5, 16  ;;  %v9705_v11 = vld [vmem:[%s16311_s0 + $0xc] sm:$0xf] }
   0x4   :  { %v139_v12 = vshll.u32 %v84_v6, 16  ;;  %v12362_v13 = vld [vmem:[%s16311_s0 + $0x10] sm:$0xf]  ;;  %v12367_v14 = vld [vmem:[%s16311_s0 + $0x14] sm:$0x1]  ;;  %v3572_v21 = vshrl.u32 %v9705_v11, 16 }
   0x5   :  { %v122_v15 = vrot.slane %v120_v7, 4  ;;  %v125_v16 = vrot.slane %v123_v8, 5  ;;  %v131_v17 = vrot.slane %v129_v9, 5  ;;  %v135_v18 = vrot.slane %v133_v10, 4  ;;  %v12372_v19 = vld [vmem:[%s16312_s1 + $0x14] sm:$0xf] }
   0x6   :  { %v141_v20 = vrot.slane %v139_v12, 5  ;;  %v3575_v22 = vshll.u32 %v9705_v11, 16  ;;  %v3581_v23 = vshll.u32 %v12362_v13, 16  ;;  %11969 = vmatprep.subr.msk.bf16.mxu0 %vm1082_vm0, %v12372_v19  ;;  %v3585_v26 = vshrl.u32 %v12362_v13, 16  ;;  %v21_v28 = vld [vmem:[%s16311_s0 + $0xc] sm:$0xf] }
   0x7   :  { %v126_v24 = vor.u32 %v125_v16, %v122_v15  ;;  %v136_v25 = vor.u32 %v135_v18, %v131_v17  ;;  %v3591_v27 = vshll.u32 %v12367_v14, 16  ;;  %v3574_v30 = vrot.slane %v3572_v21, 4  ;;  %v22_v33 = vld [vmem:[%s16311_s0 + $0x10] sm:$0xf]  ;;  %v85_v39 = vld [vmem:[%s16311_s0 + $0x14] sm:$0x1] }
   0x8   :  { %v3577_v31 = vrot.slane %v3575_v22, 5  ;;  %v3583_v32 = vrot.slane %v3581_v23, 5  ;;  %v3587_v36 = vrot.slane %v3585_v26, 4  ;;  %v144_v40 = vshrl.u32 %v21_v28, 16  ;;  %v9708_v50 = vld [vmem:[%s16311_s0 + $0x18] sm:$0xf] }
   0x9   :  { %v127_v34 = vrot.slane %v126_v24, 4  ;;  %v137_v35 = vrot.slane %v136_v25, 4  ;;  %v3593_v38 = vrot.slane %v3591_v27, 5  ;;  %v147_v41 = vshll.u32 %v21_v28, 16  ;;  %v12404_v55 = vld [vmem:[%s16311_s0 + $0x1c] sm:$0xf] }
   0xa   :  { %v3578_v37 = vor.u32 %v3577_v31, %v3574_v30  ;;  %v3588_v44 = vor.u32 %v3587_v36, %v3583_v32  ;;  %v153_v45 = vshll.u32 %v22_v33, 16  ;;  %v146_v48 = vrot.slane %v144_v40, 4  ;;  %v12414_v60 = vld [vmem:[%s16311_s0 + $0x20] sm:$0x1]  ;;  %v23_v9 = vld [vmem:[%s16311_s0 + $0x18] sm:$0xf] }
   0xb   :  { %v132_v42 = vsel %vm12384_vm3, %v127_v34, %v131_v17  ;;  %v142_v43 = vsel %vm12384_vm3, %v137_v35, %v141_v20  ;;  %v149_v49 = vrot.slane %v147_v41, 5  ;;  %v157_v53 = vshrl.u32 %v22_v33, 16  ;;  %v24_v16 = vld [vmem:[%s16311_s0 + $0x1c] sm:$0xf]  ;;  %v86_v25 = vld [vmem:[%s16311_s0 + $0x20] sm:$0x1] }
   0xc   :  { %v9351_v46 = vcombine.low %v132_v42, %v142_v43  ;;  %v3579_v47 = vrot.slane %v3578_v37, 4  ;;  %v3589_v51 = vrot.slane %v3588_v44, 4  ;;  %v155_v52 = vrot.slane %v153_v45, 5  ;;  %v9713_v43 = vld [vmem:[%s16311_s0 + $0x2c] sm:$0x1] }
   0xd   :  { %v163_v54 = vshll.u32 %v85_v39, 16  ;;  %v5019_v57 = vrot.slane %v12362_v13, 5  ;;  %v5022_v58 = vrot.slane %v12367_v14, 5  ;;  %v150_v59 = vor.u32 %v149_v49, %v146_v48 }
   0xe   :  { %10800 = vmatprep.mubr.msk.bf16.mxu1 %vm985_vm4, %v9351_v46  ;;  %v3584_v56 = vsel %vm12384_vm3, %v3579_v47, %v3583_v32  ;;  %v3594_v61 = vsel %vm12384_vm3, %v3589_v51, %v3593_v38  ;;  %v159_v62 = vrot.slane %v157_v53, 4  ;;  %v3596_v0 = vshrl.u32 %v9708_v50, 16  ;;  %v9711_v32 = vld [vmem:[%s16311_s0 + $0x24] sm:$0xf] }
   0xf   :  { %v165_v63 = vrot.slane %v163_v54, 5  ;;  %v9802_v1 = vcombine.low %v3584_v56, %v3594_v61  ;;  %v151_v2 = vrot.slane %v150_v59, 4  ;;  %v3599_v3 = vshll.u32 %v9708_v50, 16  ;;  %v25_v50 = vld [vmem:[%s16311_s0 + $0x24] sm:$0xf] }
  0x10   :  { %v3605_v4 = vshll.u32 %v12404_v55, 16  ;;  %v160_v5 = vor.u32 %v159_v62, %v155_v52  ;;  %v3598_v6 = vrot.slane %v3596_v0, 4  ;;  %v3609_v7 = vshrl.u32 %v12404_v55, 16  ;;  %v26_v56 = vld [vmem:[%s16311_s0 + $0x28] sm:$0xf] }
  0x11   :  { %v3615_v8 = vshll.u32 %v12414_v60, 16  ;;  %11064 = vmatprep.mubr.msk.bf16.mxu0 %vm985_vm4, %v9802_v1  ;;  %v156_v10 = vsel %vm12384_vm3, %v151_v2, %v155_v52  ;;  %v3601_v11 = vrot.slane %v3599_v3, 5  ;;  %v5026_v15 = vrot.slane %v12404_v55, 5  ;;  %v87_v2 = vld [vmem:[%s16311_s0 + $0x2c] sm:$0x1] }
  0x12   :  { %v3607_v12 = vrot.slane %v3605_v4, 5  ;;  %v161_v17 = vrot.slane %v160_v5, 4  ;;  %v3611_v18 = vrot.slane %v3609_v7, 4  ;;  %v5029_v21 = vrot.slane %v12414_v60, 5  ;;  %v13369_v55 = vld [vmem:[%s16312_s1 + $0x8] sm:$0xf] }
  0x13   :  { %v3617_v20 = vrot.slane %v3615_v8, 5  ;;  %v3602_v22 = vor.u32 %v3601_v11, %v3598_v6  ;;  %v12434_v23 = vrot.slane %v5026_v15, 4  ;;  %v5436_v24 = vsel %vm1082_vm0, %v12372_v19, 0  ;;  %v9712_v19 = vld [vmem:[%s16311_s0 + $0x28] sm:$0xf] }
  0x14   :  { %v168_v26 = vshrl.u32 %v23_v9, 16  ;;  %v166_v27 = vsel %vm12384_vm3, %v161_v17, %v165_v63  ;;  %v3612_v28 = vor.u32 %v3611_v18, %v3607_v12  ;;  %v171_v30 = vshll.u32 %v23_v9, 16  ;;  %v9714_v9 = vld [vmem:[%s16311_s0 + $0x30] sm:$0xf]  ;;  %v9715_v17 = vld [vmem:[%s16311_s0 + $0x34] sm:$0xf] }
  0x15   :  { %v177_v31 = vshll.u32 %v24_v16, 16  ;;  %v9352_v33 = vcombine.low %v156_v10, %v166_v27  ;;  %v3603_v34 = vrot.slane %v3602_v22, 4  ;;  %v181_v36 = vshrl.u32 %v24_v16, 16 }
  0x16   :  { %v170_v35 = vrot.slane %v168_v26, 4  ;;  %v3613_v37 = vrot.slane %v3612_v28, 4  ;;  %v173_v38 = vrot.slane %v171_v30, 5  ;;  %v187_v40 = vshll.u32 %v86_v25, 16 }
  0x17   :  { %v179_v39 = vrot.slane %v177_v31, 5  ;;  %10801 = vmatmul.mubr.msk.bf16.vlgmr.msra.gmra.mrb[0].mxu1 %vm985_vm4, %v9352_v33  ;;  %v3608_v41 = vsel %vm12384_vm3, %v3603_v34, %v3607_v12  ;;  %v183_v42 = vrot.slane %v181_v36, 4  ;;  %v3620_v44 = vshrl.u32 %v9711_v32, 16 }
  0x18   :  { %v3623_v45 = vshll.u32 %v9711_v32, 16  ;;  %v3618_v46 = vsel %vm12384_vm3, %v3613_v37, %v3617_v20  ;;  %v174_v47 = vor.u32 %v173_v38, %v170_v35  ;;  %v189_v48 = vrot.slane %v187_v40, 5  ;;  %v9716_v32 = vld [vmem:[%s16311_s0 + $0x38] sm:$0x1]  ;;  %v27_v38 = vld [vmem:[%s16311_s0 + $0x30] sm:$0xf] }
  0x19   :  { %v3629_v49 = vshll.u32 %v9712_v19, 16  ;;  %v9803_v51 = vcombine.low %v3608_v41, %v3618_v46  ;;  %v184_v52 = vor.u32 %v183_v42, %v179_v39  ;;  %v3622_v53 = vrot.slane %v3620_v44, 4 }
  0x1a   :  { %v3625_v54 = vrot.slane %v3623_v45, 5  ;;  %v175_v59 = vrot.slane %v174_v47, 4  ;;  %v3633_v62 = vshrl.u32 %v9712_v19, 16  ;;  %v3639_v63 = vshll.u32 %v9713_v43, 16  ;;  %v28_v43 = vld [vmem:[%s16311_s0 + $0x34] sm:$0xf] }
  0x1b   :  { %v3631_v61 = vrot.slane %v3629_v49, 5  ;;  %11065 = vmatmul.mubr.msk.bf16.vlgmr.msra.gmra.mrb[0].mxu0 %vm985_vm4, %v9803_v51  ;;  %v185_v0 = vrot.slane %v184_v52, 4  ;;  %v192_v3 = vshrl.u32 %v25_v50, 16  ;;  %v195_v4 = vshll.u32 %v25_v50, 16  ;;  %v88_v50 = vld [vmem:[%s16311_s0 + $0x38] sm:$0x1] }
  0x1c   :  { %v3626_v1 = vor.u32 %v3625_v54, %v3622_v53  ;;  %11129 = vmatpush3.bf16.msra.mxu0 %v5436_v24  ;;  %v180_v5 = vsel %vm12384_vm3, %v175_v59, %v179_v39  ;;  %v3635_v6 = vrot.slane %v3633_v62, 4  ;;  %v3641_v7 = vrot.slane %v3639_v63, 5 }
  0x1d   :  { %v201_v8 = vshll.u32 %v26_v56, 16  ;;  %v190_v10 = vsel %vm12384_vm3, %v185_v0, %v189_v48  ;;  %v194_v12 = vrot.slane %v192_v3, 4  ;;  %v197_v16 = vrot.slane %v195_v4, 5 }
  0x1e   :  { %v3627_v11 = vrot.slane %v3626_v1, 4  ;;  %v9353_v18 = vcombine.low %v180_v5, %v190_v10  ;;  %v3636_v20 = vor.u32 %v3635_v6, %v3631_v61  ;;  %v205_v24 = vshrl.u32 %v26_v56, 16 }
  0x1f   :  { %v203_v22 = vrot.slane %v201_v8, 5  ;;  %v198_v26 = vor.u32 %v197_v16, %v194_v12  ;;  %v211_v27 = vshll.u32 %v87_v2, 16  ;;  %v3644_v28 = vshrl.u32 %v9714_v9, 16  ;;  %v9718_v2 = vld [vmem:[%s16311_s0 + $0x40] sm:$0xf] }
  0x20   :  { %v3632_v25 = vsel %vm12384_vm3, %v3627_v11, %v3631_v61  ;;  %10804 = vmatprep.mubr.msk.bf16.mxu1 %vm985_vm4, %v9353_v18  ;;  %v3637_v30 = vrot.slane %v3636_v20, 4  ;;  %v207_v31 = vrot.slane %v205_v24, 4  ;;  %v3647_v33 = vshll.u32 %v9714_v9, 16  ;;  %v9717_v61 = vld [vmem:[%s16311_s0 + $0x3c] sm:$0xf] }
  0x21   :  { %v3653_v34 = vshll.u32 %v9715_v17, 16  ;;  %v199_v35 = vrot.slane %v198_v26, 4  ;;  %v213_v36 = vrot.slane %v211_v27, 5  ;;  %v3646_v19 = vrot.slane %v3644_v28, 4  ;;  %v9719_v16 = vld [vmem:[%s16311_s0 + $0x44] sm:$0x1] }
  0x22   :  { %v3657_v37 = vshrl.u32 %v9715_v17, 16  ;;  %v3642_v39 = vsel %vm12384_vm3, %v3637_v30, %v3641_v7  ;;  %v208_v40 = vor.u32 %v207_v31, %v203_v22  ;;  %v3649_v41 = vrot.slane %v3647_v33, 5  ;;  %v29_v20 = vld [vmem:[%s16311_s0 + $0x3c] sm:$0xf]  ;;  %v30_v27 = vld [vmem:[%s16311_s0 + $0x40] sm:$0xf] }
  0x23   :  { %v3655_v42 = vrot.slane %v3653_v34, 5  ;;  %v9804_v44 = vcombine.low %v3632_v25, %v3642_v39  ;;  %v204_v45 = vsel %vm12384_vm3, %v199_v35, %v203_v22  ;;  %v3663_v47 = vshll.u32 %v9716_v32, 16  ;;  %v89_v39 = vld [vmem:[%s16311_s0 + $0x44] sm:$0x1] }
  0x24   :  { %v3659_v46 = vrot.slane %v3657_v37, 4  ;;  %v209_v48 = vrot.slane %v208_v40, 4  ;;  %v3650_v49 = vor.u32 %v3649_v41, %v3646_v19  ;;  %v216_v51 = vshrl.u32 %v27_v38, 16  ;;  %v9720_v41 = vld [vmem:[%s16311_s0 + $0x48] sm:$0xf] }
  0x25   :  { %v219_v52 = vshll.u32 %v27_v38, 16  ;;  %11068 = vmatprep.mubr.msk.bf16.mxu0 %vm985_vm4, %v9804_v44  ;;  %v3665_v54 = vrot.slane %v3663_v47, 5  ;;  %v225_v56 = vshll.u32 %v28_v43, 16  ;;  %v229_v59 = vshrl.u32 %v28_v43, 16 }
  0x26   :  { %v3660_v53 = vor.u32 %v3659_v46, %v3655_v42  ;;  %v214_v62 = vsel %vm12384_vm3, %v209_v48, %v213_v36  ;;  %v3651_v63 = vrot.slane %v3650_v49, 4  ;;  %v218_v0 = vrot.slane %v216_v51, 4  ;;  %v9721_v46 = vld [vmem:[%s16311_s0 + $0x4c] sm:$0xf] }
  0x27   :  { %v221_v1 = vrot.slane %v219_v52, 5  ;;  %v9354_v3 = vcombine.low %v204_v45, %v214_v62  ;;  %v227_v5 = vrot.slane %v225_v56, 5  ;;  %v231_v6 = vrot.slane %v229_v59, 4  ;;  %v9722_v62 = vld [vmem:[%s16311_s0 + $0x50] sm:$0x1] }
  0x28   :  { %v3661_v4 = vrot.slane %v3660_v53, 4  ;;  %v3656_v7 = vsel %vm12384_vm3, %v3651_v63, %v3655_v42  ;;  %v235_v9 = vshll.u32 %v88_v50, 16  ;;  %v3668_v10 = vshrl.u32 %v9717_v61, 16 }
  0x29   :  { %v222_v8 = vor.u32 %v221_v1, %v218_v0  ;;  %10805 = vmatmul.mubr.msk.bf16.gmra.mrb[4].mxu1 %vm985_vm4, %v9354_v3  ;;  %v232_v12 = vor.u32 %v231_v6, %v227_v5  ;;  %v3671_v17 = vshll.u32 %v9717_v61, 16  ;;  %v3677_v18 = vshll.u32 %v9718_v2, 16 }
  0x2a   :  { %v3666_v11 = vsel %vm12384_vm3, %v3661_v4, %v3665_v54  ;;  %v237_v25 = vrot.slane %v235_v9, 5  ;;  %v3670_v26 = vrot.slane %v3668_v10, 4  ;;  %v3681_v32 = vshrl.u32 %v9718_v2, 16  ;;  %v31_v4 = vld [vmem:[%s16311_s0 + $0x48] sm:$0xf] }
  0x2b   :  { %v9805_v22 = vcombine.low %v3656_v7, %v3666_v11  ;;  %v223_v24 = vrot.slane %v222_v8, 4  ;;  %v233_v28 = vrot.slane %v232_v12, 4  ;;  %v3673_v30 = vrot.slane %v3671_v17, 5  ;;  %v32_v9 = vld [vmem:[%s16311_s0 + $0x4c] sm:$0xf] }
  0x2c   :  { %v3679_v31 = vrot.slane %v3677_v18, 5  ;;  %v3687_v34 = vshll.u32 %v9719_v16, 16  ;;  %v240_v35 = vshrl.u32 %v29_v20, 16  ;;  %v243_v36 = vshll.u32 %v29_v20, 16  ;;  %v90_v20 = vld [vmem:[%s16311_s0 + $0x50] sm:$0x1] }
  0x2d   :  { %11069 = vmatmul.mubr.msk.bf16.gmra.mrb[4].mxu0 %vm985_vm4, %v9805_v22  ;;  %v228_v33 = vsel %vm12384_vm3, %v223_v24, %v227_v5  ;;  %v238_v19 = vsel %vm12384_vm3, %v233_v28, %v237_v25  ;;  %v3674_v37 = vor.u32 %v3673_v30, %v3670_v26  ;;  %v3683_v38 = vrot.slane %v3681_v32, 4  ;;  %v9723_v30 = vld [vmem:[%s16311_s0 + $0x54] sm:$0xf] }
  0x2e   :  { %v249_v40 = vshll.u32 %v30_v27, 16  ;;  %v9355_v42 = vcombine.low %v228_v33, %v238_v19  ;;  %v3689_v43 = vrot.slane %v3687_v34, 5  ;;  %v242_v44 = vrot.slane %v240_v35, 4  ;;  %v9724_v35 = vld [vmem:[%s16311_s0 + $0x58] sm:$0xf] }
  0x2f   :  { %v245_v45 = vrot.slane %v243_v36, 5  ;;  %v3675_v47 = vrot.slane %v3674_v37, 4  ;;  %v3684_v48 = vor.u32 %v3683_v38, %v3679_v31  ;;  %v253_v50 = vshrl.u32 %v30_v27, 16 }
  0x30   :  { %v251_v49 = vrot.slane %v249_v40, 5  ;;  %10808 = vmatprep.mubr.msk.bf16.mxu1 %vm985_vm4, %v9355_v42  ;;  %v259_v52 = vshll.u32 %v89_v39, 16  ;;  %v3692_v53 = vshrl.u32 %v9720_v41, 16  ;;  %v3695_v54 = vshll.u32 %v9720_v41, 16  ;;  %v9725_v42 = vld [vmem:[%s16311_s0 + $0x5c] sm:$0x1] }
  0x31   :  { %v246_v51 = vor.u32 %v245_v45, %v242_v44  ;;  %v3680_v56 = vsel %vm12384_vm3, %v3675_v47, %v3679_v31  ;;  %v3685_v59 = vrot.slane %v3684_v48, 4  ;;  %v255_v61 = vrot.slane %v253_v50, 4  ;;  %v33_v48 = vld [vmem:[%s16311_s0 + $0x54] sm:$0xf] }
  0x32   :  { %v3701_v63 = vshll.u32 %v9721_v46, 16  ;;  %v261_v1 = vrot.slane %v259_v52, 5  ;;  %v3694_v2 = vrot.slane %v3692_v53, 4  ;;  %v3697_v3 = vrot.slane %v3695_v54, 5  ;;  %v34_v53 = vld [vmem:[%s16311_s0 + $0x58] sm:$0xf] }
  0x33   :  { %v247_v0 = vrot.slane %v246_v51, 4  ;;  %v3690_v5 = vsel %vm12384_vm3, %v3685_v59, %v3689_v43  ;;  %v256_v6 = vor.u32 %v255_v61, %v251_v49  ;;  %v3705_v8 = vshrl.u32 %v9721_v46, 16 }
  0x34   :  { %v3703_v7 = vrot.slane %v3701_v63, 5  ;;  %v9806_v10 = vcombine.low %v3680_v56, %v3690_v5  ;;  %v3698_v12 = vor.u32 %v3697_v3, %v3694_v2  ;;  %v3711_v16 = vshll.u32 %v9722_v62, 16 }
  0x35   :  { %v252_v11 = vsel %vm12384_vm3, %v247_v0, %v251_v49  ;;  %v257_v17 = vrot.slane %v256_v6, 4  ;;  %v3707_v18 = vrot.slane %v3705_v8, 4  ;;  %v264_v22 = vshrl.u32 %v31_v4, 16 }
  0x36   :  { %v267_v24 = vshll.u32 %v31_v4, 16  ;;  %11072 = vmatprep.mubr.msk.bf16.mxu0 %vm985_vm4, %v9806_v10  ;;  %v3699_v25 = vrot.slane %v3698_v12, 4  ;;  %v3713_v26 = vrot.slane %v3711_v16, 5  ;;  %v273_v27 = vshll.u32 %v32_v9, 16  ;;  %v91_v4 = vld [vmem:[%s16311_s0 + $0x5c] sm:$0x1] }
  0x37   :  { %v277_v28 = vshrl.u32 %v32_v9, 16  ;;  %v262_v31 = vsel %vm12384_vm3, %v257_v17, %v261_v1  ;;  %v3708_v32 = vor.u32 %v3707_v18, %v3703_v7  ;;  %v266_v33 = vrot.slane %v264_v22, 4  ;;  %v9727_v12 = vld [vmem:[%s16311_s0 + $0x64] sm:$0xf] }
  0x38   :  { %v269_v34 = vrot.slane %v267_v24, 5  ;;  %v9356_v36 = vcombine.low %v252_v11, %v262_v31  ;;  %v3704_v19 = vsel %vm12384_vm3, %v3699_v25, %v3703_v7  ;;  %v275_v37 = vrot.slane %v273_v27, 5  ;;  %v9726_v7 = vld [vmem:[%s16311_s0 + $0x60] sm:$0xf]  ;;  %v9728_v31 = vld [vmem:[%s16311_s0 + $0x68] sm:$0x1] }
  0x39   :  { %v279_v38 = vrot.slane %v277_v28, 4  ;;  %v3709_v39 = vrot.slane %v3708_v32, 4  ;;  %v283_v41 = vshll.u32 %v90_v20, 16  ;;  %v3716_v43 = vshrl.u32 %v9723_v30, 16 }
  0x3a   :  { %v270_v40 = vor.u32 %v269_v34, %v266_v33  ;;  %10809 = vmatmul.mubr.msk.bf16.gmra.mrb[8].mxu1 %vm985_vm4, %v9356_v36  ;;  %v3719_v45 = vshll.u32 %v9723_v30, 16  ;;  %v3725_v46 = vshll.u32 %v9724_v35, 16  ;;  %v3729_v47 = vshrl.u32 %v9724_v35, 16  ;;  %v35_v33 = vld [vmem:[%s16311_s0 + $0x60] sm:$0xf] }
  0x3b   :  { %v280_v44 = vor.u32 %v279_v38, %v275_v37  ;;  %v3714_v49 = vsel %vm12384_vm3, %v3709_v39, %v3713_v26  ;;  %v285_v51 = vrot.slane %v283_v41, 5  ;;  %v3718_v52 = vrot.slane %v3716_v43, 4 }
  0x3c   :  { %v271_v50 = vrot.slane %v270_v40, 4  ;;  %v9807_v54 = vcombine.low %v3704_v19, %v3714_v49  ;;  %v3721_v59 = vrot.slane %v3719_v45, 5  ;;  %v3727_v61 = vrot.slane %v3725_v46, 5 }
  0x3d   :  { %v281_v56 = vrot.slane %v280_v44, 4  ;;  %v3731_v63 = vrot.slane %v3729_v47, 4  ;;  %v3735_v0 = vshll.u32 %v9725_v42, 16  ;;  %v288_v1 = vshrl.u32 %v33_v48, 16 }
  0x3e   :  { %v276_v62 = vsel %vm12384_vm3, %v271_v50, %v275_v37  ;;  %11073 = vmatmul.mubr.msk.bf16.gmra.mrb[8].mxu0 %vm985_vm4, %v9807_v54  ;;  %v3722_v3 = vor.u32 %v3721_v59, %v3718_v52  ;;  %v291_v5 = vshll.u32 %v33_v48, 16  ;;  %v297_v6 = vshll.u32 %v34_v53, 16  ;;  %v36_v37 = vld [vmem:[%s16311_s0 + $0x64] sm:$0xf]  ;;  %v92_v48 = vld [vmem:[%s16311_s0 + $0x68] sm:$0x1] }
  0x3f   :  { %v286_v2 = vsel %vm12384_vm3, %v281_v56, %v285_v51  ;;  %v3732_v9 = vor.u32 %v3731_v63, %v3727_v61  ;;  %v3737_v10 = vrot.slane %v3735_v0, 5  ;;  %v290_v11 = vrot.slane %v288_v1, 4  ;;  %v9729_v56 = vld [vmem:[%s16311_s0 + $0x6c] sm:$0xf]  ;;  %v9730_v0 = vld [vmem:[%s16311_s0 + $0x70] sm:$0xf] }
  0x40   :  { %v9357_v8 = vcombine.low %v276_v62, %v286_v2  ;;  %v3723_v16 = vrot.slane %v3722_v3, 4  ;;  %v293_v17 = vrot.slane %v291_v5, 5  ;;  %v299_v18 = vrot.slane %v297_v6, 5 }
  0x41   :  { %v301_v20 = vshrl.u32 %v34_v53, 16  ;;  %v3733_v22 = vrot.slane %v3732_v9, 4  ;;  %v307_v24 = vshll.u32 %v91_v4, 16  ;;  %v3740_v25 = vshrl.u32 %v9726_v7, 16 }
  0x42   :  { %10812 = vmatprep.mubr.msk.bf16.mxu1 %vm985_vm4, %v9357_v8  ;;  %v3743_v26 = vshll.u32 %v9726_v7, 16  ;;  %v3728_v27 = vsel %vm12384_vm3, %v3723_v16, %v3727_v61  ;;  %v294_v28 = vor.u32 %v293_v17, %v290_v11  ;;  %v3749_v32 = vshll.u32 %v9727_v12, 16  ;;  %v9731_v7 = vld [vmem:[%s16311_s0 + $0x74] sm:$0x1] }
  0x43   :  { %v303_v30 = vrot.slane %v301_v20, 4  ;;  %v3738_v34 = vsel %vm12384_vm3, %v3733_v22, %v3737_v10  ;;  %v309_v35 = vrot.slane %v307_v24, 5  ;;  %v3742_v36 = vrot.slane %v3740_v25, 4  ;;  %v37_v24 = vld [vmem:[%s16311_s0 + $0x6c] sm:$0xf] }
  0x44   :  { %v3745_v19 = vrot.slane %v3743_v26, 5  ;;  %v9808_v38 = vcombine.low %v3728_v27, %v3738_v34  ;;  %v295_v39 = vrot.slane %v294_v28, 4  ;;  %v3751_v41 = vrot.slane %v3749_v32, 5 }
  0x45   :  { %v304_v40 = vor.u32 %v303_v30, %v299_v18  ;;  %v3753_v43 = vshrl.u32 %v9727_v12, 16  ;;  %v3759_v44 = vshll.u32 %v9728_v31, 16  ;;  %v312_v45 = vshrl.u32 %v35_v33, 16  ;;  %v38_v30 = vld [vmem:[%s16311_s0 + $0x70] sm:$0xf] }
  0x46   :  { %v3746_v42 = vor.u32 %v3745_v19, %v3742_v36  ;;  %11076 = vmatprep.mubr.msk.bf16.mxu0 %vm985_vm4, %v9808_v38  ;;  %v300_v46 = vsel %vm12384_vm3, %v295_v39, %v299_v18  ;;  %v315_v49 = vshll.u32 %v35_v33, 16  ;;  %v321_v50 = vshll.u32 %v36_v37, 16  ;;  %v93_v19 = vld [vmem:[%s16311_s0 + $0x74] sm:$0x1] }
  0x47   :  { %v305_v47 = vrot.slane %v304_v40, 4  ;;  %v3755_v52 = vrot.slane %v3753_v43, 4  ;;  %v3761_v53 = vrot.slane %v3759_v44, 5  ;;  %v314_v54 = vrot.slane %v312_v45, 4  ;;  %v9732_v43 = vld [vmem:[%s16311_s0 + $0x78] sm:$0xf] }
  0x48   :  { %v3747_v51 = vrot.slane %v3746_v42, 4  ;;  %v317_v61 = vrot.slane %v315_v49, 5  ;;  %v323_v62 = vrot.slane %v321_v50, 5  ;;  %v325_v63 = vshrl.u32 %v36_v37, 16 }
  0x49   :  { %v310_v59 = vsel %vm12384_vm3, %v305_v47, %v309_v35  ;;  %v3756_v3 = vor.u32 %v3755_v52, %v3751_v41  ;;  %v331_v4 = vshll.u32 %v92_v48, 16  ;;  %v3764_v8 = vshrl.u32 %v9729_v56, 16  ;;  %v9733_v48 = vld [vmem:[%s16311_s0 + $0x7c] sm:$0xf] }
  0x4a   :  { %v9358_v1 = vcombine.low %v300_v46, %v310_v59  ;;  %v3752_v2 = vsel %vm12384_vm3, %v3747_v51, %v3751_v41  ;;  %v318_v5 = vor.u32 %v317_v61, %v314_v54  ;;  %v327_v6 = vrot.slane %v325_v63, 4 }
  0x4b   :  { %v3767_v9 = vshll.u32 %v9729_v56, 16  ;;  %v3757_v10 = vrot.slane %v3756_v3, 4  ;;  %v333_v11 = vrot.slane %v331_v4, 5  ;;  %v3773_v12 = vshll.u32 %v9730_v0, 16  ;;  %v9734_v56 = vld [vmem:[%s16311_s0 + $0x80] sm:$0x1] }
  0x4c   :  { %10813 = vmatmul.mubr.msk.bf16.gmra.mrb[12].mxu1 %vm985_vm4, %v9358_v1  ;;  %v3777_v16 = vshrl.u32 %v9730_v0, 16  ;;  %v319_v17 = vrot.slane %v318_v5, 4  ;;  %v328_v18 = vor.u32 %v327_v6, %v323_v62  ;;  %v3766_v20 = vrot.slane %v3764_v8, 4 }
  0x4d   :  { %v3769_v22 = vrot.slane %v3767_v9, 5  ;;  %v3762_v25 = vsel %vm12384_vm3, %v3757_v10, %v3761_v53  ;;  %v3775_v26 = vrot.slane %v3773_v12, 5  ;;  %v3783_v28 = vshll.u32 %v9731_v7, 16  ;;  %v40_v7 = vld [vmem:[%s16311_s0 + $0x7c] sm:$0xf] }
  0x4e   :  { %v3779_v27 = vrot.slane %v3777_v16, 4  ;;  %v9809_v31 = vcombine.low %v3752_v2, %v3762_v25  ;;  %v324_v32 = vsel %vm12384_vm3, %v319_v17, %v323_v62  ;;  %v329_v33 = vrot.slane %v328_v18, 4  ;;  %v39_v62 = vld [vmem:[%s16311_s0 + $0x78] sm:$0xf]  ;;  %v94_v18 = vld [vmem:[%s16311_s0 + $0x80] sm:$0x1] }
  0x4f   :  { %v3770_v34 = vor.u32 %v3769_v22, %v3766_v20  ;;  %v3785_v36 = vrot.slane %v3783_v28, 5  ;;  %v336_v37 = vshrl.u32 %v37_v24, 16  ;;  %v339_v38 = vshll.u32 %v37_v24, 16  ;;  %v9735_v22 = vld [vmem:[%s16311_s0 + $0x84] sm:$0xf] }
  0x50   :  { %v3780_v35 = vor.u32 %v3779_v27, %v3775_v26  ;;  %11077 = vmatmul.mubr.msk.bf16.gmra.mrb[12].mxu0 %vm985_vm4, %v9809_v31  ;;  %v334_v39 = vsel %vm12384_vm3, %v329_v33, %v333_v11  ;;  %v345_v41 = vshll.u32 %v38_v30, 16  ;;  %v349_v42 = vshrl.u32 %v38_v30, 16  ;;  %v9736_v33 = vld [vmem:[%s16311_s0 + $0x88] sm:$0xf] }
  0x51   :  { %v3771_v40 = vrot.slane %v3770_v34, 4  ;;  %v9359_v44 = vcombine.low %v324_v32, %v334_v39  ;;  %v338_v46 = vrot.slane %v336_v37, 4  ;;  %v341_v47 = vrot.slane %v339_v38, 5 }
  0x52   :  { %v3781_v45 = vrot.slane %v3780_v35, 4  ;;  %v347_v50 = vrot.slane %v345_v41, 5  ;;  %v351_v51 = vrot.slane %v349_v42, 4  ;;  %v355_v52 = vshll.u32 %v93_v19, 16 }
  0x53   :  { %v3776_v49 = vsel %vm12384_vm3, %v3771_v40, %v3775_v26  ;;  %10816 = vmatprep.mubr.msk.bf16.mxu1 %vm985_vm4, %v9359_v44  ;;  %v342_v54 = vor.u32 %v341_v47, %v338_v46  ;;  %v3788_v59 = vshrl.u32 %v9732_v43, 16  ;;  %v3791_v61 = vshll.u32 %v9732_v43, 16  ;;  %v9737_v40 = vld [vmem:[%s16311_s0 + $0x8c] sm:$0x1]  ;;  %v41_v46 = vld [vmem:[%s16311_s0 + $0x84] sm:$0xf] }
  0x54   :  { %v3786_v53 = vsel %vm12384_vm3, %v3781_v45, %v3785_v36  ;;  %v352_v0 = vor.u32 %v351_v51, %v347_v50  ;;  %v357_v1 = vrot.slane %v355_v52, 5  ;;  %v3797_v2 = vshll.u32 %v9733_v48, 16  ;;  %v42_v51 = vld [vmem:[%s16311_s0 + $0x88] sm:$0xf] }
  0x55   :  { %v9810_v63 = vcombine.low %v3776_v49, %v3786_v53  ;;  %v343_v3 = vrot.slane %v342_v54, 4  ;;  %v3790_v4 = vrot.slane %v3788_v59, 4  ;;  %v3793_v5 = vrot.slane %v3791_v61, 5 }
  0x56   :  { %v3801_v6 = vshrl.u32 %v9733_v48, 16  ;;  %v353_v8 = vrot.slane %v352_v0, 4  ;;  %v3799_v9 = vrot.slane %v3797_v2, 5  ;;  %v3807_v10 = vshll.u32 %v9734_v56, 16 }
  0x57   :  { %11080 = vmatprep.mubr.msk.bf16.mxu0 %vm985_vm4, %v9810_v63  ;;  %v360_v11 = vshrl.u32 %v39_v62, 16  ;;  %v348_v12 = vsel %vm12384_vm3, %v343_v3, %v347_v50  ;;  %v3794_v16 = vor.u32 %v3793_v5, %v3790_v4  ;;  %v363_v20 = vshll.u32 %v39_v62, 16  ;;  %v95_v63 = vld [vmem:[%s16311_s0 + $0x8c] sm:$0x1] }
  0x58   :  { %v3803_v17 = vrot.slane %v3801_v6, 4  ;;  %v358_v24 = vsel %vm12384_vm3, %v353_v8, %v357_v1  ;;  %v3809_v25 = vrot.slane %v3807_v10, 5  ;;  %v369_v27 = vshll.u32 %v40_v7, 16 }
  0x59   :  { %v362_v26 = vrot.slane %v360_v11, 4  ;;  %v9360_v28 = vcombine.low %v348_v12, %v358_v24  ;;  %v3795_v30 = vrot.slane %v3794_v16, 4  ;;  %v365_v32 = vrot.slane %v363_v20, 5 }
  0x5a   :  { %v3804_v31 = vor.u32 %v3803_v17, %v3799_v9  ;;  %v371_v34 = vrot.slane %v369_v27, 5  ;;  %v373_v35 = vshrl.u32 %v40_v7, 16  ;;  %v379_v36 = vshll.u32 %v94_v18, 16  ;;  %v9739_v17 = vld [vmem:[%s16311_s0 + $0x94] sm:$0xf] }
  0x5b   :  { %v3812_v19 = vshrl.u32 %v9735_v22, 16  ;;  %10817 = vmatmul.mubr.msk.bf16.gmra.mrb[16].mxu1 %vm985_vm4, %v9360_v28  ;;  %v3800_v37 = vsel %vm12384_vm3, %v3795_v30, %v3799_v9  ;;  %v366_v39 = vor.u32 %v365_v32, %v362_v26  ;;  %v3815_v41 = vshll.u32 %v9735_v22, 16  ;;  %v9738_v9 = vld [vmem:[%s16311_s0 + $0x90] sm:$0xf]  ;;  %v9740_v27 = vld [vmem:[%s16311_s0 + $0x98] sm:$0x1] }
  0x5c   :  { %v3805_v38 = vrot.slane %v3804_v31, 4  ;;  %v375_v42 = vrot.slane %v373_v35, 4  ;;  %v381_v43 = vrot.slane %v379_v36, 5  ;;  %v3821_v45 = vshll.u32 %v9736_v33, 16  ;;  %v43_v35 = vld [vmem:[%s16311_s0 + $0x90] sm:$0xf] }
  0x5d   :  { %v3814_v44 = vrot.slane %v3812_v19, 4  ;;  %v367_v48 = vrot.slane %v366_v39, 4  ;;  %v3817_v49 = vrot.slane %v3815_v41, 5  ;;  %v3825_v50 = vshrl.u32 %v9736_v33, 16  ;;  %v44_v39 = vld [vmem:[%s16311_s0 + $0x94] sm:$0xf] }
  0x5e   :  { %v3810_v47 = vsel %vm12384_vm3, %v3805_v38, %v3809_v25  ;;  %v376_v53 = vor.u32 %v375_v42, %v371_v34  ;;  %v3823_v54 = vrot.slane %v3821_v45, 5  ;;  %v3831_v56 = vshll.u32 %v9737_v40, 16 }
  0x5f   :  { %v9811_v52 = vcombine.low %v3800_v37, %v3810_v47  ;;  %v372_v59 = vsel %vm12384_vm3, %v367_v48, %v371_v34  ;;  %v3818_v61 = vor.u32 %v3817_v49, %v3814_v44  ;;  %v3827_v62 = vrot.slane %v3825_v50, 4 }
  0x60   :  { %v384_v0 = vshrl.u32 %v41_v46, 16  ;;  %v377_v1 = vrot.slane %v376_v53, 4  ;;  %v3833_v2 = vrot.slane %v3831_v56, 5  ;;  %v387_v3 = vshll.u32 %v41_v46, 16  ;;  %v96_v46 = vld [vmem:[%s16311_s0 + $0x98] sm:$0x1] }
  0x61   :  { %11081 = vmatmul.mubr.msk.bf16.gmra.mrb[16].mxu0 %vm985_vm4, %v9811_v52  ;;  %v393_v4 = vshll.u32 %v42_v51, 16  ;;  %v3819_v5 = vrot.slane %v3818_v61, 4  ;;  %v3828_v6 = vor.u32 %v3827_v62, %v3823_v54  ;;  %v397_v8 = vshrl.u32 %v42_v51, 16  ;;  %v9741_v53 = vld [vmem:[%s16311_s0 + $0x9c] sm:$0xf] }
  0x62   :  { %v386_v7 = vrot.slane %v384_v0, 4  ;;  %v382_v10 = vsel %vm12384_vm3, %v377_v1, %v381_v43  ;;  %v389_v11 = vrot.slane %v387_v3, 5  ;;  %v403_v16 = vshll.u32 %v95_v63, 16  ;;  %v9742_v62 = vld [vmem:[%s16311_s0 + $0xa0] sm:$0xf] }
  0x63   :  { %v395_v12 = vrot.slane %v393_v4, 5  ;;  %v9361_v18 = vcombine.low %v372_v59, %v382_v10  ;;  %v3824_v20 = vsel %vm12384_vm3, %v3819_v5, %v3823_v54  ;;  %v3829_v22 = vrot.slane %v3828_v6, 4  ;;  %v9743_v5 = vld [vmem:[%s16311_s0 + $0xa4] sm:$0x1] }
  0x64   :  { %v399_v24 = vrot.slane %v397_v8, 4  ;;  %v390_v25 = vor.u32 %v389_v11, %v386_v7  ;;  %v405_v26 = vrot.slane %v403_v16, 5  ;;  %v3836_v28 = vshrl.u32 %v9738_v9, 16 }
  0x65   :  { %v3839_v30 = vshll.u32 %v9738_v9, 16  ;;  %10820 = vmatprep.mubr.msk.bf16.mxu1 %vm985_vm4, %v9361_v18  ;;  %v3834_v31 = vsel %vm12384_vm3, %v3829_v22, %v3833_v2  ;;  %v3845_v33 = vshll.u32 %v9739_v17, 16  ;;  %v3849_v34 = vshrl.u32 %v9739_v17, 16  ;;  %v46_v22 = vld [vmem:[%s16311_s0 + $0xa0] sm:$0xf] }
  0x66   :  { %v400_v32 = vor.u32 %v399_v24, %v395_v12  ;;  %v9812_v36 = vcombine.low %v3824_v20, %v3834_v31  ;;  %v391_v19 = vrot.slane %v390_v25, 4  ;;  %v3838_v37 = vrot.slane %v3836_v28, 4  ;;  %v97_v31 = vld [vmem:[%s16311_s0 + $0xa4] sm:$0x1] }
  0x67   :  { %v3841_v38 = vrot.slane %v3839_v30, 5  ;;  %v3847_v41 = vrot.slane %v3845_v33, 5  ;;  %v3851_v42 = vrot.slane %v3849_v34, 4  ;;  %v3855_v43 = vshll.u32 %v9740_v27, 16 }
  0x68   :  { %v401_v40 = vrot.slane %v400_v32, 4  ;;  %11084 = vmatprep.mubr.msk.bf16.mxu0 %vm985_vm4, %v9812_v36  ;;  %v396_v44 = vsel %vm12384_vm3, %v391_v19, %v395_v12  ;;  %v408_v47 = vshrl.u32 %v43_v35, 16  ;;  %v411_v48 = vshll.u32 %v43_v35, 16  ;;  %v45_v12 = vld [vmem:[%s16311_s0 + $0x9c] sm:$0xf] }
  0x69   :  { %v3842_v45 = vor.u32 %v3841_v38, %v3838_v37  ;;  %v3852_v50 = vor.u32 %v3851_v42, %v3847_v41  ;;  %v3857_v51 = vrot.slane %v3855_v43, 5  ;;  %v417_v52 = vshll.u32 %v44_v39, 16 }
  0x6a   :  { %v406_v49 = vsel %vm12384_vm3, %v401_v40, %v405_v26  ;;  %v410_v59 = vrot.slane %v408_v47, 4  ;;  %v413_v61 = vrot.slane %v411_v48, 5  ;;  %v421_v1 = vshrl.u32 %v44_v39, 16 }
  0x6b   :  { %v9362_v54 = vcombine.low %v396_v44, %v406_v49  ;;  %v3843_v56 = vrot.slane %v3842_v45, 4  ;;  %v3853_v63 = vrot.slane %v3852_v50, 4  ;;  %v419_v0 = vrot.slane %v417_v52, 5 }
  0x6c   :  { %v427_v2 = vshll.u32 %v96_v46, 16  ;;  %v414_v4 = vor.u32 %v413_v61, %v410_v59  ;;  %v3860_v6 = vshrl.u32 %v9741_v53, 16  ;;  %v3863_v7 = vshll.u32 %v9741_v53, 16  ;;  %v9745_v46 = vld [vmem:[%s16311_s0 + $0xac] sm:$0xf] }
  0x6d   :  { %10821 = vmatmul.mubr.msk.bf16.gmra.mrb[20].mxu1 %vm985_vm4, %v9362_v54  ;;  %v3848_v3 = vsel %vm12384_vm3, %v3843_v56, %v3847_v41  ;;  %v3858_v8 = vsel %vm12384_vm3, %v3853_v63, %v3857_v51  ;;  %v423_v9 = vrot.slane %v421_v1, 4  ;;  %v3869_v11 = vshll.u32 %v9742_v62, 16  ;;  %v9744_v41 = vld [vmem:[%s16311_s0 + $0xa8] sm:$0xf]  ;;  %v9746_v51 = vld [vmem:[%s16311_s0 + $0xb0] sm:$0x1] }
  0x6e   :  { %v429_v10 = vrot.slane %v427_v2, 5  ;;  %v9813_v16 = vcombine.low %v3848_v3, %v3858_v8  ;;  %v415_v17 = vrot.slane %v414_v4, 4  ;;  %v3862_v18 = vrot.slane %v3860_v6, 4 }
  0x6f   :  { %v3865_v20 = vrot.slane %v3863_v7, 5  ;;  %v424_v24 = vor.u32 %v423_v9, %v419_v0  ;;  %v3871_v25 = vrot.slane %v3869_v11, 5  ;;  %v3873_v26 = vshrl.u32 %v9742_v62, 16 }
  0x70   :  { %v3879_v27 = vshll.u32 %v9743_v5, 16  ;;  %11085 = vmatmul.mubr.msk.bf16.gmra.mrb[20].mxu0 %vm985_vm4, %v9813_v16  ;;  %v420_v28 = vsel %vm12384_vm3, %v415_v17, %v419_v0  ;;  %v432_v32 = vshrl.u32 %v45_v12, 16  ;;  %v435_v33 = vshll.u32 %v45_v12, 16  ;;  %v47_v0 = vld [vmem:[%s16311_s0 + $0xa8] sm:$0xf] }
  0x71   :  { %v3866_v30 = vor.u32 %v3865_v20, %v3862_v18  ;;  %v425_v34 = vrot.slane %v424_v24, 4  ;;  %v3875_v35 = vrot.slane %v3873_v26, 4  ;;  %v441_v19 = vshll.u32 %v46_v22, 16  ;;  %v48_v5 = vld [vmem:[%s16311_s0 + $0xac] sm:$0xf] }
  0x72   :  { %v3881_v36 = vrot.slane %v3879_v27, 5  ;;  %v434_v38 = vrot.slane %v432_v32, 4  ;;  %v437_v39 = vrot.slane %v435_v33, 5  ;;  %v445_v40 = vshrl.u32 %v46_v22, 16  ;;  %v98_v16 = vld [vmem:[%s16311_s0 + $0xb0] sm:$0x1] }
  0x73   :  { %v3867_v37 = vrot.slane %v3866_v30, 4  ;;  %v430_v42 = vsel %vm12384_vm3, %v425_v34, %v429_v10  ;;  %v3876_v43 = vor.u32 %v3875_v35, %v3871_v25  ;;  %v443_v44 = vrot.slane %v441_v19, 5 }
  0x74   :  { %v451_v45 = vshll.u32 %v97_v31, 16  ;;  %v9363_v47 = vcombine.low %v420_v28, %v430_v42  ;;  %v438_v49 = vor.u32 %v437_v39, %v434_v38  ;;  %v447_v50 = vrot.slane %v445_v40, 4  ;;  %v9748_v31 = vld [vmem:[%s16311_s0 + $0xb8] sm:$0xf]  ;;  %v9749_v42 = vld [vmem:[%s16311_s0 + $0xbc] sm:$0x1] }
  0x75   :  { %v3872_v48 = vsel %vm12384_vm3, %v3867_v37, %v3871_v25  ;;  %v3877_v52 = vrot.slane %v3876_v43, 4  ;;  %v3884_v54 = vshrl.u32 %v9744_v41, 16  ;;  %v3887_v56 = vshll.u32 %v9744_v41, 16  ;;  %v9747_v25 = vld [vmem:[%s16311_s0 + $0xb4] sm:$0xf] }
  0x76   :  { %v453_v53 = vrot.slane %v451_v45, 5  ;;  %10824 = vmatprep.mubr.msk.bf16.mxu1 %vm985_vm4, %v9363_v47  ;;  %v439_v59 = vrot.slane %v438_v49, 4  ;;  %v448_v61 = vor.u32 %v447_v50, %v443_v44  ;;  %v3893_v62 = vshll.u32 %v9745_v46, 16  ;;  %v50_v49 = vld [vmem:[%s16311_s0 + $0xb8] sm:$0xf] }
  0x77   :  { %v3897_v63 = vshrl.u32 %v9745_v46, 16  ;;  %v3882_v1 = vsel %vm12384_vm3, %v3877_v52, %v3881_v36  ;;  %v3886_v2 = vrot.slane %v3884_v54, 4  ;;  %v3889_v3 = vrot.slane %v3887_v56, 5 }
  0x78   :  { %v3903_v4 = vshll.u32 %v9746_v51, 16  ;;  %v9814_v6 = vcombine.low %v3872_v48, %v3882_v1  ;;  %v444_v7 = vsel %vm12384_vm3, %v439_v59, %v443_v44  ;;  %v449_v8 = vrot.slane %v448_v61, 4  ;;  %v49_v44 = vld [vmem:[%s16311_s0 + $0xb4] sm:$0xf] }
  0x79   :  { %v3895_v9 = vrot.slane %v3893_v62, 5  ;;  %v3890_v10 = vor.u32 %v3889_v3, %v3886_v2  ;;  %v3899_v11 = vrot.slane %v3897_v63, 4  ;;  %v456_v17 = vshrl.u32 %v47_v0, 16  ;;  %v9750_v3 = vld [vmem:[%s16311_s0 + $0xc0] sm:$0xf] }
  0x7a   :  { %v3905_v12 = vrot.slane %v3903_v4, 5  ;;  %11088 = vmatprep.mubr.msk.bf16.mxu0 %vm985_vm4, %v9814_v6  ;;  %v454_v18 = vsel %vm12384_vm3, %v449_v8, %v453_v53  ;;  %v459_v20 = vshll.u32 %v47_v0, 16  ;;  %v465_v22 = vshll.u32 %v48_v5, 16  ;;  %v99_v0 = vld [vmem:[%s16311_s0 + $0xbc] sm:$0x1] }
  0x7b   :  { %v469_v24 = vshrl.u32 %v48_v5, 16  ;;  %v9364_v26 = vcombine.low %v444_v7, %v454_v18  ;;  %v3891_v27 = vrot.slane %v3890_v10, 4  ;;  %v3900_v28 = vor.u32 %v3899_v11, %v3895_v9  ;;  %v9751_v8 = vld [vmem:[%s16311_s0 + $0xc4] sm:$0xf] }
  0x7c   :  { %v458_v30 = vrot.slane %v456_v17, 4  ;;  %v461_v32 = vrot.slane %v459_v20, 5  ;;  %v467_v33 = vrot.slane %v465_v22, 5  ;;  %v475_v35 = vshll.u32 %v98_v16, 16  ;;  %v9752_v20 = vld [vmem:[%s16311_s0 + $0xc8] sm:$0x1] }
  0x7d   :  { %v471_v34 = vrot.slane %v469_v24, 4  ;;  %10825 = vmatmul.mubr.msk.bf16.gmra.mrb[24].mxu1 %vm985_vm4, %v9364_v26  ;;  %v3896_v36 = vsel %vm12384_vm3, %v3891_v27, %v3895_v9  ;;  %v3901_v19 = vrot.slane %v3900_v28, 4  ;;  %v3908_v37 = vshrl.u32 %v9747_v25, 16  ;;  %v51_v28 = vld [vmem:[%s16311_s0 + $0xd8] sm:$0xf] }
  0x7e   :  { %v3911_v38 = vshll.u32 %v9747_v25, 16  ;;  %v462_v39 = vor.u32 %v461_v32, %v458_v30  ;;  %v477_v41 = vrot.slane %v475_v35, 5  ;;  %v3917_v43 = vshll.u32 %v9748_v31, 16 }
  0x7f   :  { %v472_v40 = vor.u32 %v471_v34, %v467_v33  ;;  %v3906_v45 = vsel %vm12384_vm3, %v3901_v19, %v3905_v12  ;;  %v3910_v46 = vrot.slane %v3908_v37, 4  ;;  %v3921_v48 = vshrl.u32 %v9748_v31, 16  ;;  %v52_v37 = vld [vmem:[%s16311_s0 + $0xdc] sm:$0xf] }
  0x80   :  { %v3913_v47 = vrot.slane %v3911_v38, 5  ;;  %v9815_v50 = vcombine.low %v3896_v36, %v3906_v45  ;;  %v463_v51 = vrot.slane %v462_v39, 4  ;;  %v3919_v53 = vrot.slane %v3917_v43, 5  ;;  %v100_v45 = vld [vmem:[%s16311_s0 + $0xe0] sm:$0x1] }
  0x81   :  { %v473_v52 = vrot.slane %v472_v40, 4  ;;  %v3923_v56 = vrot.slane %v3921_v48, 4  ;;  %v3927_v59 = vshll.u32 %v9749_v42, 16  ;;  %v480_v61 = vshrl.u32 %v49_v44, 16 }
  0x82   :  { %v3914_v54 = vor.u32 %v3913_v47, %v3910_v46  ;;  %11089 = vmatmul.mubr.msk.bf16.gmra.mrb[24].mxu0 %vm985_vm4, %v9815_v50  ;;  %v468_v62 = vsel %vm12384_vm3, %v463_v51, %v467_v33  ;;  %v483_v1 = vshll.u32 %v49_v44, 16  ;;  %v489_v2 = vshll.u32 %v50_v49, 16  ;;  %v9753_v51 = vld [vmem:[%s16311_s0 + $0xe4] sm:$0xf] }
  0x83   :  { %v478_v63 = vsel %vm12384_vm3, %v473_v52, %v477_v41  ;;  %v3924_v6 = vor.u32 %v3923_v56, %v3919_v53  ;;  %v3929_v7 = vrot.slane %v3927_v59, 5  ;;  %v482_v9 = vrot.slane %v480_v61, 4  ;;  %v9754_v59 = vld [vmem:[%s16311_s0 + $0xe8] sm:$0xf] }
  0x84   :  { %v9365_v4 = vcombine.low %v468_v62, %v478_v63  ;;  %v3915_v5 = vrot.slane %v3914_v54, 4  ;;  %v485_v10 = vrot.slane %v483_v1, 5  ;;  %v491_v11 = vrot.slane %v489_v2, 5 }
  0x85   :  { %v493_v12 = vshrl.u32 %v50_v49, 16  ;;  %v3925_v17 = vrot.slane %v3924_v6, 4  ;;  %v499_v18 = vshll.u32 %v99_v0, 16  ;;  %v3932_v22 = vshrl.u32 %v9750_v3, 16 }
  0x86   :  { %10828 = vmatprep.mubr.msk.bf16.mxu1 %vm985_vm4, %v9365_v4  ;;  %v3920_v16 = vsel %vm12384_vm3, %v3915_v5, %v3919_v53  ;;  %v486_v24 = vor.u32 %v485_v10, %v482_v9  ;;  %v3935_v26 = vshll.u32 %v9750_v3, 16  ;;  %v3941_v27 = vshll.u32 %v9751_v8, 16  ;;  %v9755_v4 = vld [vmem:[%s16311_s0 + $0xec] sm:$0x1]  ;;  %v53_v10 = vld [vmem:[%s16311_s0 + $0xe4] sm:$0xf] }
  0x87   :  { %v495_v25 = vrot.slane %v493_v12, 4  ;;  %v3930_v30 = vsel %vm12384_vm3, %v3925_v17, %v3929_v7  ;;  %v501_v31 = vrot.slane %v499_v18, 5  ;;  %v3934_v32 = vrot.slane %v3932_v22, 4  ;;  %v54_v18 = vld [vmem:[%s16311_s0 + $0xe8] sm:$0xf] }
  0x88   :  { %v3945_v33 = vshrl.u32 %v9751_v8, 16  ;;  %v9816_v34 = vcombine.low %v3920_v16, %v3930_v30  ;;  %v487_v35 = vrot.slane %v486_v24, 4  ;;  %v3937_v19 = vrot.slane %v3935_v26, 5  ;;  %v101_v26 = vld [vmem:[%s16311_s0 + $0xec] sm:$0x1] }
  0x89   :  { %v496_v36 = vor.u32 %v495_v25, %v491_v11  ;;  %v3943_v38 = vrot.slane %v3941_v27, 5  ;;  %v3951_v40 = vshll.u32 %v9752_v20, 16  ;;  %v504_v41 = vshrl.u32 %v51_v28, 16  ;;  %v9756_v27 = vld [vmem:[%s16311_s0 + $0xf0] sm:$0xf] }
  0x8a   :  { %v3947_v39 = vrot.slane %v3945_v33, 4  ;;  %11092 = vmatprep.mubr.msk.bf16.mxu0 %vm985_vm4, %v9816_v34  ;;  %v492_v42 = vsel %vm12384_vm3, %v487_v35, %v491_v11  ;;  %v3938_v44 = vor.u32 %v3937_v19, %v3934_v32  ;;  %v507_v46 = vshll.u32 %v51_v28, 16  ;;  %v9757_v33 = vld [vmem:[%s16311_s0 + $0xf4] sm:$0xf] }
  0x8b   :  { %v497_v43 = vrot.slane %v496_v36, 4  ;;  %v3953_v48 = vrot.slane %v3951_v40, 5  ;;  %v506_v49 = vrot.slane %v504_v41, 4  ;;  %v513_v50 = vshll.u32 %v52_v37, 16 }
  0x8c   :  { %v3948_v47 = vor.u32 %v3947_v39, %v3943_v38  ;;  %v3939_v53 = vrot.slane %v3938_v44, 4  ;;  %v509_v54 = vrot.slane %v507_v46, 5  ;;  %v517_v56 = vshrl.u32 %v52_v37, 16 }
  0x8d   :  { %v502_v52 = vsel %vm12384_vm3, %v497_v43, %v501_v31  ;;  %v515_v63 = vrot.slane %v513_v50, 5  ;;  %v523_v0 = vshll.u32 %v100_v45, 16  ;;  %v3956_v5 = vshrl.u32 %v9753_v51, 16  ;;  %v9758_v45 = vld [vmem:[%s16311_s0 + $0xf8] sm:$0x1] }
  0x8e   :  { %v9366_v61 = vcombine.low %v492_v42, %v502_v52  ;;  %v3949_v62 = vrot.slane %v3948_v47, 4  ;;  %v3944_v1 = vsel %vm12384_vm3, %v3939_v53, %v3943_v38  ;;  %v510_v2 = vor.u32 %v509_v54, %v506_v49  ;;  %v55_v50 = vld [vmem:[%s16311_s0 + $0xf0] sm:$0xf] }
  0x8f   :  { %v519_v3 = vrot.slane %v517_v56, 4  ;;  %v525_v7 = vrot.slane %v523_v0, 5  ;;  %v3959_v8 = vshll.u32 %v9753_v51, 16  ;;  %v3965_v9 = vshll.u32 %v9754_v59, 16  ;;  %v56_v56 = vld [vmem:[%s16311_s0 + $0xf4] sm:$0xf] }
  0x90   :  { %10829 = vmatmul.mubr.msk.bf16.gmra.mrb[28].mxu1 %vm985_vm4, %v9366_v61  ;;  %v3954_v6 = vsel %vm12384_vm3, %v3949_v62, %v3953_v48  ;;  %v511_v12 = vrot.slane %v510_v2, 4  ;;  %v3958_v17 = vrot.slane %v3956_v5, 4  ;;  %v3969_v24 = vshrl.u32 %v9754_v59, 16 }
  0x91   :  { %v9817_v11 = vcombine.low %v3944_v1, %v3954_v6  ;;  %v520_v16 = vor.u32 %v519_v3, %v515_v63  ;;  %v3961_v20 = vrot.slane %v3959_v8, 5  ;;  %v3967_v22 = vrot.slane %v3965_v9, 5  ;;  %v9759_v9 = vld [vmem:[%s16311_s0 + $0xfc] sm:$0xf] }
  0x92   :  { %v3975_v25 = vshll.u32 %v9755_v4, 16  ;;  %v516_v28 = vsel %vm12384_vm3, %v511_v12, %v515_v63  ;;  %v528_v31 = vshrl.u32 %v53_v10, 16  ;;  %v531_v32 = vshll.u32 %v53_v10, 16  ;;  %v102_v4 = vld [vmem:[%s16311_s0 + $0xf8] sm:$0x1] }
  0x93   :  { %11093 = vmatmul.mubr.msk.bf16.gmra.mrb[28].mxu0 %vm985_vm4, %v9817_v11  ;;  %v521_v30 = vrot.slane %v520_v16, 4  ;;  %v3962_v34 = vor.u32 %v3961_v20, %v3958_v17  ;;  %v3971_v35 = vrot.slane %v3969_v24, 4  ;;  %v537_v19 = vshll.u32 %v54_v18, 16  ;;  %v83_v10 = vld [vmem:[%s16312_s1] sm:$0xf] }
  0x94   :  { %v3977_v36 = vrot.slane %v3975_v25, 5  ;;  %v530_v38 = vrot.slane %v528_v31, 4  ;;  %v533_v39 = vrot.slane %v531_v32, 5  ;;  %v541_v40 = vshrl.u32 %v54_v18, 16  ;;  %11965 = vmatprep.subr.msk.bf16.mxu1 %vm1082_vm0, %v83_v10  ;;  %v10059_v18 = vld [vmem:[%s16312_s1 + $0x18] sm:$0xf] }
  0x95   :  { %v526_v37 = vsel %vm12384_vm3, %v521_v30, %v525_v7  ;;  %v3963_v42 = vrot.slane %v3962_v34, 4  ;;  %v3972_v43 = vor.u32 %v3971_v35, %v3967_v22  ;;  %v539_v44 = vrot.slane %v537_v19, 5  ;;  %11970 = vmatprep.subr.msk.bf16.mxu0 %vm1082_vm0, %v10059_v18  ;;  %v57_v19 = vld [vmem:[%s16311_s0 + $0xfc] sm:$0xf] }
  0x96   :  { %v9367_v41 = vcombine.low %v516_v28, %v526_v37  ;;  %v534_v46 = vor.u32 %v533_v39, %v530_v38  ;;  %v543_v47 = vrot.slane %v541_v40, 4  ;;  %v547_v48 = vshll.u32 %v101_v26, 16  ;;  %v9760_v26 = vld [vmem:[%s16311_s0 + $0x100] sm:$0xf] }
  0x97   :  { %v3980_v49 = vshrl.u32 %v9756_v27, 16  ;;  %v3968_v51 = vsel %vm12384_vm3, %v3963_v42, %v3967_v22  ;;  %v3973_v52 = vrot.slane %v3972_v43, 4  ;;  %v3983_v53 = vshll.u32 %v9756_v27, 16 }
  0x98   :  { %10832 = vmatprep.mubr.msk.bf16.mxu1 %vm985_vm4, %v9367_v41  ;;  %v3989_v54 = vshll.u32 %v9757_v33, 16  ;;  %v535_v59 = vrot.slane %v534_v46, 4  ;;  %v544_v61 = vor.u32 %v543_v47, %v539_v44  ;;  %v549_v62 = vrot.slane %v547_v48, 5  ;;  %v58_v41 = vld [vmem:[%s16311_s0 + $0x100] sm:$0xf] }
  0x99   :  { %v3982_v63 = vrot.slane %v3980_v49, 4  ;;  %v3978_v0 = vsel %vm12384_vm3, %v3973_v52, %v3977_v36  ;;  %v3985_v1 = vrot.slane %v3983_v53, 5  ;;  %v3993_v3 = vshrl.u32 %v9757_v33, 16  ;;  %v9761_v36 = vld [vmem:[%s16311_s0 + $0x104] sm:$0x1] }
  0x9a   :  { %v3991_v2 = vrot.slane %v3989_v54, 5  ;;  %v9818_v5 = vcombine.low %v3968_v51, %v3978_v0  ;;  %v540_v6 = vsel %vm12384_vm3, %v535_v59, %v539_v44  ;;  %v545_v7 = vrot.slane %v544_v61, 4  ;;  %v103_v54 = vld [vmem:[%s16311_s0 + $0x104] sm:$0x1] }
  0x9b   :  { %v3999_v8 = vshll.u32 %v9758_v45, 16  ;;  %v3986_v11 = vor.u32 %v3985_v1, %v3982_v63  ;;  %v3995_v12 = vrot.slane %v3993_v3, 4  ;;  %v552_v16 = vshrl.u32 %v55_v50, 16  ;;  %v9762_v63 = vld [vmem:[%s16311_s0 + $0x108] sm:$0xf] }
  0x9c   :  { %v555_v17 = vshll.u32 %v55_v50, 16  ;;  %11096 = vmatprep.mubr.msk.bf16.mxu0 %vm985_vm4, %v9818_v5  ;;  %v550_v20 = vsel %vm12384_vm3, %v545_v7, %v549_v62  ;;  %v561_v24 = vshll.u32 %v56_v56, 16  ;;  %v565_v25 = vshrl.u32 %v56_v56, 16 }
  0x9d   :  { %v4001_v22 = vrot.slane %v3999_v8, 5  ;;  %v9368_v27 = vcombine.low %v540_v6, %v550_v20  ;;  %v3987_v28 = vrot.slane %v3986_v11, 4  ;;  %v3996_v30 = vor.u32 %v3995_v12, %v3991_v2 }
  0x9e   :  { %v554_v31 = vrot.slane %v552_v16, 4  ;;  %v557_v32 = vrot.slane %v555_v17, 5  ;;  %v563_v33 = vrot.slane %v561_v24, 5  ;;  %v567_v34 = vrot.slane %v565_v25, 4  ;;  %v9764_v16 = vld [vmem:[%s16311_s0 + $0x110] sm:$0x1] }
  0x9f   :  { %v571_v35 = vshll.u32 %v102_v4, 16  ;;  %10833 = vmatmul.mubr.msk.bf16.gmra.mrb[32].mxu1 %vm985_vm4, %v9368_v27  ;;  %v3992_v37 = vsel %vm12384_vm3, %v3987_v28, %v3991_v2  ;;  %v3997_v38 = vrot.slane %v3996_v30, 4  ;;  %v4004_v39 = vshrl.u32 %v9759_v9, 16  ;;  %v9763_v4 = vld [vmem:[%s16311_s0 + $0x10c] sm:$0xf] }
  0xa0   :  { %v4007_v40 = vshll.u32 %v9759_v9, 16  ;;  %v558_v42 = vor.u32 %v557_v32, %v554_v31  ;;  %v568_v43 = vor.u32 %v567_v34, %v563_v33  ;;  %v4013_v45 = vshll.u32 %v9760_v26, 16  ;;  %v59_v17 = vld [vmem:[%s16311_s0 + $0x108] sm:$0xf]  ;;  %v60_v30 = vld [vmem:[%s16311_s0 + $0x10c] sm:$0xf] }
  0xa1   :  { %v573_v44 = vrot.slane %v571_v35, 5  ;;  %v4002_v46 = vsel %vm12384_vm3, %v3997_v38, %v4001_v22  ;;  %v4006_v47 = vrot.slane %v4004_v39, 4  ;;  %v4017_v49 = vshrl.u32 %v9760_v26, 16  ;;  %v104_v38 = vld [vmem:[%s16311_s0 + $0x110] sm:$0x1] }
  0xa2   :  { %v4009_v48 = vrot.slane %v4007_v40, 5  ;;  %v9819_v50 = vcombine.low %v3992_v37, %v4002_v46  ;;  %v559_v51 = vrot.slane %v558_v42, 4  ;;  %v569_v52 = vrot.slane %v568_v43, 4  ;;  %v9765_v43 = vld [vmem:[%s16311_s0 + $0x114] sm:$0xf] }
  0xa3   :  { %v4015_v53 = vrot.slane %v4013_v45, 5  ;;  %v4019_v59 = vrot.slane %v4017_v49, 4  ;;  %v4023_v61 = vshll.u32 %v9761_v36, 16  ;;  %v576_v62 = vshrl.u32 %v57_v19, 16 }
  0xa4   :  { %v4010_v56 = vor.u32 %v4009_v48, %v4006_v47  ;;  %11097 = vmatmul.mubr.msk.bf16.gmra.mrb[32].mxu0 %vm985_vm4, %v9819_v50  ;;  %v564_v0 = vsel %vm12384_vm3, %v559_v51, %v563_v33  ;;  %v574_v1 = vsel %vm12384_vm3, %v569_v52, %v573_v44  ;;  %v579_v2 = vshll.u32 %v57_v19, 16  ;;  %v9766_v48 = vld [vmem:[%s16311_s0 + $0x118] sm:$0xf] }
  0xa5   :  { %v585_v3 = vshll.u32 %v58_v41, 16  ;;  %v9369_v5 = vcombine.low %v564_v0, %v574_v1  ;;  %v4020_v7 = vor.u32 %v4019_v59, %v4015_v53  ;;  %v4025_v8 = vrot.slane %v4023_v61, 5  ;;  %v9767_v61 = vld [vmem:[%s16311_s0 + $0x11c] sm:$0x1] }
  0xa6   :  { %v4011_v6 = vrot.slane %v4010_v56, 4  ;;  %v578_v9 = vrot.slane %v576_v62, 4  ;;  %v581_v10 = vrot.slane %v579_v2, 5  ;;  %v589_v12 = vshrl.u32 %v58_v41, 16  ;;  %v61_v2 = vld [vmem:[%s16311_s0 + $0x114] sm:$0xf] }
  0xa7   :  { %v587_v11 = vrot.slane %v585_v3, 5  ;;  %10836 = vmatprep.mubr.msk.bf16.mxu1 %vm985_vm4, %v9369_v5  ;;  %v4021_v20 = vrot.slane %v4020_v7, 4  ;;  %v595_v22 = vshll.u32 %v103_v54, 16  ;;  %v4028_v24 = vshrl.u32 %v9762_v63, 16 }
  0xa8   :  { %v4016_v18 = vsel %vm12384_vm3, %v4011_v6, %v4015_v53  ;;  %v582_v25 = vor.u32 %v581_v10, %v578_v9  ;;  %v591_v26 = vrot.slane %v589_v12, 4  ;;  %v4031_v27 = vshll.u32 %v9762_v63, 16 }
  0xa9   :  { %v4037_v28 = vshll.u32 %v9763_v4, 16  ;;  %v4026_v31 = vsel %vm12384_vm3, %v4021_v20, %v4025_v8  ;;  %v597_v32 = vrot.slane %v595_v22, 5  ;;  %v4030_v33 = vrot.slane %v4028_v24, 4 }
  0xaa   :  { %v4041_v34 = vshrl.u32 %v9763_v4, 16  ;;  %v9820_v35 = vcombine.low %v4016_v18, %v4026_v31  ;;  %v583_v36 = vrot.slane %v582_v25, 4  ;;  %v592_v19 = vor.u32 %v591_v26, %v587_v11  ;;  %v62_v18 = vld [vmem:[%s16311_s0 + $0x118] sm:$0xf]  ;;  %v105_v26 = vld [vmem:[%s16311_s0 + $0x11c] sm:$0x1] }
  0xab   :  { %v4033_v37 = vrot.slane %v4031_v27, 5  ;;  %v4039_v39 = vrot.slane %v4037_v28, 5  ;;  %v4047_v41 = vshll.u32 %v9764_v16, 16  ;;  %v600_v42 = vshrl.u32 %v59_v17, 16  ;;  %v9768_v27 = vld [vmem:[%s16311_s0 + $0x120] sm:$0xf] }
  0xac   :  { %v4043_v40 = vrot.slane %v4041_v34, 4  ;;  %11100 = vmatprep.mubr.msk.bf16.mxu0 %vm985_vm4, %v9820_v35  ;;  %v588_v44 = vsel %vm12384_vm3, %v583_v36, %v587_v11  ;;  %v593_v45 = vrot.slane %v592_v19, 4  ;;  %v603_v47 = vshll.u32 %v59_v17, 16 }
  0xad   :  { %v4034_v46 = vor.u32 %v4033_v37, %v4030_v33  ;;  %v4049_v50 = vrot.slane %v4047_v41, 5  ;;  %v602_v51 = vrot.slane %v600_v42, 4  ;;  %v609_v52 = vshll.u32 %v60_v30, 16  ;;  %v9769_v33 = vld [vmem:[%s16311_s0 + $0x124] sm:$0xf] }
  0xae   :  { %v4044_v49 = vor.u32 %v4043_v40, %v4039_v39  ;;  %v598_v53 = vsel %vm12384_vm3, %v593_v45, %v597_v32  ;;  %v605_v56 = vrot.slane %v603_v47, 5  ;;  %v613_v59 = vshrl.u32 %v60_v30, 16  ;;  %v9770_v45 = vld [vmem:[%s16311_s0 + $0x128] sm:$0x1] }
  0xaf   :  { %v4035_v54 = vrot.slane %v4034_v46, 4  ;;  %v9370_v62 = vcombine.low %v588_v44, %v598_v53  ;;  %v611_v0 = vrot.slane %v609_v52, 5  ;;  %v619_v1 = vshll.u32 %v104_v38, 16 }
  0xb0   :  { %v4045_v63 = vrot.slane %v4044_v49, 4  ;;  %v606_v4 = vor.u32 %v605_v56, %v602_v51  ;;  %v615_v5 = vrot.slane %v613_v59, 4  ;;  %v4052_v6 = vshrl.u32 %v9765_v43, 16 }
  0xb1   :  { %v4040_v3 = vsel %vm12384_vm3, %v4035_v54, %v4039_v39  ;;  %10837 = vmatmul.mubr.msk.bf16.gmra.mrb[36].mxu1 %vm985_vm4, %v9370_v62  ;;  %v621_v8 = vrot.slane %v619_v1, 5  ;;  %v4055_v9 = vshll.u32 %v9765_v43, 16  ;;  %v4061_v10 = vshll.u32 %v9766_v48, 16 }
  0xb2   :  { %v4050_v7 = vsel %vm12384_vm3, %v4045_v63, %v4049_v50  ;;  %v607_v12 = vrot.slane %v606_v4, 4  ;;  %v616_v16 = vor.u32 %v615_v5, %v611_v0  ;;  %v4054_v17 = vrot.slane %v4052_v6, 4  ;;  %v63_v50 = vld [vmem:[%s16311_s0 + $0x120] sm:$0xf]  ;;  %v64_v63 = vld [vmem:[%s16311_s0 + $0x124] sm:$0xf] }
  0xb3   :  { %v9821_v11 = vcombine.low %v4040_v3, %v4050_v7  ;;  %v4057_v20 = vrot.slane %v4055_v9, 5  ;;  %v4063_v22 = vrot.slane %v4061_v10, 5  ;;  %v4065_v24 = vshrl.u32 %v9766_v48, 16  ;;  %v106_v4 = vld [vmem:[%s16311_s0 + $0x128] sm:$0x1] }
  0xb4   :  { %v4071_v25 = vshll.u32 %v9767_v61, 16  ;;  %v612_v28 = vsel %vm12384_vm3, %v607_v12, %v611_v0  ;;  %v617_v30 = vrot.slane %v616_v16, 4  ;;  %v624_v31 = vshrl.u32 %v61_v2, 16  ;;  %v9771_v9 = vld [vmem:[%s16311_s0 + $0x12c] sm:$0xf] }
  0xb5   :  { %11101 = vmatmul.mubr.msk.bf16.gmra.mrb[36].mxu0 %vm985_vm4, %v9821_v11  ;;  %v627_v32 = vshll.u32 %v61_v2, 16  ;;  %v4058_v34 = vor.u32 %v4057_v20, %v4054_v17  ;;  %v4067_v35 = vrot.slane %v4065_v24, 4  ;;  %v633_v19 = vshll.u32 %v62_v18, 16  ;;  %v9772_v17 = vld [vmem:[%s16311_s0 + $0x130] sm:$0xf] }
  0xb6   :  { %v4073_v36 = vrot.slane %v4071_v25, 5  ;;  %v622_v37 = vsel %vm12384_vm3, %v617_v30, %v621_v8  ;;  %v626_v38 = vrot.slane %v624_v31, 4  ;;  %v637_v40 = vshrl.u32 %v62_v18, 16 }
  0xb7   :  { %v629_v39 = vrot.slane %v627_v32, 5  ;;  %v9371_v41 = vcombine.low %v612_v28, %v622_v37  ;;  %v4059_v42 = vrot.slane %v4058_v34, 4  ;;  %v4068_v43 = vor.u32 %v4067_v35, %v4063_v22  ;;  %v9773_v34 = vld [vmem:[%s16311_s0 + $0x134] sm:$0x1]  ;;  %v65_v35 = vld [vmem:[%s16311_s0 + $0x12c] sm:$0xf] }
  0xb8   :  { %v635_v44 = vrot.slane %v633_v19, 5  ;;  %v639_v47 = vrot.slane %v637_v40, 4  ;;  %v643_v48 = vshll.u32 %v105_v26, 16  ;;  %v4076_v49 = vshrl.u32 %v9768_v27, 16 }
  0xb9   :  { %v630_v46 = vor.u32 %v629_v39, %v626_v38  ;;  %10840 = vmatprep.mubr.msk.bf16.mxu1 %vm985_vm4, %v9371_v41  ;;  %v4064_v51 = vsel %vm12384_vm3, %v4059_v42, %v4063_v22  ;;  %v4069_v52 = vrot.slane %v4068_v43, 4  ;;  %v4079_v53 = vshll.u32 %v9768_v27, 16  ;;  %v66_v43 = vld [vmem:[%s16311_s0 + $0x130] sm:$0xf] }
  0xba   :  { %v4085_v54 = vshll.u32 %v9769_v33, 16  ;;  %v640_v59 = vor.u32 %v639_v47, %v635_v44  ;;  %v645_v61 = vrot.slane %v643_v48, 5  ;;  %v4078_v62 = vrot.slane %v4076_v49, 4 }
  0xbb   :  { %v631_v56 = vrot.slane %v630_v46, 4  ;;  %v4074_v0 = vsel %vm12384_vm3, %v4069_v52, %v4073_v36  ;;  %v4081_v1 = vrot.slane %v4079_v53, 5  ;;  %v4089_v3 = vshrl.u32 %v9769_v33, 16  ;;  %v107_v52 = vld [vmem:[%s16311_s0 + $0x134] sm:$0x1] }
  0xbc   :  { %v4087_v2 = vrot.slane %v4085_v54, 5  ;;  %v9822_v5 = vcombine.low %v4064_v51, %v4074_v0  ;;  %v641_v7 = vrot.slane %v640_v59, 4  ;;  %v4095_v8 = vshll.u32 %v9770_v45, 16  ;;  %v9774_v53 = vld [vmem:[%s16311_s0 + $0x138] sm:$0xf] }
  0xbd   :  { %v636_v6 = vsel %vm12384_vm3, %v631_v56, %v635_v44  ;;  %v4082_v10 = vor.u32 %v4081_v1, %v4078_v62  ;;  %v4091_v11 = vrot.slane %v4089_v3, 4  ;;  %v648_v12 = vshrl.u32 %v63_v50, 16  ;;  %v9775_v62 = vld [vmem:[%s16311_s0 + $0x13c] sm:$0xf] }
  0xbe   :  { %v651_v16 = vshll.u32 %v63_v50, 16  ;;  %11104 = vmatprep.mubr.msk.bf16.mxu0 %vm985_vm4, %v9822_v5  ;;  %v646_v18 = vsel %vm12384_vm3, %v641_v7, %v645_v61  ;;  %v4097_v20 = vrot.slane %v4095_v8, 5  ;;  %v657_v22 = vshll.u32 %v64_v63, 16 }
  0xbf   :  { %v661_v24 = vshrl.u32 %v64_v63, 16  ;;  %v9372_v25 = vcombine.low %v636_v6, %v646_v18  ;;  %v4083_v26 = vrot.slane %v4082_v10, 4  ;;  %v4092_v27 = vor.u32 %v4091_v11, %v4087_v2  ;;  %v9776_v11 = vld [vmem:[%s16311_s0 + $0x140] sm:$0x1] }
  0xc0   :  { %v650_v28 = vrot.slane %v648_v12, 4  ;;  %v653_v30 = vrot.slane %v651_v16, 5  ;;  %v659_v31 = vrot.slane %v657_v22, 5  ;;  %v667_v33 = vshll.u32 %v106_v4, 16  ;;  %v67_v12 = vld [vmem:[%s16311_s0 + $0x138] sm:$0xf] }
  0xc1   :  { %v663_v32 = vrot.slane %v661_v24, 4  ;;  %10841 = vmatmul.mubr.msk.bf16.gmra.mrb[40].mxu1 %vm985_vm4, %v9372_v25  ;;  %v4088_v36 = vsel %vm12384_vm3, %v4083_v26, %v4087_v2  ;;  %v4093_v19 = vrot.slane %v4092_v27, 4  ;;  %v4100_v37 = vshrl.u32 %v9771_v9, 16  ;;  %v68_v27 = vld [vmem:[%s16311_s0 + $0x13c] sm:$0xf] }
  0xc2   :  { %v4103_v38 = vshll.u32 %v9771_v9, 16  ;;  %v654_v39 = vor.u32 %v653_v30, %v650_v28  ;;  %v669_v41 = vrot.slane %v667_v33, 5  ;;  %v4109_v42 = vshll.u32 %v9772_v17, 16 }
  0xc3   :  { %v664_v40 = vor.u32 %v663_v32, %v659_v31  ;;  %v4098_v44 = vsel %vm12384_vm3, %v4093_v19, %v4097_v20  ;;  %v4102_v45 = vrot.slane %v4100_v37, 4  ;;  %v4113_v47 = vshrl.u32 %v9772_v17, 16  ;;  %v108_v19 = vld [vmem:[%s16311_s0 + $0x140] sm:$0x1] }
  0xc4   :  { %v4105_v46 = vrot.slane %v4103_v38, 5  ;;  %v9823_v48 = vcombine.low %v4088_v36, %v4098_v44  ;;  %v655_v49 = vrot.slane %v654_v39, 4  ;;  %v4111_v51 = vrot.slane %v4109_v42, 5 }
  0xc5   :  { %v665_v50 = vrot.slane %v664_v40, 4  ;;  %v4115_v56 = vrot.slane %v4113_v47, 4  ;;  %v4119_v59 = vshll.u32 %v9773_v34, 16  ;;  %v672_v61 = vshrl.u32 %v65_v35, 16 }
  0xc6   :  { %v4106_v54 = vor.u32 %v4105_v46, %v4102_v45  ;;  %11105 = vmatmul.mubr.msk.bf16.gmra.mrb[40].mxu0 %vm985_vm4, %v9823_v48  ;;  %v660_v63 = vsel %vm12384_vm3, %v655_v49, %v659_v31  ;;  %v675_v1 = vshll.u32 %v65_v35, 16  ;;  %v681_v2 = vshll.u32 %v66_v43, 16  ;;  %v9778_v46 = vld [vmem:[%s16311_s0 + $0x148] sm:$0xf] }
  0xc7   :  { %v670_v0 = vsel %vm12384_vm3, %v665_v50, %v669_v41  ;;  %v4116_v5 = vor.u32 %v4115_v56, %v4111_v51  ;;  %v4121_v6 = vrot.slane %v4119_v59, 5  ;;  %v674_v7 = vrot.slane %v672_v61, 4  ;;  %v9777_v41 = vld [vmem:[%s16311_s0 + $0x144] sm:$0xf]  ;;  %v9779_v56 = vld [vmem:[%s16311_s0 + $0x14c] sm:$0x1] }
  0xc8   :  { %v9373_v3 = vcombine.low %v660_v63, %v670_v0  ;;  %v4107_v4 = vrot.slane %v4106_v54, 4  ;;  %v677_v8 = vrot.slane %v675_v1, 5  ;;  %v683_v9 = vrot.slane %v681_v2, 5 }
  0xc9   :  { %v685_v10 = vshrl.u32 %v66_v43, 16  ;;  %v4117_v17 = vrot.slane %v4116_v5, 4  ;;  %v691_v18 = vshll.u32 %v107_v52, 16  ;;  %v4124_v20 = vshrl.u32 %v9774_v53, 16 }
  0xca   :  { %10844 = vmatprep.mubr.msk.bf16.mxu1 %vm985_vm4, %v9373_v3  ;;  %v4112_v16 = vsel %vm12384_vm3, %v4107_v4, %v4111_v51  ;;  %v678_v22 = vor.u32 %v677_v8, %v674_v7  ;;  %v4127_v25 = vshll.u32 %v9774_v53, 16  ;;  %v4133_v26 = vshll.u32 %v9775_v62, 16  ;;  %v69_v4 = vld [vmem:[%s16311_s0 + $0x144] sm:$0xf] }
  0xcb   :  { %v687_v24 = vrot.slane %v685_v10, 4  ;;  %v4122_v28 = vsel %vm12384_vm3, %v4117_v17, %v4121_v6  ;;  %v693_v30 = vrot.slane %v691_v18, 5  ;;  %v4126_v31 = vrot.slane %v4124_v20, 4 }
  0xcc   :  { %v4137_v32 = vshrl.u32 %v9775_v62, 16  ;;  %v9824_v33 = vcombine.low %v4112_v16, %v4122_v28  ;;  %v679_v34 = vrot.slane %v678_v22, 4  ;;  %v4129_v36 = vrot.slane %v4127_v25, 5  ;;  %v70_v16 = vld [vmem:[%s16311_s0 + $0x148] sm:$0xf] }
  0xcd   :  { %v688_v35 = vor.u32 %v687_v24, %v683_v9  ;;  %v4135_v37 = vrot.slane %v4133_v26, 5  ;;  %v4143_v39 = vshll.u32 %v9776_v11, 16  ;;  %v696_v40 = vshrl.u32 %v67_v12, 16  ;;  %v109_v24 = vld [vmem:[%s16311_s0 + $0x14c] sm:$0x1] }
  0xce   :  { %v4139_v38 = vrot.slane %v4137_v32, 4  ;;  %11108 = vmatprep.mubr.msk.bf16.mxu0 %vm985_vm4, %v9824_v33  ;;  %v684_v42 = vsel %vm12384_vm3, %v679_v34, %v683_v9  ;;  %v4130_v44 = vor.u32 %v4129_v36, %v4126_v31  ;;  %v699_v45 = vshll.u32 %v67_v12, 16  ;;  %v9780_v25 = vld [vmem:[%s16311_s0 + $0x150] sm:$0xf]  ;;  %v9781_v31 = vld [vmem:[%s16311_s0 + $0x154] sm:$0xf] }
  0xcf   :  { %v689_v43 = vrot.slane %v688_v35, 4  ;;  %v4145_v48 = vrot.slane %v4143_v39, 5  ;;  %v698_v49 = vrot.slane %v696_v40, 4  ;;  %v705_v50 = vshll.u32 %v68_v27, 16 }
  0xd0   :  { %v4140_v47 = vor.u32 %v4139_v38, %v4135_v37  ;;  %v4131_v52 = vrot.slane %v4130_v44, 4  ;;  %v701_v53 = vrot.slane %v699_v45, 5  ;;  %v709_v54 = vshrl.u32 %v68_v27, 16 }
  0xd1   :  { %v694_v51 = vsel %vm12384_vm3, %v689_v43, %v693_v30  ;;  %v707_v62 = vrot.slane %v705_v50, 5  ;;  %v715_v63 = vshll.u32 %v108_v19, 16  ;;  %v4148_v3 = vshrl.u32 %v9777_v41, 16  ;;  %v9782_v43 = vld [vmem:[%s16311_s0 + $0x158] sm:$0x1] }
  0xd2   :  { %v9374_v59 = vcombine.low %v684_v42, %v694_v51  ;;  %v4141_v61 = vrot.slane %v4140_v47, 4  ;;  %v4136_v0 = vsel %vm12384_vm3, %v4131_v52, %v4135_v37  ;;  %v702_v1 = vor.u32 %v701_v53, %v698_v49 }
  0xd3   :  { %v711_v2 = vrot.slane %v709_v54, 4  ;;  %v717_v6 = vrot.slane %v715_v63, 5  ;;  %v4151_v7 = vshll.u32 %v9777_v41, 16  ;;  %v4157_v8 = vshll.u32 %v9778_v46, 16 }
  0xd4   :  { %10845 = vmatmul.mubr.msk.bf16.gmra.mrb[44].mxu1 %vm985_vm4, %v9374_v59  ;;  %v4146_v5 = vsel %vm12384_vm3, %v4141_v61, %v4145_v48  ;;  %v703_v10 = vrot.slane %v702_v1, 4  ;;  %v4150_v12 = vrot.slane %v4148_v3, 4  ;;  %v4161_v20 = vshrl.u32 %v9778_v46, 16  ;;  %v71_v48 = vld [vmem:[%s16311_s0 + $0x150] sm:$0xf] }
  0xd5   :  { %v9825_v9 = vcombine.low %v4136_v0, %v4146_v5  ;;  %v712_v11 = vor.u32 %v711_v2, %v707_v62  ;;  %v4153_v17 = vrot.slane %v4151_v7, 5  ;;  %v4159_v18 = vrot.slane %v4157_v8, 5  ;;  %v72_v61 = vld [vmem:[%s16311_s0 + $0x154] sm:$0xf]  ;;  %v110_v2 = vld [vmem:[%s16311_s0 + $0x158] sm:$0x1] }
  0xd6   :  { %v4167_v22 = vshll.u32 %v9779_v56, 16  ;;  %v708_v26 = vsel %vm12384_vm3, %v703_v10, %v707_v62  ;;  %v720_v28 = vshrl.u32 %v69_v4, 16  ;;  %v723_v30 = vshll.u32 %v69_v4, 16  ;;  %v9783_v7 = vld [vmem:[%s16311_s0 + $0x15c] sm:$0xf] }
  0xd7   :  { %11109 = vmatmul.mubr.msk.bf16.gmra.mrb[44].mxu0 %vm985_vm4, %v9825_v9  ;;  %v713_v27 = vrot.slane %v712_v11, 4  ;;  %v4154_v32 = vor.u32 %v4153_v17, %v4150_v12  ;;  %v4163_v33 = vrot.slane %v4161_v20, 4  ;;  %v729_v35 = vshll.u32 %v70_v16, 16  ;;  %v9784_v12 = vld [vmem:[%s16311_s0 + $0x160] sm:$0xf] }
  0xd8   :  { %v4169_v34 = vrot.slane %v4167_v22, 5  ;;  %v722_v19 = vrot.slane %v720_v28, 4  ;;  %v725_v37 = vrot.slane %v723_v30, 5  ;;  %v733_v38 = vshrl.u32 %v70_v16, 16 }
  0xd9   :  { %v718_v36 = vsel %vm12384_vm3, %v713_v27, %v717_v6  ;;  %v4155_v40 = vrot.slane %v4154_v32, 4  ;;  %v4164_v41 = vor.u32 %v4163_v33, %v4159_v18  ;;  %v731_v42 = vrot.slane %v729_v35, 5  ;;  %v9785_v32 = vld [vmem:[%s16311_s0 + $0x164] sm:$0x1]  ;;  %v73_v33 = vld [vmem:[%s16311_s0 + $0x15c] sm:$0xf] }
  0xda   :  { %v9375_v39 = vcombine.low %v708_v26, %v718_v36  ;;  %v726_v44 = vor.u32 %v725_v37, %v722_v19  ;;  %v735_v45 = vrot.slane %v733_v38, 4  ;;  %v739_v46 = vshll.u32 %v109_v24, 16 }
  0xdb   :  { %v4172_v47 = vshrl.u32 %v9780_v25, 16  ;;  %v4160_v49 = vsel %vm12384_vm3, %v4155_v40, %v4159_v18  ;;  %v4165_v50 = vrot.slane %v4164_v41, 4  ;;  %v4175_v51 = vshll.u32 %v9780_v25, 16  ;;  %v74_v41 = vld [vmem:[%s16311_s0 + $0x160] sm:$0xf] }
  0xdc   :  { %10848 = vmatprep.mubr.msk.bf16.mxu1 %vm985_vm4, %v9375_v39  ;;  %v4181_v52 = vshll.u32 %v9781_v31, 16  ;;  %v727_v53 = vrot.slane %v726_v44, 4  ;;  %v736_v54 = vor.u32 %v735_v45, %v731_v42  ;;  %v741_v56 = vrot.slane %v739_v46, 5 }
  0xdd   :  { %v4174_v59 = vrot.slane %v4172_v47, 4  ;;  %v4170_v62 = vsel %vm12384_vm3, %v4165_v50, %v4169_v34  ;;  %v4177_v63 = vrot.slane %v4175_v51, 5  ;;  %v4185_v1 = vshrl.u32 %v9781_v31, 16  ;;  %v111_v50 = vld [vmem:[%s16311_s0 + $0x164] sm:$0x1] }
  0xde   :  { %v4183_v0 = vrot.slane %v4181_v52, 5  ;;  %v9826_v3 = vcombine.low %v4160_v49, %v4170_v62  ;;  %v732_v4 = vsel %vm12384_vm3, %v727_v53, %v731_v42  ;;  %v737_v5 = vrot.slane %v736_v54, 4  ;;  %v9786_v51 = vld [vmem:[%s16311_s0 + $0x168] sm:$0xf] }
  0xdf   :  { %v4191_v6 = vshll.u32 %v9782_v43, 16  ;;  %v4178_v8 = vor.u32 %v4177_v63, %v4174_v59  ;;  %v4187_v9 = vrot.slane %v4185_v1, 4  ;;  %v744_v10 = vshrl.u32 %v71_v48, 16  ;;  %v9787_v59 = vld [vmem:[%s16311_s0 + $0x16c] sm:$0xf] }
  0xe0   :  { %v747_v11 = vshll.u32 %v71_v48, 16  ;;  %11112 = vmatprep.mubr.msk.bf16.mxu0 %vm985_vm4, %v9826_v3  ;;  %v742_v16 = vsel %vm12384_vm3, %v737_v5, %v741_v56  ;;  %v753_v18 = vshll.u32 %v72_v61, 16  ;;  %v757_v20 = vshrl.u32 %v72_v61, 16 }
  0xe1   :  { %v4193_v17 = vrot.slane %v4191_v6, 5  ;;  %v9376_v22 = vcombine.low %v732_v4, %v742_v16  ;;  %v4179_v24 = vrot.slane %v4178_v8, 4  ;;  %v4188_v25 = vor.u32 %v4187_v9, %v4183_v0  ;;  %v9788_v9 = vld [vmem:[%s16311_s0 + $0x170] sm:$0x1] }
  0xe2   :  { %v746_v26 = vrot.slane %v744_v10, 4  ;;  %v749_v27 = vrot.slane %v747_v11, 5  ;;  %v755_v28 = vrot.slane %v753_v18, 5  ;;  %v759_v30 = vrot.slane %v757_v20, 4  ;;  %v75_v10 = vld [vmem:[%s16311_s0 + $0x168] sm:$0xf] }
  0xe3   :  { %v763_v31 = vshll.u32 %v110_v2, 16  ;;  %10849 = vmatmul.mubr.msk.bf16.gmra.mrb[48].mxu1 %vm985_vm4, %v9376_v22  ;;  %v4184_v34 = vsel %vm12384_vm3, %v4179_v24, %v4183_v0  ;;  %v4189_v35 = vrot.slane %v4188_v25, 4  ;;  %v4196_v36 = vshrl.u32 %v9783_v7, 16  ;;  %v76_v25 = vld [vmem:[%s16311_s0 + $0x16c] sm:$0xf] }
  0xe4   :  { %v4199_v19 = vshll.u32 %v9783_v7, 16  ;;  %v750_v37 = vor.u32 %v749_v27, %v746_v26  ;;  %v760_v38 = vor.u32 %v759_v30, %v755_v28  ;;  %v4205_v40 = vshll.u32 %v9784_v12, 16 }
  0xe5   :  { %v765_v39 = vrot.slane %v763_v31, 5  ;;  %v4194_v42 = vsel %vm12384_vm3, %v4189_v35, %v4193_v17  ;;  %v4198_v43 = vrot.slane %v4196_v36, 4  ;;  %v4209_v45 = vshrl.u32 %v9784_v12, 16  ;;  %v112_v35 = vld [vmem:[%s16311_s0 + $0x170] sm:$0x1] }
  0xe6   :  { %v4201_v44 = vrot.slane %v4199_v19, 5  ;;  %v9827_v46 = vcombine.low %v4184_v34, %v4194_v42  ;;  %v751_v47 = vrot.slane %v750_v37, 4  ;;  %v761_v48 = vrot.slane %v760_v38, 4 }
  0xe7   :  { %v4207_v49 = vrot.slane %v4205_v40, 5  ;;  %v4211_v53 = vrot.slane %v4209_v45, 4  ;;  %v4215_v54 = vshll.u32 %v9785_v32, 16  ;;  %v768_v56 = vshrl.u32 %v73_v33, 16 }
  0xe8   :  { %v4202_v52 = vor.u32 %v4201_v44, %v4198_v43  ;;  %11113 = vmatmul.mubr.msk.bf16.gmra.mrb[48].mxu0 %vm985_vm4, %v9827_v46  ;;  %v756_v61 = vsel %vm12384_vm3, %v751_v47, %v755_v28  ;;  %v766_v62 = vsel %vm12384_vm3, %v761_v48, %v765_v39  ;;  %v771_v63 = vshll.u32 %v73_v33, 16  ;;  %v9789_v39 = vld [vmem:[%s16311_s0 + $0x174] sm:$0xf]  ;;  %v9790_v44 = vld [vmem:[%s16311_s0 + $0x178] sm:$0xf] }
  0xe9   :  { %v777_v0 = vshll.u32 %v74_v41, 16  ;;  %v9377_v1 = vcombine.low %v756_v61, %v766_v62  ;;  %v4212_v3 = vor.u32 %v4211_v53, %v4207_v49  ;;  %v4217_v4 = vrot.slane %v4215_v54, 5  ;;  %v9791_v53 = vld [vmem:[%s16311_s0 + $0x17c] sm:$0x1]  ;;  %v77_v62 = vld [vmem:[%s16311_s0 + $0x174] sm:$0xf] }
  0xea   :  { %v4203_v2 = vrot.slane %v4202_v52, 4  ;;  %v770_v5 = vrot.slane %v768_v56, 4  ;;  %v773_v6 = vrot.slane %v771_v63, 5  ;;  %v781_v8 = vshrl.u32 %v74_v41, 16 }
  0xeb   :  { %v779_v7 = vrot.slane %v777_v0, 5  ;;  %10852 = vmatprep.mubr.msk.bf16.mxu1 %vm985_vm4, %v9377_v1  ;;  %v4213_v12 = vrot.slane %v4212_v3, 4  ;;  %v787_v16 = vshll.u32 %v111_v50, 16  ;;  %v4220_v17 = vshrl.u32 %v9786_v51, 16  ;;  %v78_v3 = vld [vmem:[%s16311_s0 + $0x178] sm:$0xf] }
  0xec   :  { %v4208_v11 = vsel %vm12384_vm3, %v4203_v2, %v4207_v49  ;;  %v774_v18 = vor.u32 %v773_v6, %v770_v5  ;;  %v783_v20 = vrot.slane %v781_v8, 4  ;;  %v4223_v22 = vshll.u32 %v9786_v51, 16 }
  0xed   :  { %v4229_v24 = vshll.u32 %v9787_v59, 16  ;;  %v4218_v26 = vsel %vm12384_vm3, %v4213_v12, %v4217_v4  ;;  %v789_v27 = vrot.slane %v787_v16, 5  ;;  %v4222_v28 = vrot.slane %v4220_v17, 4 }
  0xee   :  { %v4233_v30 = vshrl.u32 %v9787_v59, 16  ;;  %v9828_v31 = vcombine.low %v4208_v11, %v4218_v26  ;;  %v775_v32 = vrot.slane %v774_v18, 4  ;;  %v784_v33 = vor.u32 %v783_v20, %v779_v7  ;;  %v113_v20 = vld [vmem:[%s16311_s0 + $0x17c] sm:$0x1] }
  0xef   :  { %v4225_v34 = vrot.slane %v4223_v22, 5  ;;  %v4231_v36 = vrot.slane %v4229_v24, 5  ;;  %v4239_v37 = vshll.u32 %v9788_v9, 16  ;;  %v792_v38 = vshrl.u32 %v75_v10, 16  ;;  %v9792_v22 = vld [vmem:[%s16311_s0 + $0x180] sm:$0xf] }
  0xf0   :  { %v4235_v19 = vrot.slane %v4233_v30, 4  ;;  %11116 = vmatprep.mubr.msk.bf16.mxu0 %vm985_vm4, %v9828_v31  ;;  %v780_v40 = vsel %vm12384_vm3, %v775_v32, %v779_v7  ;;  %v785_v41 = vrot.slane %v784_v33, 4  ;;  %v795_v43 = vshll.u32 %v75_v10, 16 }
  0xf1   :  { %v4226_v42 = vor.u32 %v4225_v34, %v4222_v28  ;;  %v4241_v46 = vrot.slane %v4239_v37, 5  ;;  %v794_v47 = vrot.slane %v792_v38, 4  ;;  %v801_v48 = vshll.u32 %v76_v25, 16 }
  0xf2   :  { %v4236_v45 = vor.u32 %v4235_v19, %v4231_v36  ;;  %v790_v49 = vsel %vm12384_vm3, %v785_v41, %v789_v27  ;;  %v797_v51 = vrot.slane %v795_v43, 5  ;;  %v805_v52 = vshrl.u32 %v76_v25, 16  ;;  %v13213_v19 = vld [vmem:[%s16311_s0 + $0x184] sm:$0xf]  ;;  %v9794_v41 = vld [vmem:[%s16311_s0 + $0x188] sm:$0x1] }
  0xf3   :  { %v4227_v50 = vrot.slane %v4226_v42, 4  ;;  %v9378_v54 = vcombine.low %v780_v40, %v790_v49  ;;  %v803_v59 = vrot.slane %v801_v48, 5  ;;  %v811_v61 = vshll.u32 %v112_v35, 16 }
  0xf4   :  { %v4237_v56 = vrot.slane %v4236_v45, 4  ;;  %v798_v0 = vor.u32 %v797_v51, %v794_v47  ;;  %v807_v1 = vrot.slane %v805_v52, 4  ;;  %v4244_v2 = vshrl.u32 %v9789_v39, 16  ;;  %v80_v51 = vld [vmem:[%s16311_s0 + $0x184] sm:$0xf] }
  0xf5   :  { %v4232_v63 = vsel %vm12384_vm3, %v4227_v50, %v4231_v36  ;;  %10853 = vmatmul.mubr.msk.bf16.gmra.mrb[52].mxu1 %vm985_vm4, %v9378_v54  ;;  %v813_v5 = vrot.slane %v811_v61, 5  ;;  %v4247_v6 = vshll.u32 %v9789_v39, 16  ;;  %v4253_v7 = vshll.u32 %v9790_v44, 16 }
  0xf6   :  { %v4242_v4 = vsel %vm12384_vm3, %v4237_v56, %v4241_v46  ;;  %v799_v9 = vrot.slane %v798_v0, 4  ;;  %v808_v10 = vor.u32 %v807_v1, %v803_v59  ;;  %v4246_v11 = vrot.slane %v4244_v2, 4  ;;  %v79_v46 = vld [vmem:[%s16311_s0 + $0x180] sm:$0xf]  ;;  %v114_v0 = vld [vmem:[%s16311_s0 + $0x188] sm:$0x1] }
  0xf7   :  { %v9829_v8 = vcombine.low %v4232_v63, %v4242_v4  ;;  %v4249_v12 = vrot.slane %v4247_v6, 5  ;;  %v4255_v16 = vrot.slane %v4253_v7, 5  ;;  %v4257_v17 = vshrl.u32 %v9790_v44, 16 }
  0xf8   :  { %v4263_v18 = vshll.u32 %v9791_v53, 16  ;;  %v804_v24 = vsel %vm12384_vm3, %v799_v9, %v803_v59  ;;  %v809_v25 = vrot.slane %v808_v10, 4  ;;  %v816_v26 = vshrl.u32 %v77_v62, 16 }
  0xf9   :  { %11117 = vmatmul.mubr.msk.bf16.gmra.mrb[52].mxu0 %vm985_vm4, %v9829_v8  ;;  %v819_v27 = vshll.u32 %v77_v62, 16  ;;  %v4250_v28 = vor.u32 %v4249_v12, %v4246_v11  ;;  %v4259_v30 = vrot.slane %v4257_v17, 4  ;;  %v825_v32 = vshll.u32 %v78_v3, 16  ;;  %v13245_v17 = vld [vmem:[%s16311_s0 + $0x190] sm:$0xf] }
  0xfa   :  { %v4265_v31 = vrot.slane %v4263_v18, 5  ;;  %v814_v33 = vsel %vm12384_vm3, %v809_v25, %v813_v5  ;;  %v818_v34 = vrot.slane %v816_v26, 4  ;;  %v829_v36 = vshrl.u32 %v78_v3, 16  ;;  %v9795_v5 = vld [vmem:[%s16311_s0 + $0x18c] sm:$0xf] }
  0xfb   :  { %v821_v35 = vrot.slane %v819_v27, 5  ;;  %v9379_v37 = vcombine.low %v804_v24, %v814_v33  ;;  %v4251_v38 = vrot.slane %v4250_v28, 4  ;;  %v4260_v39 = vor.u32 %v4259_v30, %v4255_v16  ;;  %v13250_v30 = vld [vmem:[%s16311_s0 + $0x194] sm:$0x1] }
  0xfc   :  { %v827_v40 = vrot.slane %v825_v32, 5  ;;  %v831_v43 = vrot.slane %v829_v36, 4  ;;  %v835_v44 = vshll.u32 %v113_v20, 16  ;;  %v4268_v45 = vshrl.u32 %v9792_v22, 16  ;;  %v13263_v36 = vld [vmem:[%s16311_s0 + $0x190] sm:$0xf] }
  0xfd   :  { %v822_v42 = vor.u32 %v821_v35, %v818_v34  ;;  %10856 = vmatprep.mubr.msk.bf16.mxu1 %vm985_vm4, %v9379_v37  ;;  %v4256_v47 = vsel %vm12384_vm3, %v4251_v38, %v4255_v16  ;;  %v4261_v48 = vrot.slane %v4260_v39, 4  ;;  %v4271_v49 = vshll.u32 %v9792_v22, 16 }
  0xfe   :  { %v4277_v50 = vshll.u32 %v13213_v19, 16  ;;  %v832_v53 = vor.u32 %v831_v43, %v827_v40  ;;  %v837_v54 = vrot.slane %v835_v44, 5  ;;  %v4270_v56 = vrot.slane %v4268_v45, 4 }
  0xff   :  { %v823_v52 = vrot.slane %v822_v42, 4  ;;  %v4266_v59 = vsel %vm12384_vm3, %v4261_v48, %v4265_v31  ;;  %v4273_v61 = vrot.slane %v4271_v49, 5  ;;  %v4281_v63 = vshrl.u32 %v13213_v19, 16  ;;  %v13255_v31 = vld [vmem:[%s16311_s0 + $0x18c] sm:$0xf] }
 0x100   :  { %v4279_v62 = vrot.slane %v4277_v50, 5  ;;  %v9830_v1 = vcombine.low %v4256_v47, %v4266_v59  ;;  %v833_v3 = vrot.slane %v832_v53, 4  ;;  %v4287_v4 = vshll.u32 %v9794_v41, 16  ;;  %v115_v49 = vld [vmem:[%s16311_s0 + $0x194] sm:$0x1] }
 0x101   :  { %v828_v2 = vsel %vm12384_vm3, %v823_v52, %v827_v40  ;;  %v4274_v6 = vor.u32 %v4273_v61, %v4270_v56  ;;  %v4283_v7 = vrot.slane %v4281_v63, 4  ;;  %v840_v8 = vshrl.u32 %v79_v46, 16  ;;  %v9798_v50 = vld [vmem:[%s16311_s0 + $0x198] sm:$0xf]  ;;  %v13287_v63 = vld [vmem:[%s16311_s0 + $0x19c] sm:$0xf] }
 0x102   :  { %v843_v9 = vshll.u32 %v79_v46, 16  ;;  %11120 = vmatprep.mubr.msk.bf16.mxu0 %vm985_vm4, %v9830_v1  ;;  %v838_v10 = vsel %vm12384_vm3, %v833_v3, %v837_v54  ;;  %v4289_v11 = vrot.slane %v4287_v4, 5  ;;  %v849_v12 = vshll.u32 %v80_v51, 16 }
 0x103   :  { %v853_v16 = vshrl.u32 %v80_v51, 16  ;;  %v9380_v18 = vcombine.low %v828_v2, %v838_v10  ;;  %v4275_v20 = vrot.slane %v4274_v6, 4  ;;  %v4284_v22 = vor.u32 %v4283_v7, %v4279_v62 }
 0x104   :  { %v842_v24 = vrot.slane %v840_v8, 4  ;;  %v845_v25 = vrot.slane %v843_v9, 5  ;;  %v851_v26 = vrot.slane %v849_v12, 5  ;;  %v859_v28 = vshll.u32 %v114_v0, 16  ;;  %v13293_v8 = vld [vmem:[%s16311_s0 + $0x1a0] sm:$0x1] }
 0x105   :  { %v855_v27 = vrot.slane %v853_v16, 4  ;;  %10857 = vmatmul.mubr.msk.bf16.gmra.mrb[56].mxu1 %vm985_vm4, %v9380_v18  ;;  %v4280_v32 = vsel %vm12384_vm3, %v4275_v20, %v4279_v62  ;;  %v4285_v33 = vrot.slane %v4284_v22, 4  ;;  %v4292_v34 = vshrl.u32 %v9795_v5, 16 }
 0x106   :  { %v4295_v35 = vshll.u32 %v9795_v5, 16  ;;  %v846_v37 = vor.u32 %v845_v25, %v842_v24  ;;  %v861_v39 = vrot.slane %v859_v28, 5  ;;  %v4301_v40 = vshll.u32 %v13245_v17, 16  ;;  %v9866_v28 = vld [vmem:[%s16311_s0 + $0xc] sm:$0xe] }
 0x107   :  { %v856_v38 = vor.u32 %v855_v27, %v851_v26  ;;  %v4290_v41 = vsel %vm12384_vm3, %v4285_v33, %v4289_v11  ;;  %v4294_v42 = vrot.slane %v4292_v34, 4  ;;  %v4305_v44 = vshrl.u32 %v13245_v17, 16 }
 0x108   :  { %v4297_v43 = vrot.slane %v4295_v35, 5  ;;  %v9831_v45 = vcombine.low %v4280_v32, %v4290_v41  ;;  %v847_v46 = vrot.slane %v846_v37, 4  ;;  %v4303_v48 = vrot.slane %v4301_v40, 5  ;;  %v12096_v40 = vld [vmem:[%s16312_s1] sm:$0xf] }
 0x109   :  { %v857_v47 = vrot.slane %v856_v38, 4  ;;  %v4307_v52 = vrot.slane %v4305_v44, 4  ;;  %v4311_v53 = vshll.u32 %v13250_v30, 16  ;;  %v864_v54 = vshrl.u32 %v13255_v31, 16 }
 0x10a   :  { %v4298_v51 = vor.u32 %v4297_v43, %v4294_v42  ;;  %11121 = vmatmul.mubr.msk.bf16.gmra.mrb[56].mxu0 %vm985_vm4, %v9831_v45  ;;  %v852_v56 = vsel %vm12384_vm3, %v847_v46, %v851_v26  ;;  %v867_v61 = vshll.u32 %v13255_v31, 16  ;;  %v873_v62 = vshll.u32 %v13263_v36, 16  ;;  %v12097_v45 = vld [vmem:[%s16311_s0] sm:$0xf]  ;;  %v13319_v46 = vld [vmem:[%s16311_s0 + $0x4] sm:$0xf] }
 0x10b   :  { %v862_v59 = vsel %vm12384_vm3, %v857_v47, %v861_v39  ;;  %v4308_v2 = vor.u32 %v4307_v52, %v4303_v48  ;;  %v4313_v3 = vrot.slane %v4311_v53, 5  ;;  %v866_v4 = vrot.slane %v864_v54, 4 }
 0x10c   :  { %v9381_v0 = vcombine.low %v852_v56, %v862_v59  ;;  %v4299_v1 = vrot.slane %v4298_v51, 4  ;;  %v869_v5 = vrot.slane %v867_v61, 5  ;;  %v875_v6 = vrot.slane %v873_v62, 5  ;;  %v9868_v59 = vld [vmem:[%s16311_s0 + $0x24] sm:$0xe] }
 0x10d   :  { %v877_v7 = vshrl.u32 %v13263_v36, 16  ;;  %v4309_v10 = vrot.slane %v4308_v2, 4  ;;  %v883_v11 = vshll.u32 %v115_v49, 16  ;;  %v4316_v12 = vshrl.u32 %v9798_v50, 16 }
 0x10e   :  { %10860 = vmatprep.mubr.msk.bf16.mxu1 %vm985_vm4, %v9381_v0  ;;  %v4304_v9 = vsel %vm12384_vm3, %v4299_v1, %v4303_v48  ;;  %v870_v16 = vor.u32 %v869_v5, %v866_v4  ;;  %v4319_v20 = vshll.u32 %v9798_v50, 16  ;;  %v4325_v22 = vshll.u32 %v13287_v63, 16  ;;  %v9867_v48 = vld [vmem:[%s16311_s0 + $0x18] sm:$0xe] }
 0x10f   :  { %v879_v18 = vrot.slane %v877_v7, 4  ;;  %v4314_v24 = vsel %vm12384_vm3, %v4309_v10, %v4313_v3  ;;  %v885_v25 = vrot.slane %v883_v11, 5  ;;  %v4318_v26 = vrot.slane %v4316_v12, 4  ;;  %v9869_v12 = vld [vmem:[%s16311_s0 + $0x30] sm:$0xe] }
 0x110   :  { %v4329_v27 = vshrl.u32 %v13287_v63, 16  ;;  %v9832_v32 = vcombine.low %v4304_v9, %v4314_v24  ;;  %v871_v33 = vrot.slane %v870_v16, 4  ;;  %v4321_v35 = vrot.slane %v4319_v20, 5  ;;  %v13378_v9 = vld [vmem:[%s16311_s0 + $0x10] sm:$0xf] }
 0x111   :  { %v880_v34 = vor.u32 %v879_v18, %v875_v6  ;;  %v4327_v37 = vrot.slane %v4325_v22, 5  ;;  %v4335_v39 = vshll.u32 %v13293_v8, 16  ;;  %v1632_v41 = vsel %vm1082_vm0, %v12096_v40, 0  ;;  %v12103_v16 = vld [vmem:[%s16311_s0 + $0x34] sm:$0xf] }
 0x112   :  { %v4331_v38 = vrot.slane %v4329_v27, 4  ;;  %11124 = vmatprep.mubr.msk.bf16.mxu0 %vm985_vm4, %v9832_v32  ;;  %v876_v42 = vsel %vm12384_vm3, %v871_v33, %v875_v6  ;;  %v4322_v44 = vor.u32 %v4321_v35, %v4318_v26  ;;  %10865 = vmatpush3.bf16.msra.mxu1 %v1632_v41  ;;  %v9415_v47 = vcombine.low %v12097_v45, %v13319_v46  ;;  %v12100_v6 = vld [vmem:[%s16311_s0 + $0x2c] sm:$0x1]  ;;  %v12104_v20 = vld [vmem:[%s16311_s0 + $0x18] sm:$0xf] }
 0x113   :  { %v881_v43 = vrot.slane %v880_v34, 4  ;;  %v4337_v50 = vrot.slane %v4335_v39, 5  ;;  %vm2019_vm5 = vcmask 1042432   ;;  %vm2020_vm6 = vcmask 1046532   ;;  %11966 = vmatprep.subr.msk.bf16.mxu1 %vm1082_vm0, %v13369_v55  ;;  %v13395_v22 = vld [vmem:[%s16311_s0 + $0x1c] sm:$0xf] }
 0x114   :  { %v4332_v49 = vor.u32 %v4331_v38, %v4327_v37  ;;  %v4323_v52 = vrot.slane %v4322_v44, 4  ;;  %vm13327_vm7 = vmor %vm2019_vm5, %vm2020_vm6  ;;  %v9898_v54 = vrot.slane %v9866_v28, 9  ;;  %v5021_v56 = vrot.slane %v5019_v57, 4  ;;  %v12106_v26 = vld [vmem:[%s16311_s0 + $0x40] sm:$0xf] }
 0x115   :  { %v886_v51 = vsel %vm12384_vm3, %v881_v43, %v885_v25  ;;  %v9899_v0 = vrot.slane %v9867_v48, 9  ;;  %v5030_v4 = vsel %vm13327_vm7, %v12434_v23, %v5029_v21  ;;  %v9900_v60 = vrot.slane %v9868_v59, 9  ;;  %v12099_v21 = vld [vmem:[%s16311_s0 + $0x28] sm:$0xf]  ;;  %v9870_v32 = vld [vmem:[%s16311_s0 + $0x3c] sm:$0xe] }
 0x116   :  { %v9382_v61 = vcombine.low %v876_v42, %v886_v51  ;;  %v4333_v62 = vrot.slane %v4332_v49, 4  ;;  %v4328_v1 = vsel %vm12384_vm3, %v4323_v52, %v4327_v37  ;;  %v5020_v2 = vsel %vm13327_vm7, %v9898_v54, %v5019_v57  ;;  %v12107_v37 = vld [vmem:[%s16311_s0 + $0x38] sm:$0x1]  ;;  %v12109_v43 = vld [vmem:[%s16311_s0 + $0x44] sm:$0x1] }
 0x117   :  { %v5023_v3 = vsel %vm13327_vm7, %v5021_v56, %v5022_v58  ;;  %v5027_v14 = vsel %vm13327_vm7, %v9899_v0, %v5026_v15  ;;  %v5033_v23 = vrot.slane %v12099_v21, 5  ;;  %v5036_v7 = vrot.slane %v12100_v6, 5  ;;  %v12101_v15 = vld [vmem:[%s16311_s0 + $0xc] sm:$0xf]  ;;  %v12108_v39 = vld [vmem:[%s16312_s1 + $0x18] sm:$0xf] }
 0x118   :  { %10861 = vmatmul.mubr.msk.bf16.gmra.mrb[60].mxu1 %vm985_vm4, %v9382_v61  ;;  %v4338_v5 = vsel %vm12384_vm3, %v4333_v62, %v4337_v50  ;;  %v9931_v13 = vcombine.low %v5020_v2, %v5023_v3  ;;  %v9932_v58 = vcombine.low %v5027_v14, %v5030_v4  ;;  %v9416_v10 = vcombine.low %v12101_v15, %v13378_v9  ;;  %v13423_v45 = vld [vmem:[%s16312_s1 + $0x1c] sm:$0xf]  ;;  %v13433_v48 = vld [vmem:[%s16311_s0 + $0x28] sm:$0xf]  ;;  %v12112_v54 = vld [vmem:[%s16311_s0 + $0x4c] sm:$0xf] }
 0x119   :  { %v9833_v57 = vcombine.low %v4328_v1, %v4338_v5  ;;  %10866 = vmatprep.mubr.msk.bf16.mxu1 %vm985_vm4, %v9415_v47  ;;  %v5035_v11 = vrot.slane %v5033_v23, 4  ;;  %v5040_v18 = vrot.slane %v12103_v16, 5  ;;  %v9417_v24 = vcombine.low %v12104_v20, %v13395_v22  ;;  %v12110_v47 = vld [vmem:[%s16311_s0 + $0x24] sm:$0xf]  ;;  %v9871_v52 = vld [vmem:[%s16311_s0 + $0x48] sm:$0xe] }
 0x11a   :  { %v5034_v25 = vsel %vm13327_vm7, %v9900_v60, %v5033_v23  ;;  %v5047_v27 = vrot.slane %v12106_v26, 5  ;;  %v9901_v33 = vrot.slane %v9869_v12, 9  ;;  %v5043_v38 = vrot.slane %v12107_v37, 5  ;;  %v12113_v59 = vld [vmem:[%s16311_s0 + $0x30] sm:$0xf] }
 0x11b   :  { %11125 = vmatmul.mubr.msk.bf16.gmra.mrb[60].mxu0 %vm985_vm4, %v9833_v57  ;;  %v5037_v28 = vsel %vm13327_vm7, %v5035_v11, %v5036_v7  ;;  %v5042_v35 = vrot.slane %v5040_v18, 4  ;;  %v6115_v40 = vsel %vm1082_vm0, %v12108_v39, 0  ;;  %v9902_v41 = vrot.slane %v9870_v32, 9  ;;  %v13452_v61 = vld [vmem:[%s16311_s0 + $0x34] sm:$0xf] }
 0x11c   :  { %11130 = vmatprep.mubr.msk.bf16.mxu0 %vm985_vm4, %v9931_v13  ;;  %v9933_v34 = vcombine.low %v5034_v25, %v5037_v28  ;;  %v5049_v42 = vrot.slane %v5047_v27, 4  ;;  %v5050_v44 = vrot.slane %v12109_v43, 5  ;;  %v9418_v49 = vcombine.low %v12110_v47, %v13433_v48  ;;  %v9872_v2 = vld [vmem:[%s16311_s0 + $0x54] sm:$0xe]  ;;  %v12115_v3 = vld [vmem:[%s16311_s0 + $0x58] sm:$0xf] }
 0x11d   :  { %v5041_v50 = vsel %vm13327_vm7, %v9901_v33, %v5040_v18  ;;  %v5044_v51 = vsel %vm13327_vm7, %v5042_v35, %v5043_v38  ;;  %v5054_v56 = vrot.slane %v12112_v54, 5  ;;  %v9419_v62 = vcombine.low %v12113_v59, %v13452_v61  ;;  %v12117_v6 = vld [vmem:[%s16311_s0 + $0x5c] sm:$0x1]  ;;  %v9873_v18 = vld [vmem:[%s16311_s0 + $0x60] sm:$0xe] }
 0x11e   :  { %v5048_v0 = vsel %vm13327_vm7, %v9902_v41, %v5047_v27  ;;  %v5051_v1 = vsel %vm13327_vm7, %v5049_v42, %v5050_v44  ;;  %v5061_v4 = vrot.slane %v12115_v3, 5  ;;  %v9934_v5 = vcombine.low %v5041_v50, %v5044_v51  ;;  %v12118_v15 = vld [vmem:[%s16311_s0 + $0x3c] sm:$0xf]  ;;  %v12120_v20 = vld [vmem:[%s16311_s0 + $0x64] sm:$0xf] }
 0x11f   :  { %v9903_v13 = vrot.slane %v9871_v52, 9  ;;  %v9935_v14 = vcombine.low %v5048_v0, %v5051_v1  ;;  %v5056_v57 = vrot.slane %v5054_v56, 4  ;;  %v9904_v21 = vrot.slane %v9872_v2, 9  ;;  %v12121_v25 = vld [vmem:[%s16311_s0 + $0x48] sm:$0xf] }
 0x120   :  { %10867 = vmatmul.mubr.msk.bf16.vlgmr.msra.gmra.mrb[0].mxu1 %vm985_vm4, %v9416_v10  ;;  %v5063_v23 = vrot.slane %v5061_v4, 4  ;;  %v5064_v7 = vrot.slane %v12117_v6, 5  ;;  %v13483_v10 = vld [vmem:[%s16311_s0 + $0x40] sm:$0xf]  ;;  %v13502_v26 = vld [vmem:[%s16311_s0 + $0x4c] sm:$0xf] }
 0x121   :  { %10870 = vmatprep.mubr.msk.bf16.mxu1 %vm985_vm4, %v9417_v24  ;;  %v9420_v11 = vcombine.low %v12118_v15, %v13483_v10  ;;  %v5055_v12 = vsel %vm13327_vm7, %v9903_v13, %v5054_v56  ;;  %v5068_v24 = vrot.slane %v12120_v20, 5  ;;  %v9421_v27 = vcombine.low %v12121_v25, %v13502_v26  ;;  %v12123_v33 = vld [vmem:[%s16311_s0 + $0x70] sm:$0xf]  ;;  %v9874_v35 = vld [vmem:[%s16311_s0 + $0x6c] sm:$0xe] }
 0x122   :  { %v5062_v28 = vsel %vm13327_vm7, %v9904_v21, %v5061_v4  ;;  %v5065_v32 = vsel %vm13327_vm7, %v5063_v23, %v5064_v7  ;;  %v9905_v39 = vrot.slane %v9873_v18, 9  ;;  %v12124_v41 = vld [vmem:[%s16311_s0 + $0x68] sm:$0x1]  ;;  %v9906_v43 = vrot.slane %v9874_v35, 9  ;;  %v12125_v47 = vld [vmem:[%s16311_s0 + $0x74] sm:$0x1] }
 0x123   :  { %11131 = vmatmul.mubr.msk.bf16.vlgmr.msra.gmra.mrb[0].mxu0 %vm985_vm4, %v9932_v58  ;;  %v12116_v58 = vld [vmem:[%s16311_s0 + $0x50] sm:$0x1]  ;;  %v9937_v38 = vcombine.low %v5062_v28, %v5065_v32  ;;  %v5071_v42 = vrot.slane %v12124_v41, 5 }
 0x124   :  { %11195 = vmatpush3.bf16.msra.mxu0 %v6115_v40  ;;  %11134 = vmatprep.mubr.msk.bf16.mxu0 %vm985_vm4, %v9933_v34  ;;  %v5057_v60 = vrot.slane %v12116_v58, 5  ;;  %v5075_v34 = vrot.slane %v12123_v33, 5  ;;  %v5070_v40 = vrot.slane %v5068_v24, 4 }
 0x125   :  { %11971 = vmatprep.subr.msk.bf16.mxu0 %vm1082_vm0, %v13423_v45 }
 0x126   :  { %v5058_v16 = vsel %vm13327_vm7, %v5056_v57, %v5057_v60  ;;  %v5077_v44 = vrot.slane %v5075_v34, 4 }
 0x127   :  { %v9936_v37 = vcombine.low %v5055_v12, %v5058_v16 }
 0x128   :  { %10871 = vmatmul.mubr.msk.bf16.gmra.mrb[4].mxu1 %vm985_vm4, %v9418_v49  ;;  %v5078_v49 = vrot.slane %v12125_v47, 5 }
 0x129   :  { %10874 = vmatprep.mubr.msk.bf16.mxu1 %vm985_vm4, %v9419_v62 }
 0x12b   :  { %11135 = vmatmul.mubr.msk.bf16.gmra.mrb[4].mxu0 %vm985_vm4, %v9934_v5 }
 0x12c   :  { %11138 = vmatprep.mubr.msk.bf16.mxu0 %vm985_vm4, %v9935_v14 }
 0x130   :  { %10875 = vmatmul.mubr.msk.bf16.gmra.mrb[8].mxu1 %vm985_vm4, %v9420_v11 }
 0x131   :  { %10878 = vmatprep.mubr.msk.bf16.mxu1 %vm985_vm4, %v9421_v27 }
 0x132   :  { %9 = vsyncpa [#allocation3], 0  ;;  %v12126_v50 = vld [vmem:[%s16311_s0 + $0x54] sm:$0xf]  ;;  %v13531_v51 = vld [vmem:[%s16311_s0 + $0x58] sm:$0xf]  ;;  %v5069_v54 = vsel %vm13327_vm7, %v9905_v39, %v5068_v24  ;;  %v5072_v56 = vsel %vm13327_vm7, %v5070_v40, %v5071_v42  ;;  %v5076_v3 = vsel %vm13327_vm7, %v9906_v43, %v5075_v34  ;;  %v5079_v4 = vsel %vm13327_vm7, %v5077_v44, %v5078_v49 }
 0x133   :  { %11139 = vmatmul.mubr.msk.bf16.gmra.mrb[8].mxu0 %vm985_vm4, %v9936_v37  ;;  %v9422_v52 = vcombine.low %v12126_v50, %v13531_v51  ;;  %v12128_v59 = vld [vmem:[%s16311_s0 + $0x7c] sm:$0xf]  ;;  %v12129_v0 = vld [vmem:[%s16311_s0 + $0x60] sm:$0xf]  ;;  %v13547_v1 = vld [vmem:[%s16311_s0 + $0x64] sm:$0xf]  ;;  %v9938_v58 = vcombine.low %v5069_v54, %v5072_v56  ;;  %v9939_v60 = vcombine.low %v5076_v3, %v5079_v4 }
 0x134   :  { %11142 = vmatprep.mubr.msk.bf16.mxu0 %vm985_vm4, %v9937_v38  ;;  %v5082_v62 = vrot.slane %v12128_v59, 5  ;;  %v9423_v2 = vcombine.low %v12129_v0, %v13547_v1  ;;  %v9875_v5 = vld [vmem:[%s16311_s0 + $0x78] sm:$0xe]  ;;  %v12131_v13 = vld [vmem:[%s16311_s0 + $0x88] sm:$0xf]  ;;  %vm12310_vm8 = vmmov 0  }
 0x135   :  { %v5089_v14 = vrot.slane %v12131_v13, 5  ;;  %v9876_v57 = vld [vmem:[%s16311_s0 + $0x84] sm:$0xe]  ;;  %v9907_v21 = vrot.slane %v9875_v5, 9  ;;  %v12132_v6 = vld [vmem:[%s16311_s0 + $0x80] sm:$0x1] }
 0x136   :  { %v5084_v23 = vrot.slane %v5082_v62, 4  ;;  %v5085_v7 = vrot.slane %v12132_v6, 5  ;;  %v9908_v15 = vrot.slane %v9876_v57, 9  ;;  %v12133_v12 = vld [vmem:[%s16311_s0 + $0x8c] sm:$0x1]  ;;  %vm9020_vm9 = vcmask 1041409  }
 0x137   :  { %v5091_v11 = vrot.slane %v5089_v14, 4  ;;  %v5092_v16 = vrot.slane %v12133_v12, 5  ;;  %v12134_v18 = vld [vmem:[%s16311_s0 + $0x6c] sm:$0xf]  ;;  %v13579_v20 = vld [vmem:[%s16311_s0 + $0x70] sm:$0xf]  ;;  %v5083_v25 = vsel %vm13327_vm7, %v9907_v21, %v5082_v62 }
 0x138   :  { %10879 = vmatmul.mubr.msk.bf16.gmra.mrb[12].mxu1 %vm985_vm4, %v9422_v52  ;;  %v9424_v24 = vcombine.low %v12134_v18, %v13579_v20  ;;  %v5086_v27 = vsel %vm13327_vm7, %v5084_v23, %v5085_v7  ;;  %v12136_v28 = vld [vmem:[%s16311_s0 + $0x94] sm:$0xf]  ;;  %v12137_v33 = vld [vmem:[%s16311_s0 + $0x78] sm:$0xf]  ;;  %v13595_v34 = vld [vmem:[%s16311_s0 + $0x7c] sm:$0xf]  ;;  %v5090_v37 = vsel %vm13327_vm7, %v9908_v15, %v5089_v14 }
 0x139   :  { %10882 = vmatprep.mubr.msk.bf16.mxu1 %vm985_vm4, %v9423_v2  ;;  %v5096_v32 = vrot.slane %v12136_v28, 5  ;;  %v9425_v35 = vcombine.low %v12137_v33, %v13595_v34  ;;  %v5093_v38 = vsel %vm13327_vm7, %v5091_v11, %v5092_v16  ;;  %v9877_v39 = vld [vmem:[%s16311_s0 + $0x90] sm:$0xe]  ;;  %v12139_v40 = vld [vmem:[%s16311_s0 + $0xa0] sm:$0xf]  ;;  %v9940_v43 = vcombine.low %v5083_v25, %v5086_v27 }
 0x13a   :  { %v5103_v41 = vrot.slane %v12139_v40, 5  ;;  %v9878_v42 = vld [vmem:[%s16311_s0 + $0x9c] sm:$0xe]  ;;  %v9941_v44 = vcombine.low %v5090_v37, %v5093_v38  ;;  %v9909_v47 = vrot.slane %v9877_v39, 9  ;;  %v12140_v50 = vld [vmem:[%s16311_s0 + $0x98] sm:$0x1] }
 0x13b   :  { %11143 = vmatmul.mubr.msk.bf16.gmra.mrb[12].mxu0 %vm985_vm4, %v9938_v58  ;;  %v5098_v49 = vrot.slane %v5096_v32, 4  ;;  %v5099_v52 = vrot.slane %v12140_v50, 5  ;;  %v9910_v54 = vrot.slane %v9878_v42, 9  ;;  %v12141_v59 = vld [vmem:[%s16311_s0 + $0xa4] sm:$0x1] }
 0x13c   :  { %11146 = vmatprep.mubr.msk.bf16.mxu0 %vm985_vm4, %v9939_v60  ;;  %v5105_v56 = vrot.slane %v5103_v41, 4  ;;  %v5106_v62 = vrot.slane %v12141_v59, 5  ;;  %v12142_v0 = vld [vmem:[%s16311_s0 + $0x84] sm:$0xf]  ;;  %v13627_v2 = vld [vmem:[%s16311_s0 + $0x88] sm:$0xf]  ;;  %v5097_v4 = vsel %vm13327_vm7, %v9909_v47, %v5096_v32 }
 0x13d   :  { %v9426_v3 = vcombine.low %v12142_v0, %v13627_v2  ;;  %v5100_v5 = vsel %vm13327_vm7, %v5098_v49, %v5099_v52  ;;  %v12144_v13 = vld [vmem:[%s16311_s0 + $0xac] sm:$0xf]  ;;  %v12145_v57 = vld [vmem:[%s16311_s0 + $0x90] sm:$0xf]  ;;  %v13643_v58 = vld [vmem:[%s16311_s0 + $0x94] sm:$0xf]  ;;  %v5104_v21 = vsel %vm13327_vm7, %v9910_v54, %v5103_v41 }
 0x13e   :  { %v5110_v14 = vrot.slane %v12144_v13, 5  ;;  %v9427_v60 = vcombine.low %v12145_v57, %v13643_v58  ;;  %v5107_v23 = vsel %vm13327_vm7, %v5105_v56, %v5106_v62  ;;  %v9879_v6 = vld [vmem:[%s16311_s0 + $0xa8] sm:$0xe]  ;;  %v12147_v7 = vld [vmem:[%s16311_s0 + $0xb8] sm:$0xf]  ;;  %v9942_v12 = vcombine.low %v5097_v4, %v5100_v5 }
 0x13f   :  { %v5117_v15 = vrot.slane %v12147_v7, 5  ;;  %v9880_v11 = vld [vmem:[%s16311_s0 + $0xb4] sm:$0xe]  ;;  %v9943_v16 = vcombine.low %v5104_v21, %v5107_v23  ;;  %v9911_v18 = vrot.slane %v9879_v6, 9  ;;  %v12148_v25 = vld [vmem:[%s16311_s0 + $0xb0] sm:$0x1] }
 0x140   :  { %10883 = vmatmul.mubr.msk.bf16.gmra.mrb[16].mxu1 %vm985_vm4, %v9424_v24  ;;  %v5112_v24 = vrot.slane %v5110_v14, 4  ;;  %v5113_v27 = vrot.slane %v12148_v25, 5  ;;  %v9912_v28 = vrot.slane %v9880_v11, 9  ;;  %v12149_v33 = vld [vmem:[%s16311_s0 + $0xbc] sm:$0x1] }
 0x141   :  { %10886 = vmatprep.mubr.msk.bf16.mxu1 %vm985_vm4, %v9425_v35  ;;  %v5119_v32 = vrot.slane %v5117_v15, 4  ;;  %v5120_v35 = vrot.slane %v12149_v33, 5  ;;  %v12150_v37 = vld [vmem:[%s16311_s0 + $0x9c] sm:$0xf]  ;;  %v13675_v38 = vld [vmem:[%s16311_s0 + $0xa0] sm:$0xf]  ;;  %v5111_v40 = vsel %vm13327_vm7, %v9911_v18, %v5110_v14 }
 0x142   :  { %v9428_v39 = vcombine.low %v12150_v37, %v13675_v38  ;;  %v5114_v41 = vsel %vm13327_vm7, %v5112_v24, %v5113_v27  ;;  %v12152_v42 = vld [vmem:[%s16311_s0 + $0xc4] sm:$0xf]  ;;  %v13691_v47 = vld [vmem:[%s16311_s0 + $0xac] sm:$0xf]  ;;  %v5118_v50 = vsel %vm13327_vm7, %v9912_v28, %v5117_v15  ;;  %v9881_v54 = vld [vmem:[%s16311_s0 + $0xc0] sm:$0xe] }
 0x143   :  { %11147 = vmatmul.mubr.msk.bf16.gmra.mrb[16].mxu0 %vm985_vm4, %v9940_v43  ;;  %v5124_v43 = vrot.slane %v12152_v42, 5  ;;  %v5121_v52 = vsel %vm13327_vm7, %v5119_v32, %v5120_v35  ;;  %v12155_v56 = vld [vmem:[%s16311_s0 + $0xe8] sm:$0xf]  ;;  %v9882_v62 = vld [vmem:[%s16311_s0 + $0xe4] sm:$0xe]  ;;  %v9944_v0 = vcombine.low %v5111_v40, %v5114_v41  ;;  %v9913_v4 = vrot.slane %v9881_v54, 9 }
 0x144   :  { %11150 = vmatprep.mubr.msk.bf16.mxu0 %vm985_vm4, %v9941_v44  ;;  %v12153_v44 = vld [vmem:[%s16311_s0 + $0xa8] sm:$0xf]  ;;  %v5131_v59 = vrot.slane %v12155_v56, 5  ;;  %v9914_v57 = vrot.slane %v9882_v62, 9  ;;  %v12157_v21 = vld [vmem:[%s16311_s0 + $0xec] sm:$0x1] }
 0x145   :  { %v9429_v49 = vcombine.low %v12153_v44, %v13691_v47  ;;  %v5126_v5 = vrot.slane %v5124_v43, 4  ;;  %v12156_v13 = vld [vmem:[%s16311_s0 + $0xc8] sm:$0x1]  ;;  %v5134_v23 = vrot.slane %v12157_v21, 5  ;;  %v12158_v6 = vld [vmem:[%s16311_s0 + $0xb4] sm:$0xf]  ;;  %v5125_v11 = vsel %vm13327_vm7, %v9913_v4, %v5124_v43 }
 0x146   :  { %v5127_v14 = vrot.slane %v12156_v13, 5  ;;  %v13722_v7 = vld [vmem:[%s16311_s0 + $0xb8] sm:$0xf]  ;;  %v2441_v24 = vsel %vm1082_vm0, %v13369_v55, 0  ;;  %v13741_v27 = vld [vmem:[%s16311_s0 + $0xdc] sm:$0xf]  ;;  %v5132_v32 = vsel %vm13327_vm7, %v9914_v57, %v5131_v59 }
 0x147   :  { %v9430_v15 = vcombine.low %v12158_v6, %v13722_v7  ;;  %v12161_v25 = vld [vmem:[%s16311_s0 + $0xd8] sm:$0xf]  ;;  %v9883_v55 = vld [vmem:[%s16311_s0 + $0xf0] sm:$0xe]  ;;  %v12163_v35 = vld [vmem:[%s16311_s0 + $0x100] sm:$0xf]  ;;  %10931 = vmatpush3.bf16.msra.mxu1 %v2441_v24 }
 0x148   :  { %10887 = vmatmul.mubr.msk.bf16.gmra.mrb[20].mxu1 %vm985_vm4, %v9426_v3  ;;  %v9945_v3 = vcombine.low %v5118_v50, %v5121_v52  ;;  %v9431_v28 = vcombine.low %v12161_v25, %v13741_v27  ;;  %v5145_v37 = vrot.slane %v12163_v35, 5  ;;  %v9915_v42 = vrot.slane %v9883_v55, 9  ;;  %v12164_v44 = vld [vmem:[%s16311_s0 + $0xf8] sm:$0x1]  ;;  %v12165_v54 = vld [vmem:[%s16311_s0 + $0x104] sm:$0x1] }
 0x149   :  { %10890 = vmatprep.mubr.msk.bf16.mxu1 %vm985_vm4, %v9427_v60  ;;  %v5133_v60 = vrot.slane %v5131_v59, 4  ;;  %v5148_v56 = vrot.slane %v12165_v54, 5  ;;  %v12166_v59 = vld [vmem:[%s16311_s0 + $0xe4] sm:$0xf]  ;;  %v13773_v62 = vld [vmem:[%s16311_s0 + $0xe8] sm:$0xf] }
 0x14a   :  { %v5147_v52 = vrot.slane %v5145_v37, 4  ;;  %v13789_v57 = vld [vmem:[%s16311_s0 + $0xf4] sm:$0xf]  ;;  %v9885_v6 = vld [vmem:[%s16311_s0 + $0x108] sm:$0xe] }
 0x14b   :  { %11151 = vmatmul.mubr.msk.bf16.gmra.mrb[20].mxu0 %vm985_vm4, %v9942_v12  ;;  %v5128_v12 = vsel %vm13327_vm7, %v5126_v5, %v5127_v14  ;;  %v5135_v33 = vsel %vm13327_vm7, %v5133_v60, %v5134_v23  ;;  %v12168_v5 = vld [vmem:[%s16311_s0 + $0x10c] sm:$0xf]  ;;  %v12169_v14 = vld [vmem:[%s16311_s0 + $0xf0] sm:$0xf]  ;;  %v9917_v24 = vrot.slane %v9885_v6, 9 }
 0x14c   :  { %11154 = vmatprep.mubr.msk.bf16.mxu0 %vm985_vm4, %v9943_v16  ;;  %v12160_v16 = vld [vmem:[%s16311_s0 + $0xf4] sm:$0xf]  ;;  %v9946_v40 = vcombine.low %v5125_v11, %v5128_v12  ;;  %v9947_v41 = vcombine.low %v5132_v32, %v5135_v33  ;;  %v5152_v13 = vrot.slane %v12168_v5, 5  ;;  %v9433_v60 = vcombine.low %v12169_v14, %v13789_v57  ;;  %v12173_v35 = vld [vmem:[%s16311_s0 + $0x11c] sm:$0x1] }
 0x14d   :  { %v5138_v18 = vrot.slane %v12160_v16, 5  ;;  %v5149_v23 = vsel %vm13327_vm7, %v5147_v52, %v5148_v56  ;;  %v9886_v12 = vld [vmem:[%s16311_s0 + $0x114] sm:$0xe]  ;;  %v13837_v52 = vld [vmem:[%s16311_s0 + $0x10c] sm:$0xf] }
 0x14e   :  { %v5154_v25 = vrot.slane %v5152_v13, 4  ;;  %v9918_v33 = vrot.slane %v9886_v12, 9  ;;  %v9888_v5 = vld [vmem:[%s16311_s0 + $0x12c] sm:$0xe]  ;;  %v12181_v12 = vld [vmem:[%s16311_s0 + $0x134] sm:$0x1] }
 0x14f   :  { %v5140_v43 = vrot.slane %v5138_v18, 4  ;;  %v12251_v29 = vld [vmem:[%s16311_s0 + $0x34] sm:$0xf] }
 0x150   :  { %10891 = vmatmul.mubr.msk.bf16.gmra.mrb[24].mxu1 %vm985_vm4, %v9428_v39  ;;  %v9884_v39 = vld [vmem:[%s16311_s0 + $0xfc] sm:$0xe] }
 0x151   :  { %10894 = vmatprep.mubr.msk.bf16.mxu1 %vm985_vm4, %v9429_v49  ;;  %v5141_v49 = vrot.slane %v12164_v44, 5  ;;  %v9916_v50 = vrot.slane %v9884_v39, 9  ;;  %v12174_v39 = vld [vmem:[%s16311_s0 + $0xfc] sm:$0xf]  ;;  %v12176_v44 = vld [vmem:[%s16311_s0 + $0x124] sm:$0xf] }
 0x153   :  { %11155 = vmatmul.mubr.msk.bf16.gmra.mrb[24].mxu0 %vm985_vm4, %v9944_v0  ;;  %v9432_v0 = vcombine.low %v12166_v59, %v13773_v62  ;;  %v5142_v4 = vsel %vm13327_vm7, %v5140_v43, %v5141_v49  ;;  %v5146_v21 = vsel %vm13327_vm7, %v9916_v50, %v5145_v37  ;;  %v5162_v37 = vrot.slane %v12173_v35, 5  ;;  %v12177_v50 = vld [vmem:[%s16311_s0 + $0x108] sm:$0xf]  ;;  %v12185_v35 = vld [vmem:[%s16311_s0 + $0x120] sm:$0xf] }
 0x154   :  { %11158 = vmatprep.mubr.msk.bf16.mxu0 %vm985_vm4, %v9945_v3  ;;  %v5139_v3 = vsel %vm13327_vm7, %v9915_v42, %v5138_v18  ;;  %v9949_v18 = vcombine.low %v5146_v21, %v5149_v23  ;;  %v5153_v42 = vsel %vm13327_vm7, %v9917_v24, %v5152_v13  ;;  %v5166_v49 = vrot.slane %v12176_v44, 5  ;;  %v12180_v23 = vld [vmem:[%s16311_s0 + $0x128] sm:$0x1]  ;;  %v13869_v24 = vld [vmem:[%s16311_s0 + $0x118] sm:$0xf] }
 0x155   :  { %v9948_v16 = vcombine.low %v5139_v3, %v5142_v4  ;;  %v9435_v54 = vcombine.low %v12177_v50, %v13837_v52  ;;  %v12179_v3 = vld [vmem:[%s16311_s0 + $0x130] sm:$0xf]  ;;  %v5169_v6 = vrot.slane %v12180_v23, 5  ;;  %v12187_v44 = vld [vmem:[%s16311_s0 + $0x148] sm:$0xf] }
 0x156   :  { %v5173_v4 = vrot.slane %v12179_v3, 5  ;;  %v5168_v21 = vrot.slane %v5166_v49, 4  ;;  %v9890_v50 = vld [vmem:[%s16311_s0 + $0x144] sm:$0xe]  ;;  %v12188_v3 = vld [vmem:[%s16311_s0 + $0x140] sm:$0x1] }
 0x157   :  { %v13917_v23 = vld [vmem:[%s16311_s0 + $0x130] sm:$0xf] }
 0x158   :  { %10895 = vmatmul.mubr.msk.bf16.gmra.mrb[28].mxu1 %vm985_vm4, %v9430_v15  ;;  %v12171_v15 = vld [vmem:[%s16311_s0 + $0x118] sm:$0xf] }
 0x159   :  { %10898 = vmatprep.mubr.msk.bf16.mxu1 %vm985_vm4, %v9431_v28  ;;  %v5159_v11 = vrot.slane %v12171_v15, 5  ;;  %v12172_v28 = vld [vmem:[%s16311_s0 + $0x110] sm:$0x1]  ;;  %v9920_v15 = vrot.slane %v9888_v5, 9  ;;  %v9922_v5 = vrot.slane %v9890_v50, 9 }
 0x15a   :  { %v5155_v32 = vrot.slane %v12172_v28, 5  ;;  %v12196_v50 = vld [vmem:[%s16311_s0 + $0x158] sm:$0x1] }
 0x15b   :  { %11159 = vmatmul.mubr.msk.bf16.gmra.mrb[28].mxu0 %vm985_vm4, %v9946_v40  ;;  %v5161_v55 = vrot.slane %v5159_v11, 4  ;;  %v13821_v40 = vld [vmem:[%s16311_s0 + $0x100] sm:$0xf]  ;;  %v5160_v56 = vsel %vm13327_vm7, %v9918_v33, %v5159_v11  ;;  %v5175_v11 = vrot.slane %v5173_v4, 4  ;;  %v12184_v33 = vld [vmem:[%s16311_s0 + $0x13c] sm:$0xf] }
 0x15c   :  { %11162 = vmatprep.mubr.msk.bf16.mxu0 %vm985_vm4, %v9947_v41  ;;  %v9434_v41 = vcombine.low %v12174_v39, %v13821_v40  ;;  %v5156_v43 = vsel %vm13327_vm7, %v5154_v25, %v5155_v32  ;;  %v5170_v32 = vsel %vm13327_vm7, %v5168_v21, %v5169_v6  ;;  %v12190_v21 = vld [vmem:[%s16311_s0 + $0x12c] sm:$0xf] }
 0x15d   :  { %v5163_v59 = vsel %vm13327_vm7, %v5161_v55, %v5162_v37  ;;  %v9950_v13 = vcombine.low %v5153_v42, %v5156_v43  ;;  %v5180_v55 = vrot.slane %v12184_v33, 5  ;;  %v13885_v37 = vld [vmem:[%s16311_s0 + $0x124] sm:$0xf]  ;;  %v9889_v43 = vld [vmem:[%s16311_s0 + $0x138] sm:$0xe]  ;;  %v9438_v6 = vcombine.low %v12190_v21, %v13917_v23 }
 0x15e   :  { %v9951_v14 = vcombine.low %v5160_v56, %v5163_v59  ;;  %v9437_v39 = vcombine.low %v12185_v35, %v13885_v37  ;;  %v9921_v59 = vrot.slane %v9889_v43, 9  ;;  %v12195_v35 = vld [vmem:[%s16311_s0 + $0x160] sm:$0xf]  ;;  %v12200_v21 = vld [vmem:[%s16311_s0 + $0x16c] sm:$0xf] }
 0x160   :  { %10899 = vmatmul.mubr.msk.bf16.gmra.mrb[32].mxu1 %vm985_vm4, %v9432_v0  ;;  %v9887_v0 = vld [vmem:[%s16311_s0 + $0x120] sm:$0xe] }
 0x161   :  { %10902 = vmatprep.mubr.msk.bf16.mxu1 %vm985_vm4, %v9433_v60  ;;  %v9919_v60 = vrot.slane %v9887_v0, 9  ;;  %v5182_v0 = vrot.slane %v5180_v55, 4 }
 0x163   :  { %11163 = vmatmul.mubr.msk.bf16.gmra.mrb[32].mxu0 %vm985_vm4, %v9948_v16  ;;  %v5176_v16 = vrot.slane %v12181_v12, 5  ;;  %v5167_v28 = vsel %vm13327_vm7, %v9919_v60, %v5166_v49  ;;  %v5187_v49 = vrot.slane %v12187_v44, 5  ;;  %v12192_v12 = vld [vmem:[%s16311_s0 + $0x154] sm:$0xf] }
 0x164   :  { %11166 = vmatprep.mubr.msk.bf16.mxu0 %vm985_vm4, %v9949_v18  ;;  %v12182_v18 = vld [vmem:[%s16311_s0 + $0x114] sm:$0xf] }
 0x165   :  { %v9436_v25 = vcombine.low %v12182_v18, %v13869_v24  ;;  %v5177_v42 = vsel %vm13327_vm7, %v5175_v11, %v5176_v16  ;;  %v5194_v16 = vrot.slane %v12192_v12, 5  ;;  %v12193_v18 = vld [vmem:[%s16311_s0 + $0x138] sm:$0xf] }
 0x168   :  { %10903 = vmatmul.mubr.msk.bf16.gmra.mrb[36].mxu1 %vm985_vm4, %v9434_v41  ;;  %v5174_v41 = vsel %vm13327_vm7, %v9920_v15, %v5173_v4  ;;  %v5183_v4 = vrot.slane %v12188_v3, 5  ;;  %v5181_v15 = vsel %vm13327_vm7, %v9921_v59, %v5180_v55  ;;  %v9891_v55 = vld [vmem:[%s16311_s0 + $0x150] sm:$0xe] }
 0x169   :  { %10906 = vmatprep.mubr.msk.bf16.mxu1 %vm985_vm4, %v9435_v54  ;;  %v9952_v54 = vcombine.low %v5167_v28, %v5170_v32  ;;  %v9953_v56 = vcombine.low %v5174_v41, %v5177_v42  ;;  %v5188_v32 = vsel %vm13327_vm7, %v9922_v5, %v5187_v49  ;;  %v9892_v41 = vld [vmem:[%s16311_s0 + $0x15c] sm:$0xe]  ;;  %v9923_v44 = vrot.slane %v9891_v55, 9  ;;  %v13965_v5 = vld [vmem:[%s16311_s0 + $0x148] sm:$0xf] }
 0x16a   :  { %v5184_v11 = vsel %vm13327_vm7, %v5182_v0, %v5183_v4  ;;  %v12197_v0 = vld [vmem:[%s16311_s0 + $0x164] sm:$0x1]  ;;  %v9894_v55 = vld [vmem:[%s16311_s0 + $0x174] sm:$0xe] }
 0x16b   :  { %11167 = vmatmul.mubr.msk.bf16.gmra.mrb[36].mxu0 %vm985_vm4, %v9950_v13  ;;  %v5189_v13 = vrot.slane %v5187_v49, 4  ;;  %v9954_v42 = vcombine.low %v5181_v15, %v5184_v11  ;;  %v5196_v49 = vrot.slane %v5194_v16, 4  ;;  %v5204_v3 = vrot.slane %v12197_v0, 5  ;;  %v12198_v4 = vld [vmem:[%s16311_s0 + $0x144] sm:$0xf] }
 0x16c   :  { %11170 = vmatprep.mubr.msk.bf16.mxu0 %vm985_vm4, %v9951_v14  ;;  %v12189_v14 = vld [vmem:[%s16311_s0 + $0x14c] sm:$0x1]  ;;  %v12201_v15 = vld [vmem:[%s16311_s0 + $0x150] sm:$0xf]  ;;  %v13981_v11 = vld [vmem:[%s16311_s0 + $0x154] sm:$0xf] }
 0x16d   :  { %v5190_v60 = vrot.slane %v12189_v14, 5  ;;  %v5195_v14 = vsel %vm13327_vm7, %v9923_v44, %v5194_v16  ;;  %v9441_v12 = vcombine.low %v12201_v15, %v13981_v11  ;;  %v14013_v0 = vld [vmem:[%s16311_s0 + $0x160] sm:$0xf] }
 0x16f   :  { %v5191_v33 = vsel %vm13327_vm7, %v5189_v13, %v5190_v60  ;;  %v9440_v13 = vcombine.low %v12198_v4, %v13965_v5 }
 0x170   :  { %10907 = vmatmul.mubr.msk.bf16.gmra.mrb[40].mxu1 %vm985_vm4, %v9436_v25  ;;  %v13933_v25 = vld [vmem:[%s16311_s0 + $0x13c] sm:$0xf]  ;;  %v9955_v43 = vcombine.low %v5188_v32, %v5191_v33  ;;  %v12203_v32 = vld [vmem:[%s16311_s0 + $0x178] sm:$0xf] }
 0x171   :  { %10910 = vmatprep.mubr.msk.bf16.mxu1 %vm985_vm4, %v9437_v39  ;;  %v9439_v28 = vcombine.low %v12193_v18, %v13933_v25  ;;  %v5201_v39 = vrot.slane %v12195_v35, 5  ;;  %v5215_v33 = vrot.slane %v12203_v32, 5 }
 0x173   :  { %11171 = vmatmul.mubr.msk.bf16.gmra.mrb[40].mxu0 %vm985_vm4, %v9952_v54  ;;  %v5197_v54 = vrot.slane %v12196_v50, 5  ;;  %v5203_v59 = vrot.slane %v5201_v39, 4  ;;  %v5217_v50 = vrot.slane %v5215_v33, 4 }
 0x174   :  { %11174 = vmatprep.mubr.msk.bf16.mxu0 %vm985_vm4, %v9953_v56  ;;  %v9924_v56 = vrot.slane %v9892_v41, 9 }
 0x175   :  { %v5198_v60 = vsel %vm13327_vm7, %v5196_v49, %v5197_v54  ;;  %v5205_v18 = vsel %vm13327_vm7, %v5203_v59, %v5204_v3  ;;  %v9926_v49 = vrot.slane %v9894_v55, 9  ;;  %v12205_v54 = vld [vmem:[%s16311_s0 + $0x17c] sm:$0x1] }
 0x176   :  { %v5202_v16 = vsel %vm13327_vm7, %v9924_v56, %v5201_v39  ;;  %v9956_v35 = vcombine.low %v5195_v14, %v5198_v60  ;;  %v5218_v56 = vrot.slane %v12205_v54, 5  ;;  %v12206_v59 = vld [vmem:[%s16311_s0 + $0x15c] sm:$0xf]  ;;  %v5222_v14 = vrot.slane %v13213_v19, 5  ;;  %v12208_v60 = vld [vmem:[%s16311_s0 + $0x168] sm:$0xf] }
 0x177   :  { %v9957_v39 = vcombine.low %v5202_v16, %v5205_v18  ;;  %v9442_v3 = vcombine.low %v12206_v59, %v14013_v0  ;;  %v9895_v19 = vld [vmem:[%s16311_s0 + $0x180] sm:$0xe]  ;;  %v5229_v16 = vrot.slane %v13245_v17, 5  ;;  %v9896_v18 = vld [vmem:[%s16311_s0 + $0x18c] sm:$0xe]  ;;  %v5232_v17 = vrot.slane %v13250_v30, 5 }
 0x178   :  { %10911 = vmatmul.mubr.msk.bf16.gmra.mrb[44].mxu1 %vm985_vm4, %v9438_v6  ;;  %v5208_v6 = vrot.slane %v12200_v21, 5  ;;  %v14027_v21 = vld [vmem:[%s16311_s0 + $0x16c] sm:$0xf]  ;;  %v9927_v55 = vrot.slane %v9895_v19, 9  ;;  %v12213_v59 = vld [vmem:[%s16311_s0 + $0x180] sm:$0xf] }
 0x179   :  { %10914 = vmatprep.mubr.msk.bf16.mxu1 %vm985_vm4, %v9439_v28  ;;  %v9893_v28 = vld [vmem:[%s16311_s0 + $0x168] sm:$0xe]  ;;  %v9443_v15 = vcombine.low %v12208_v60, %v14027_v21  ;;  %v12215_v60 = vld [vmem:[%s16311_s0 + $0x8] sm:$0x1] }
 0x17a   :  { %v9925_v41 = vrot.slane %v9893_v28, 9 }
 0x17b   :  { %11175 = vmatmul.mubr.msk.bf16.gmra.mrb[44].mxu0 %vm985_vm4, %v9954_v42  ;;  %v5210_v42 = vrot.slane %v5208_v6, 4 }
 0x17c   :  { %11178 = vmatprep.mubr.msk.bf16.mxu0 %vm985_vm4, %v9955_v43  ;;  %v12204_v43 = vld [vmem:[%s16311_s0 + $0x170] sm:$0x1]  ;;  %v5209_v4 = vsel %vm13327_vm7, %v9925_v41, %v5208_v6  ;;  %v5219_v6 = vsel %vm13327_vm7, %v5217_v50, %v5218_v56  ;;  %v9928_v41 = vrot.slane %v9896_v18, 9  ;;  %v14059_v50 = vld [vmem:[%s16311_s0 + $0x178] sm:$0xf]  ;;  %v5236_v56 = vrot.slane %v13287_v63, 5 }
 0x17d   :  { %v5211_v44 = vrot.slane %v12204_v43, 5  ;;  %v2024_v43 = vrot.slane %v13319_v46, 5  ;;  %v5223_v46 = vsel %vm13327_vm7, %v9927_v55, %v5222_v14  ;;  %v9897_v63 = vld [vmem:[%s16311_s0 + $0x198] sm:$0xe]  ;;  %v2031_v55 = vrot.slane %v13378_v9, 5 }
 0x17e   :  { %v9446_v9 = vcombine.low %v13255_v31, %v13263_v36  ;;  %v12217_v31 = vld [vmem:[%s16311_s0 + $0x20] sm:$0x1] }
 0x17f   :  { %v2041_v36 = vrot.slane %v12217_v31, 5 }
 0x180   :  { %10915 = vmatmul.mubr.msk.bf16.gmra.mrb[48].mxu1 %vm985_vm4, %v9440_v13  ;;  %v5212_v13 = vsel %vm13327_vm7, %v5210_v42, %v5211_v44  ;;  %v5231_v42 = vrot.slane %v5229_v16, 4  ;;  %v1923_v44 = vld [vmem:[%s16311_s0] sm:$0xe] }
 0x181   :  { %10918 = vmatprep.mubr.msk.bf16.mxu1 %vm985_vm4, %v9441_v12  ;;  %v5216_v12 = vsel %vm13327_vm7, %v9926_v49, %v5215_v33  ;;  %v9958_v28 = vcombine.low %v5209_v4, %v5212_v13  ;;  %v12210_v33 = vld [vmem:[%s16311_s0 + $0x188] sm:$0x1]  ;;  %v12211_v49 = vld [vmem:[%s16311_s0 + $0x174] sm:$0xf]  ;;  %v5230_v13 = vsel %vm13327_vm7, %v9928_v41, %v5229_v16  ;;  %v5238_v16 = vrot.slane %v5236_v56, 4 }
 0x182   :  { %v9959_v32 = vcombine.low %v5216_v12, %v5219_v6  ;;  %v9444_v30 = vcombine.low %v12211_v49, %v14059_v50  ;;  %v9479_v12 = vrot.slane %v1923_v44, 9  ;;  %v2026_v6 = vrot.slane %v2024_v43, 4 }
 0x183   :  { %11179 = vmatmul.mubr.msk.bf16.gmra.mrb[48].mxu0 %vm985_vm4, %v9956_v35  ;;  %v5224_v35 = vrot.slane %v5222_v14, 4  ;;  %v5233_v14 = vsel %vm13327_vm7, %v5231_v42, %v5232_v17  ;;  %v2038_v41 = vrot.slane %v13395_v22, 5  ;;  %v12216_v22 = vld [vmem:[%s16311_s0 + $0x14] sm:$0x1] }
 0x184   :  { %11182 = vmatprep.mubr.msk.bf16.mxu0 %vm985_vm4, %v9957_v39  ;;  %v5225_v39 = vrot.slane %v12210_v33, 5  ;;  %v9961_v18 = vcombine.low %v5230_v13, %v5233_v14  ;;  %v2045_v14 = vrot.slane %v13433_v48, 5  ;;  %v9640_v48 = vld [vmem:[%s16312_s1 + $0xc] sm:$0xf] }
 0x185   :  { %11967 = vmatprep.subr.msk.bf16.mxu1 %vm1082_vm0, %v9640_v48 }
 0x186   :  { %v5226_v54 = vsel %vm13327_vm7, %v5224_v35, %v5225_v39  ;;  %v2025_v35 = vsel %vm13327_vm7, %v9479_v12, %v2024_v43  ;;  %v1924_v39 = vld [vmem:[%s16311_s0 + $0xc] sm:$0xe]  ;;  %v2034_v43 = vrot.slane %v12216_v22, 5  ;;  %v2052_v12 = vrot.slane %v13452_v61, 5  ;;  %v12218_v61 = vld [vmem:[%s16311_s0 + $0x2c] sm:$0x1] }
 0x187   :  { %v9960_v19 = vcombine.low %v5223_v46, %v5226_v54  ;;  %v9480_v49 = vrot.slane %v1924_v39, 9  ;;  %v2040_v54 = vrot.slane %v2038_v41, 4 }
 0x188   :  { %10919 = vmatmul.mubr.msk.bf16.gmra.mrb[52].mxu1 %vm985_vm4, %v9442_v3  ;;  %v14073_v3 = vld [vmem:[%s16311_s0 + $0x184] sm:$0xf] }
 0x189   :  { %10922 = vmatprep.mubr.msk.bf16.mxu1 %vm985_vm4, %v9443_v15  ;;  %v9445_v4 = vcombine.low %v12213_v59, %v14073_v3  ;;  %v2027_v15 = vrot.slane %v12215_v60, 5  ;;  %v2042_v60 = vsel %vm13327_vm7, %v2040_v54, %v2041_v36 }
 0x18b   :  { %11183 = vmatmul.mubr.msk.bf16.gmra.mrb[52].mxu0 %vm985_vm4, %v9958_v28  ;;  %v9929_v28 = vrot.slane %v9897_v63, 9  ;;  %v2028_v33 = vsel %vm13327_vm7, %v2026_v6, %v2027_v15  ;;  %v1926_v15 = vld [vmem:[%s16311_s0 + $0x24] sm:$0xe]  ;;  %v1927_v6 = vld [vmem:[%s16311_s0 + $0x30] sm:$0xe] }
 0x18c   :  { %11186 = vmatprep.mubr.msk.bf16.mxu0 %vm985_vm4, %v9959_v32  ;;  %v5239_v32 = vrot.slane %v13293_v8, 5  ;;  %v1925_v8 = vld [vmem:[%s16311_s0 + $0x18] sm:$0xe]  ;;  %v9512_v44 = vcombine.low %v2025_v35, %v2028_v33  ;;  %v2054_v35 = vrot.slane %v2052_v12, 4  ;;  %v12219_v33 = vld [vmem:[%s16311_s0 + $0x38] sm:$0x1] }
 0x18d   :  { %v5237_v42 = vsel %vm13327_vm7, %v9929_v28, %v5236_v56  ;;  %v9481_v46 = vrot.slane %v1925_v8, 9  ;;  %v12008_v56 = vld [vmem:[%s16311_s0 + $0x18] sm:$0xff]   ;;  %v9482_v28 = vrot.slane %v1926_v15, 9  ;;  %v2055_v39 = vrot.slane %v12219_v33, 5  ;;  %v12009_v8 = vld [vmem:[%s16311_s0 + $0x24] sm:$0xff]  }
 0x18e   :  { %v5240_v17 = vsel %vm13327_vm7, %v5238_v16, %v5239_v32  ;;  %v2047_v16 = vrot.slane %v2045_v14, 4  ;;  %v2048_v32 = vrot.slane %v12218_v61, 5  ;;  %v12012_v15 = vld [vmem:[%s16311_s0 + $0x48] sm:$0xff]   ;;  %v1931_v61 = vld [vmem:[%s16311_s0 + $0x60] sm:$0xe] }
 0x18f   :  { %v9962_v59 = vcombine.low %v5237_v42, %v5240_v17  ;;  %v2039_v63 = vsel %vm13327_vm7, %v9481_v46, %v2038_v41  ;;  %v3120_v41 = vsel %vm1082_vm0, %v9640_v48, 0  ;;  %v7529_v42 = vsel %vm1082_vm0, %v13423_v45, 0  ;;  %v1928_v45 = vld [vmem:[%s16311_s0 + $0x3c] sm:$0xe]  ;;  %v14175_v46 = vld [vmem:[%s16312_s1 + $0x20] sm:$0xf] }
 0x190   :  { %10923 = vmatmul.mubr.msk.bf16.gmra.mrb[56].mxu1 %vm985_vm4, %v9444_v30  ;;  %v2033_v30 = vrot.slane %v2031_v55, 4  ;;  %v2046_v17 = vsel %vm13327_vm7, %v9482_v28, %v2045_v14  ;;  %v2049_v22 = vsel %vm13327_vm7, %v2047_v16, %v2048_v32  ;;  %v9484_v36 = vrot.slane %v1928_v45, 9  ;;  %v12221_v14 = vld [vmem:[%s16311_s0 + $0x50] sm:$0x1]  ;;  %v1930_v28 = vld [vmem:[%s16311_s0 + $0x54] sm:$0xe] }
 0x191   :  { %10926 = vmatprep.mubr.msk.bf16.mxu1 %vm985_vm4, %v9445_v4  ;;  %v2032_v4 = vsel %vm13327_vm7, %v9480_v49, %v2031_v55  ;;  %v9483_v55 = vrot.slane %v1927_v6, 9  ;;  %v2056_v49 = vsel %vm13327_vm7, %v2054_v35, %v2055_v39  ;;  %v9515_v54 = vcombine.low %v2046_v17, %v2049_v22  ;;  %v12222_v33 = vld [vmem:[%s16311_s0 + $0x5c] sm:$0x1]  ;;  %v12014_v17 = vld [vmem:[%s16311_s0 + $0x60] sm:$0xff]  }
 0x192   :  { %v2035_v13 = vsel %vm13327_vm7, %v2033_v30, %v2034_v43  ;;  %v2059_v43 = vrot.slane %v13483_v10, 5  ;;  %v2066_v30 = vrot.slane %v13502_v26, 5  ;;  %v1929_v10 = vld [vmem:[%s16311_s0 + $0x48] sm:$0xe]  ;;  %v12220_v26 = vld [vmem:[%s16311_s0 + $0x44] sm:$0x1] }
 0x193   :  { %11187 = vmatmul.mubr.msk.bf16.gmra.mrb[56].mxu0 %vm985_vm4, %v9960_v19  ;;  %v9513_v19 = vcombine.low %v2032_v4, %v2035_v13  ;;  %v9485_v4 = vrot.slane %v1929_v10, 9  ;;  %v2073_v48 = vrot.slane %v13531_v51, 5  ;;  %v2080_v16 = vrot.slane %v13547_v1, 5  ;;  %v12223_v1 = vld [vmem:[%s16311_s0 + $0x68] sm:$0x1] }
 0x194   :  { %11190 = vmatprep.mubr.msk.bf16.mxu0 %vm985_vm4, %v9961_v18  ;;  %v9514_v18 = vcombine.low %v2039_v63, %v2042_v60  ;;  %v2068_v13 = vrot.slane %v2066_v30, 4  ;;  %v2069_v63 = vrot.slane %v12221_v14, 5  ;;  %v12011_v60 = vld [vmem:[%s16311_s0 + $0x3c] sm:$0xff]   ;;  %v2076_v39 = vrot.slane %v12222_v33, 5 }
 0x195   :  { %v2075_v35 = vrot.slane %v2073_v48, 4  ;;  %v2094_v10 = vrot.slane %v13595_v34, 5  ;;  %v12225_v34 = vld [vmem:[%s16311_s0 + $0x80] sm:$0x1] }
 0x196   :  { %v2097_v14 = vrot.slane %v12225_v34, 5 }
 0x198   :  { %10927 = vmatmul.mubr.msk.bf16.gmra.mrb[60].mxu1 %vm985_vm4, %v9446_v9  ;;  %v12010_v9 = vld [vmem:[%s16311_s0 + $0x30] sm:$0xff]  }
 0x199   :  { %10932 = vmatprep.mubr.msk.bf16.mxu1 %vm985_vm4, %v9512_v44  ;;  %v2053_v44 = vsel %vm13327_vm7, %v9483_v55, %v2052_v12  ;;  %v2060_v12 = vsel %vm13327_vm7, %v9484_v36, %v2059_v43  ;;  %v9486_v55 = vrot.slane %v1930_v28, 9  ;;  %v2108_v28 = vrot.slane %v13643_v58, 5  ;;  %v12227_v58 = vld [vmem:[%s16311_s0 + $0x98] sm:$0x1] }
 0x19a   :  { %v9516_v31 = vcombine.low %v2053_v44, %v2056_v49  ;;  %v2087_v44 = vrot.slane %v13579_v20, 5 }
 0x19b   :  { %11191 = vmatmul.mubr.msk.bf16.gmra.mrb[60].mxu0 %vm985_vm4, %v9962_v59  ;;  %v2061_v59 = vrot.slane %v2059_v43, 4  ;;  %v2074_v22 = vsel %vm13327_vm7, %v9486_v55, %v2073_v48  ;;  %v2077_v43 = vsel %vm13327_vm7, %v2075_v35, %v2076_v39  ;;  %v12226_v55 = vld [vmem:[%s16311_s0 + $0x8c] sm:$0x1]  ;;  %v2110_v39 = vrot.slane %v2108_v28, 4 }
 0x19c   :  { %11196 = vmatprep.mubr.msk.bf16.mxu0 %vm985_vm4, %v12008_v56  ;;  %v2062_v56 = vrot.slane %v12220_v26, 5  ;;  %v9519_v20 = vcombine.low %v2074_v22, %v2077_v43  ;;  %v12224_v26 = vld [vmem:[%s16311_s0 + $0x74] sm:$0x1]  ;;  %v2104_v35 = vrot.slane %v12226_v55, 5  ;;  %v12022_v55 = vld [vmem:[%s16311_s0 + $0xc0] sm:$0xff]  }
 0x19e   :  { %v2063_v6 = vsel %vm13327_vm7, %v2061_v59, %v2062_v56  ;;  %v2089_v59 = vrot.slane %v2087_v44, 4  ;;  %v2090_v56 = vrot.slane %v12224_v26, 5 }
 0x19f   :  { %v9517_v51 = vcombine.low %v2060_v12, %v2063_v6  ;;  %v2101_v6 = vrot.slane %v13627_v2, 5 }
 0x1a0   :  { %10933 = vmatmul.mubr.msk.bf16.vlgmr.msra.gmra.mrb[0].mxu1 %vm985_vm4, %v9513_v19  ;;  %v2067_v19 = vsel %vm13327_vm7, %v9485_v4, %v2066_v30  ;;  %v1932_v30 = vld [vmem:[%s16311_s0 + $0x6c] sm:$0xe]  ;;  %v2091_v12 = vsel %vm13327_vm7, %v2089_v59, %v2090_v56  ;;  %v12019_v56 = vld [vmem:[%s16311_s0 + $0x9c] sm:$0xff]  }
 0x1a1   :  { %10936 = vmatprep.mubr.msk.bf16.mxu1 %vm985_vm4, %v9514_v18  ;;  %10997 = vmatpush3.bf16.msra.mxu1 %v3120_v41  ;;  %v2070_v18 = vsel %vm13327_vm7, %v2068_v13, %v2069_v63  ;;  %v9487_v41 = vrot.slane %v1931_v61, 9  ;;  %v9488_v36 = vrot.slane %v1932_v30, 9  ;;  %v2096_v13 = vrot.slane %v2094_v10, 4  ;;  %v12015_v63 = vld [vmem:[%s16311_s0 + $0x6c] sm:$0xff]  }
 0x1a2   :  { %v9518_v32 = vcombine.low %v2067_v19, %v2070_v18  ;;  %v1934_v18 = vld [vmem:[%s16311_s0 + $0x84] sm:$0xe] }
 0x1a3   :  { %11197 = vmatmul.mubr.msk.bf16.vlgmr.msra.gmra.mrb[0].mxu0 %vm985_vm4, %v12009_v8  ;;  %v2082_v8 = vrot.slane %v2080_v16, 4  ;;  %v2081_v49 = vsel %vm13327_vm7, %v9487_v41, %v2080_v16  ;;  %v2098_v19 = vsel %vm13327_vm7, %v2096_v13, %v2097_v14  ;;  %v1935_v16 = vld [vmem:[%s16311_s0 + $0x90] sm:$0xe]  ;;  %v2111_v41 = vrot.slane %v12227_v58, 5 }
 0x1a4   :  { %11261 = vmatpush3.bf16.msra.mxu0 %v7529_v42  ;;  %11200 = vmatprep.mubr.msk.bf16.mxu0 %vm985_vm4, %v12010_v9  ;;  %v2083_v9 = vrot.slane %v12223_v1, 5  ;;  %v12013_v42 = vld [vmem:[%s16311_s0 + $0x54] sm:$0xff]   ;;  %v9491_v33 = vrot.slane %v1935_v16, 9  ;;  %v2129_v14 = vrot.slane %v13722_v7, 5 }
 0x1a5   :  { %11972 = vmatprep.subr.msk.bf16.mxu0 %vm1082_vm0, %v14175_v46  ;;  %v12018_v1 = vld [vmem:[%s16311_s0 + $0x90] sm:$0xff]   ;;  %v2112_v43 = vsel %vm13327_vm7, %v2110_v39, %v2111_v41  ;;  %v2143_v39 = vrot.slane %v13773_v62, 5 }
 0x1a6   :  { %v2084_v45 = vsel %vm13327_vm7, %v2082_v8, %v2083_v9  ;;  %v12017_v8 = vld [vmem:[%s16311_s0 + $0x84] sm:$0xff]   ;;  %v2109_v22 = vsel %vm13327_vm7, %v9491_v33, %v2108_v28  ;;  %v12230_v28 = vld [vmem:[%s16311_s0 + $0xbc] sm:$0x1] }
 0x1a7   :  { %v9524_v30 = vcombine.low %v2109_v22, %v2112_v43  ;;  %v2132_v16 = vrot.slane %v12230_v28, 5  ;;  %v2145_v22 = vrot.slane %v2143_v39, 4  ;;  %v12232_v43 = vld [vmem:[%s16311_s0 + $0xec] sm:$0x1]  ;;  %v1944_v28 = vld [vmem:[%s16311_s0 + $0x114] sm:$0xe] }
 0x1a8   :  { %10937 = vmatmul.mubr.msk.bf16.gmra.mrb[4].mxu1 %vm985_vm4, %v9515_v54  ;;  %v1933_v54 = vld [vmem:[%s16311_s0 + $0x78] sm:$0xe] }
 0x1a9   :  { %10940 = vmatprep.mubr.msk.bf16.mxu1 %vm985_vm4, %v9516_v31  ;;  %v9520_v31 = vcombine.low %v2081_v49, %v2084_v45  ;;  %v9489_v4 = vrot.slane %v1933_v54, 9  ;;  %v2122_v49 = vrot.slane %v13691_v47, 5  ;;  %v1937_v45 = vld [vmem:[%s16311_s0 + $0xa8] sm:$0xe]  ;;  %v12229_v47 = vld [vmem:[%s16311_s0 + $0xb0] sm:$0x1] }
 0x1aa   :  { %v2125_v26 = vrot.slane %v12229_v47, 5  ;;  %v1942_v47 = vld [vmem:[%s16311_s0 + $0xfc] sm:$0xe] }
 0x1ab   :  { %11201 = vmatmul.mubr.msk.bf16.gmra.mrb[4].mxu0 %vm985_vm4, %v12011_v60  ;;  %v12016_v60 = vld [vmem:[%s16311_s0 + $0x78] sm:$0xff]   ;;  %v2095_v48 = vsel %vm13327_vm7, %v9489_v4, %v2094_v10  ;;  %v2124_v59 = vrot.slane %v2122_v49, 4  ;;  %v12020_v4 = vld [vmem:[%s16311_s0 + $0xa8] sm:$0xff]  }
 0x1ac   :  { %11204 = vmatprep.mubr.msk.bf16.mxu0 %vm985_vm4, %v12012_v15  ;;  %v2088_v15 = vsel %vm13327_vm7, %v9488_v36, %v2087_v44  ;;  %v9522_v61 = vcombine.low %v2095_v48, %v2098_v19  ;;  %v1936_v44 = vld [vmem:[%s16311_s0 + $0x9c] sm:$0xe]  ;;  %v9493_v36 = vrot.slane %v1937_v45, 9 }
 0x1ad   :  { %v9521_v2 = vcombine.low %v2088_v15, %v2091_v12  ;;  %v9492_v10 = vrot.slane %v1936_v44, 9  ;;  %v1938_v15 = vld [vmem:[%s16311_s0 + $0xb4] sm:$0xe]  ;;  %v2136_v12 = vrot.slane %v13741_v27, 5  ;;  %v12231_v27 = vld [vmem:[%s16311_s0 + $0xe0] sm:$0x1] }
 0x1ae   :  { %v9494_v19 = vrot.slane %v1938_v15, 9  ;;  %v2146_v44 = vrot.slane %v12232_v43, 5  ;;  %v2192_v43 = vrot.slane %v13933_v25, 5 }
 0x1b0   :  { %10941 = vmatmul.mubr.msk.bf16.gmra.mrb[8].mxu1 %vm985_vm4, %v9517_v51  ;;  %v9490_v51 = vrot.slane %v1934_v18, 9  ;;  %v2131_v18 = vrot.slane %v2129_v14, 4 }
 0x1b1   :  { %10944 = vmatprep.mubr.msk.bf16.mxu1 %vm985_vm4, %v9518_v32  ;;  %v2103_v32 = vrot.slane %v2101_v6, 4 }
 0x1b2   :  { %v2102_v9 = vsel %vm13327_vm7, %v9490_v51, %v2101_v6  ;;  %v1939_v6 = vld [vmem:[%s16311_s0 + $0xd8] sm:$0xe]  ;;  %v2139_v51 = vrot.slane %v12231_v27, 5  ;;  %v2133_v33 = vsel %vm13327_vm7, %v2131_v18, %v2132_v16 }
 0x1b3   :  { %11205 = vmatmul.mubr.msk.bf16.gmra.mrb[8].mxu0 %vm985_vm4, %v12013_v42  ;;  %v2105_v42 = vsel %vm13327_vm7, %v2103_v32, %v2104_v35  ;;  %v12021_v32 = vld [vmem:[%s16311_s0 + $0xb4] sm:$0xff]   ;;  %v2130_v35 = vsel %vm13327_vm7, %v9494_v19, %v2129_v14  ;;  %v12234_v14 = vld [vmem:[%s16311_s0 + $0x104] sm:$0x1] }
 0x1b4   :  { %11208 = vmatprep.mubr.msk.bf16.mxu0 %vm985_vm4, %v12014_v17  ;;  %v2115_v17 = vrot.slane %v13675_v38, 5  ;;  %v9523_v38 = vcombine.low %v2102_v9, %v2105_v42  ;;  %v1941_v9 = vld [vmem:[%s16311_s0 + $0xf0] sm:$0xe]  ;;  %v9527_v62 = vcombine.low %v2130_v35, %v2133_v33 }
 0x1b6   :  { %v2117_v54 = vrot.slane %v2115_v17, 4  ;;  %v2116_v13 = vsel %vm13327_vm7, %v9492_v10, %v2115_v17  ;;  %v12024_v10 = vld [vmem:[%s16311_s0 + $0xf0] sm:$0xff]  }
 0x1b8   :  { %10945 = vmatmul.mubr.msk.bf16.gmra.mrb[12].mxu1 %vm985_vm4, %v9519_v20  ;;  %v12228_v20 = vld [vmem:[%s16311_s0 + $0xa4] sm:$0x1] }
 0x1b9   :  { %10948 = vmatprep.mubr.msk.bf16.mxu1 %vm985_vm4, %v9520_v31  ;;  %v2118_v31 = vrot.slane %v12228_v20, 5  ;;  %v2147_v20 = vsel %vm13327_vm7, %v2145_v22, %v2146_v44  ;;  %v1947_v22 = vld [vmem:[%s16311_s0 + $0x138] sm:$0xe] }
 0x1bb   :  { %11209 = vmatmul.mubr.msk.bf16.gmra.mrb[12].mxu0 %vm985_vm4, %v12015_v63  ;;  %v2119_v34 = vsel %vm13327_vm7, %v2117_v54, %v2118_v31  ;;  %v2123_v63 = vsel %vm13327_vm7, %v9493_v36, %v2122_v49  ;;  %v9497_v49 = vrot.slane %v1941_v9, 9  ;;  %v2157_v31 = vrot.slane %v13821_v40, 5 }
 0x1bc   :  { %11212 = vmatprep.mubr.msk.bf16.mxu0 %vm985_vm4, %v12016_v60  ;;  %v2126_v60 = vsel %vm13327_vm7, %v2124_v59, %v2125_v26  ;;  %v9525_v7 = vcombine.low %v2116_v13, %v2119_v34  ;;  %v2164_v26 = vrot.slane %v13837_v52, 5  ;;  %v9498_v13 = vrot.slane %v1942_v47, 9  ;;  %v12235_v52 = vld [vmem:[%s16311_s0 + $0x110] sm:$0x1] }
 0x1bd   :  { %v9526_v48 = vcombine.low %v2123_v63, %v2126_v60  ;;  %v2159_v34 = vrot.slane %v2157_v31, 4  ;;  %v2160_v63 = vrot.slane %v12234_v14, 5  ;;  %v2206_v47 = vrot.slane %v13981_v11, 5  ;;  %v12030_v11 = vld [vmem:[%s16311_s0 + $0x138] sm:$0xff]  }
 0x1be   :  { %v2166_v15 = vrot.slane %v2164_v26, 4  ;;  %v2158_v19 = vsel %vm13327_vm7, %v9498_v13, %v2157_v31  ;;  %v1948_v31 = vld [vmem:[%s16311_s0 + $0x144] sm:$0xe]  ;;  %v12240_v13 = vld [vmem:[%s16311_s0 + $0x14c] sm:$0x1] }
 0x1bf   :  { %v2161_v18 = vsel %vm13327_vm7, %v2159_v34, %v2160_v63 }
 0x1c0   :  { %10949 = vmatmul.mubr.msk.bf16.gmra.mrb[16].mxu1 %vm985_vm4, %v9521_v2  ;;  %v9495_v2 = vrot.slane %v1939_v6, 9  ;;  %v12025_v6 = vld [vmem:[%s16311_s0 + $0xfc] sm:$0xff]   ;;  %v9531_v27 = vcombine.low %v2158_v19, %v2161_v18  ;;  %v10124_v18 = vld [vmem:[%s16311_s0 + $0x18] sm:$0xf] }
 0x1c1   :  { %10952 = vmatprep.mubr.msk.bf16.mxu1 %vm985_vm4, %v9522_v61  ;;  %v2138_v61 = vrot.slane %v2136_v12, 4 }
 0x1c2   :  { %v2137_v58 = vsel %vm13327_vm7, %v9495_v2, %v2136_v12  ;;  %v2167_v12 = vrot.slane %v12235_v52, 5  ;;  %v2208_v52 = vrot.slane %v2206_v47, 4 }
 0x1c3   :  { %11213 = vmatmul.mubr.msk.bf16.gmra.mrb[16].mxu0 %vm985_vm4, %v12017_v8  ;;  %v2140_v41 = vsel %vm13327_vm7, %v2138_v61, %v2139_v51  ;;  %v1940_v8 = vld [vmem:[%s16311_s0 + $0xe4] sm:$0xe]  ;;  %v1945_v61 = vld [vmem:[%s16311_s0 + $0x120] sm:$0xe]  ;;  %v9500_v51 = vrot.slane %v1944_v28, 9 }
 0x1c4   :  { %11216 = vmatprep.mubr.msk.bf16.mxu0 %vm985_vm4, %v12018_v1  ;;  %v2150_v1 = vrot.slane %v13789_v57, 5  ;;  %v9528_v42 = vcombine.low %v2137_v58, %v2140_v41  ;;  %v9496_v17 = vrot.slane %v1940_v8, 9  ;;  %v12233_v57 = vld [vmem:[%s16311_s0 + $0xf8] sm:$0x1]  ;;  %v2168_v2 = vsel %vm13327_vm7, %v2166_v15, %v2167_v12  ;;  %v10125_v28 = vld [vmem:[%s16311_s0 + $0x1c] sm:$0xf] }
 0x1c5   :  { %v12027_v8 = vld [vmem:[%s16311_s0 + $0x114] sm:$0xff]  }
 0x1c6   :  { %v2152_v45 = vrot.slane %v2150_v1, 4  ;;  %v2144_v54 = vsel %vm13327_vm7, %v9496_v17, %v2143_v39  ;;  %v2151_v36 = vsel %vm13327_vm7, %v9497_v49, %v2150_v1  ;;  %v9501_v39 = vrot.slane %v1945_v61, 9  ;;  %v12028_v1 = vld [vmem:[%s16311_s0 + $0x120] sm:$0xff]   ;;  %v12241_v12 = vld [vmem:[%s16311_s0 + $0x158] sm:$0x1] }
 0x1c7   :  { %v9529_v40 = vcombine.low %v2144_v54, %v2147_v20  ;;  %v2185_v17 = vrot.slane %v13917_v23, 5  ;;  %v12238_v23 = vld [vmem:[%s16311_s0 + $0x134] sm:$0x1]  ;;  %v12239_v54 = vld [vmem:[%s16311_s0 + $0x140] sm:$0x1] }
 0x1c8   :  { %10953 = vmatmul.mubr.msk.bf16.gmra.mrb[20].mxu1 %vm985_vm4, %v9523_v38  ;;  %v2153_v38 = vrot.slane %v12233_v57, 5  ;;  %v2195_v20 = vrot.slane %v12239_v54, 5 }
 0x1c9   :  { %10956 = vmatprep.mubr.msk.bf16.mxu1 %vm985_vm4, %v9524_v30  ;;  %v12023_v30 = vld [vmem:[%s16311_s0 + $0xcc] sm:$0xff]   ;;  %v2187_v25 = vrot.slane %v2185_v17, 4 }
 0x1ca   :  { %v2154_v59 = vsel %vm13327_vm7, %v2152_v45, %v2153_v38  ;;  %v2188_v38 = vrot.slane %v12238_v23, 5 }
 0x1cb   :  { %11217 = vmatmul.mubr.msk.bf16.gmra.mrb[20].mxu0 %vm985_vm4, %v12019_v56  ;;  %v1943_v56 = vld [vmem:[%s16311_s0 + $0x108] sm:$0xe] }
 0x1cc   :  { %11220 = vmatprep.mubr.msk.bf16.mxu0 %vm985_vm4, %v12020_v4  ;;  %v9530_v4 = vcombine.low %v2151_v36, %v2154_v59  ;;  %v9499_v60 = vrot.slane %v1943_v56, 9  ;;  %v2199_v36 = vrot.slane %v13965_v5, 5  ;;  %v12029_v56 = vld [vmem:[%s16311_s0 + $0x12c] sm:$0xff]   ;;  %v2202_v5 = vrot.slane %v12240_v13, 5 }
 0x1cd   :  { %v2189_v34 = vsel %vm13327_vm7, %v2187_v25, %v2188_v38 }
 0x1ce   :  { %v2165_v16 = vsel %vm13327_vm7, %v9499_v60, %v2164_v26  ;;  %v1949_v26 = vld [vmem:[%s16311_s0 + $0x150] sm:$0xe]  ;;  %v2201_v60 = vrot.slane %v2199_v36, 4 }
 0x1cf   :  { %v9532_v33 = vcombine.low %v2165_v16, %v2168_v2  ;;  %v9505_v15 = vrot.slane %v1949_v26, 9 }
 0x1d0   :  { %10957 = vmatmul.mubr.msk.bf16.gmra.mrb[24].mxu1 %vm985_vm4, %v9525_v7  ;;  %v12026_v7 = vld [vmem:[%s16311_s0 + $0x108] sm:$0xff]  }
 0x1d1   :  { %10960 = vmatprep.mubr.msk.bf16.mxu1 %vm985_vm4, %v9526_v48  ;;  %v2171_v48 = vrot.slane %v13869_v24, 5  ;;  %v2178_v24 = vrot.slane %v13885_v37, 5  ;;  %v12237_v37 = vld [vmem:[%s16311_s0 + $0x128] sm:$0x1]  ;;  %v14530_v61 = vsel %vm13327_vm7, %v9505_v15, %v2206_v47 }
 0x1d2   :  { %v2181_v41 = vrot.slane %v12237_v37, 5  ;;  %v6580_v37 = vshrl.u32 %v10125_v28, 16 }
 0x1d3   :  { %11221 = vmatmul.mubr.msk.bf16.gmra.mrb[24].mxu0 %vm985_vm4, %v12021_v32  ;;  %v2173_v32 = vrot.slane %v2171_v48, 4  ;;  %v2180_v58 = vrot.slane %v2178_v24, 4  ;;  %v2172_v9 = vsel %vm13327_vm7, %v9500_v51, %v2171_v48  ;;  %v2179_v44 = vsel %vm13327_vm7, %v9501_v39, %v2178_v24 }
 0x1d4   :  { %11224 = vmatprep.mubr.msk.bf16.mxu0 %vm985_vm4, %v12022_v55  ;;  %v12236_v55 = vld [vmem:[%s16311_s0 + $0x11c] sm:$0x1]  ;;  %v2213_v48 = vrot.slane %v14013_v0, 5  ;;  %v14526_v0 = vsel %vm13327_vm7, %v2201_v60, %v2202_v5  ;;  %v6570_v39 = vshll.u32 %v10124_v18, 16  ;;  %v6582_v38 = vrot.slane %v6580_v37, 4 }
 0x1d5   :  { %v2174_v35 = vrot.slane %v12236_v55, 5  ;;  %v2182_v49 = vsel %vm13327_vm7, %v2180_v58, %v2181_v41  ;;  %v6576_v58 = vshll.u32 %v10125_v28, 16  ;;  %v12031_v41 = vld [vmem:[%s16311_s0 + $0x144] sm:$0xff]   ;;  %v2234_v5 = vrot.slane %v14073_v3, 5 }
 0x1d6   :  { %v9534_v59 = vcombine.low %v2179_v44, %v2182_v49  ;;  %v2215_v51 = vrot.slane %v2213_v48, 4  ;;  %v10128_v44 = vld [vmem:[%s16311_s0 + $0x28] sm:$0xf]  ;;  %v1952_v49 = vld [vmem:[%s16311_s0 + $0x174] sm:$0xe] }
 0x1d7   :  { %v14573_v23 = vrot.slane %v6576_v58, 5  ;;  %v6600_v47 = vshll.u32 %v10128_v44, 16  ;;  %v6604_v26 = vshrl.u32 %v10128_v44, 16 }
 0x1d8   :  { %10961 = vmatmul.mubr.msk.bf16.gmra.mrb[28].mxu1 %vm985_vm4, %v9527_v62  ;;  %v2175_v62 = vsel %vm13327_vm7, %v2173_v32, %v2174_v35  ;;  %v12242_v32 = vld [vmem:[%s16311_s0 + $0x164] sm:$0x1]  ;;  %v1951_v35 = vld [vmem:[%s16311_s0 + $0x168] sm:$0xe] }
 0x1d9   :  { %10964 = vmatprep.mubr.msk.bf16.mxu1 %vm985_vm4, %v9528_v42  ;;  %v1946_v42 = vld [vmem:[%s16311_s0 + $0x12c] sm:$0xe]  ;;  %v9533_v45 = vcombine.low %v2172_v9, %v2175_v62  ;;  %v2216_v55 = vrot.slane %v12242_v32, 5  ;;  %v6583_v3 = vor.u32 %v6582_v38, %v14573_v23 }
 0x1da   :  { %v9502_v57 = vrot.slane %v1946_v42, 9  ;;  %v10127_v42 = vld [vmem:[%s16311_s0 + $0x24] sm:$0xf] }
 0x1db   :  { %11225 = vmatmul.mubr.msk.bf16.gmra.mrb[28].mxu0 %vm985_vm4, %v12023_v30  ;;  %v9503_v30 = vrot.slane %v1947_v22, 9  ;;  %v9507_v22 = vrot.slane %v1951_v35, 9  ;;  %v6591_v54 = vshrl.u32 %v10127_v42, 16  ;;  %v6584_v58 = vrot.slane %v6583_v3, 4 }
 0x1dc   :  { %11228 = vmatprep.mubr.msk.bf16.mxu0 %vm985_vm4, %v12024_v10  ;;  %v2194_v10 = vrot.slane %v2192_v43, 4 }
 0x1dd   :  { %v2193_v14 = vsel %vm13327_vm7, %v9503_v30, %v2192_v43  ;;  %v2227_v43 = vrot.slane %v14059_v50, 5  ;;  %v12243_v50 = vld [vmem:[%s16311_s0 + $0x170] sm:$0x1] }
 0x1de   :  { %v2196_v63 = vsel %vm13327_vm7, %v2194_v10, %v2195_v20  ;;  %v2223_v25 = vrot.slane %v12243_v50, 5  ;;  %v10126_v10 = vld [vmem:[%s16311_s0 + $0x20] sm:$0x1]  ;;  %v6594_v20 = vshll.u32 %v10127_v42, 16 }
 0x1df   :  { %v9536_v16 = vcombine.low %v2193_v14, %v2196_v63  ;;  %v2229_v13 = vrot.slane %v2227_v43, 4  ;;  %v1954_v14 = vld [vmem:[%s16311_s0 + $0x18c] sm:$0xe]  ;;  %v12245_v63 = vld [vmem:[%s16311_s0 + $0x190] sm:$0xf] }
 0x1e0   :  { %10965 = vmatmul.mubr.msk.bf16.gmra.mrb[32].mxu1 %vm985_vm4, %v9529_v40  ;;  %v2186_v40 = vsel %vm13327_vm7, %v9502_v57, %v2185_v17  ;;  %v14564_v17 = vsel %vm13327_vm7, %v2215_v51, %v2216_v55  ;;  %v6572_v57 = vrot.slane %v6570_v39, 5  ;;  %v2241_v60 = vrot.slane %v12245_v63, 5  ;;  %v12247_v55 = vld [vmem:[%s16311_s0 + $0x194] sm:$0x1] }
 0x1e1   :  { %10968 = vmatprep.mubr.msk.bf16.mxu1 %vm985_vm4, %v9530_v4  ;;  %v9504_v4 = vrot.slane %v1948_v31, 9  ;;  %v9535_v19 = vcombine.low %v2186_v40, %v2189_v34  ;;  %v1953_v34 = vld [vmem:[%s16311_s0 + $0x180] sm:$0xe]  ;;  %v6596_v28 = vrot.slane %v6594_v20, 5  ;;  %v2236_v51 = vrot.slane %v2234_v5, 4  ;;  %v12035_v20 = vld [vmem:[%s16311_s0 + $0x174] sm:$0xff]  }
 0x1e2   :  { %v9510_v32 = vrot.slane %v1954_v14, 9  ;;  %v2244_v35 = vrot.slane %v12247_v55, 5  ;;  %v10136_v14 = vld [vmem:[%s16311_s0 + $0x48] sm:$0xf]  ;;  %v12037_v55 = vld [vmem:[%s16311_s0 + $0x18c] sm:$0xff]  }
 0x1e3   :  { %11229 = vmatmul.mubr.msk.bf16.gmra.mrb[32].mxu0 %vm985_vm4, %v12025_v6  ;;  %v2209_v6 = vrot.slane %v12241_v12, 5  ;;  %v14522_v2 = vsel %vm13327_vm7, %v9504_v4, %v2199_v36  ;;  %v12244_v36 = vld [vmem:[%s16311_s0 + $0x17c] sm:$0x1]  ;;  %v9508_v4 = vrot.slane %v1952_v49, 9  ;;  %v12034_v12 = vld [vmem:[%s16311_s0 + $0x168] sm:$0xff]  }
 0x1e4   :  { %11232 = vmatprep.mubr.msk.bf16.mxu0 %vm985_vm4, %v12026_v7  ;;  %v1950_v7 = vld [vmem:[%s16311_s0 + $0x15c] sm:$0xe]  ;;  %v9537_v9 = vcombine.low %v14522_v2, %v14526_v0  ;;  %v6606_v2 = vrot.slane %v6604_v26, 4  ;;  %v10131_v0 = vld [vmem:[%s16311_s0 + $0x34] sm:$0xf] }
 0x1e5   :  { %v9506_v24 = vrot.slane %v1950_v7, 9  ;;  %v12246_v7 = vld [vmem:[%s16311_s0 + $0x188] sm:$0x1]  ;;  %v6628_v44 = vshrl.u32 %v10131_v0, 16  ;;  %v10133_v49 = vld [vmem:[%s16311_s0 + $0x3c] sm:$0xf] }
 0x1e6   :  { %v6639_v26 = vshrl.u32 %v10133_v49, 16 }
 0x1e7   :  { %v14554_v62 = vsel %vm13327_vm7, %v9506_v24, %v2213_v48  ;;  %v2237_v48 = vrot.slane %v12246_v7, 5 }
 0x1e8   :  { %10969 = vmatmul.mubr.msk.bf16.gmra.mrb[36].mxu1 %vm985_vm4, %v9531_v27  ;;  %v14534_v27 = vsel %vm13327_vm7, %v2208_v52, %v2209_v6  ;;  %v9539_v31 = vcombine.low %v14554_v62, %v14564_v17  ;;  %v6586_v52 = vshll.u32 %v10126_v10, 16  ;;  %v14691_v3 = vrot.slane %v6639_v26, 4 }
 0x1e9   :  { %10972 = vmatprep.mubr.msk.bf16.mxu1 %vm985_vm4, %v9532_v33  ;;  %v6567_v33 = vshrl.u32 %v10124_v18, 16  ;;  %v6593_v18 = vrot.slane %v6591_v54, 4  ;;  %v2238_v38 = vsel %vm13327_vm7, %v2236_v51, %v2237_v48  ;;  %v10134_v54 = vld [vmem:[%s16311_s0 + $0x40] sm:$0xf] }
 0x1ea   :  { %v6588_v37 = vrot.slane %v6586_v52, 5  ;;  %v10137_v52 = vld [vmem:[%s16311_s0 + $0x4c] sm:$0xf] }
 0x1eb   :  { %11233 = vmatmul.mubr.msk.bf16.gmra.mrb[36].mxu0 %vm985_vm4, %v12027_v8  ;;  %v2220_v8 = vrot.slane %v14027_v21, 5  ;;  %v9538_v21 = vcombine.low %v14530_v61, %v14534_v27  ;;  %v9509_v27 = vrot.slane %v1953_v34, 9  ;;  %v6652_v34 = vshrl.u32 %v10134_v54, 16 }
 0x1ec   :  { %11236 = vmatprep.mubr.msk.bf16.mxu0 %vm985_vm4, %v12028_v1  ;;  %v12032_v1 = vld [vmem:[%s16311_s0 + $0x150] sm:$0xff]   ;;  %v6589_v10 = vsel %vm12384_vm3, %v6584_v58, %v6588_v37  ;;  %v12038_v37 = vld [vmem:[%s16311_s0 + $0x198] sm:$0xff]  }
 0x1ed   :  { %v2222_v30 = vrot.slane %v2220_v8, 4  ;;  %v14593_v40 = vsel %vm13327_vm7, %v9507_v22, %v2220_v8  ;;  %v6597_v8 = vor.u32 %v6596_v28, %v6593_v18  ;;  %v10140_v18 = vld [vmem:[%s16311_s0 + $0x58] sm:$0xf]  ;;  %v10135_v28 = vld [vmem:[%s16311_s0 + $0x44] sm:$0x1] }
 0x1ee   :  { %v6700_v58 = vshrl.u32 %v10140_v18, 16 }
 0x1ef   :  { %v2224_v6 = vsel %vm13327_vm7, %v2222_v30, %v2223_v25  ;;  %v14649_v30 = vsel %vm13327_vm7, %v9510_v32, %v2241_v60 }
 0x1f0   :  { %10973 = vmatmul.mubr.msk.bf16.gmra.mrb[40].mxu1 %vm985_vm4, %v9533_v45  ;;  %v6569_v45 = vrot.slane %v6567_v33, 4  ;;  %v2243_v33 = vrot.slane %v2241_v60, 4 }
 0x1f1   :  { %10976 = vmatprep.mubr.msk.bf16.mxu1 %vm985_vm4, %v9534_v59  ;;  %v2230_v59 = vrot.slane %v12244_v36, 5  ;;  %v6598_v36 = vrot.slane %v6597_v8, 4 }
 0x1f2   :  { %v6573_v15 = vor.u32 %v6572_v57, %v6569_v45  ;;  %v9540_v45 = vcombine.low %v14593_v40, %v2224_v6  ;;  %v2235_v57 = vsel %vm13327_vm7, %v9509_v27, %v2234_v5  ;;  %v14653_v50 = vsel %vm13327_vm7, %v2243_v33, %v2244_v35  ;;  %v10132_v40 = vld [vmem:[%s16311_s0 + $0x38] sm:$0x1] }
 0x1f3   :  { %11237 = vmatmul.mubr.msk.bf16.gmra.mrb[40].mxu0 %vm985_vm4, %v12029_v56  ;;  %v12033_v56 = vld [vmem:[%s16311_s0 + $0x15c] sm:$0xff]   ;;  %v6642_v5 = vshll.u32 %v10133_v49, 16  ;;  %v9542_v17 = vcombine.low %v2235_v57, %v2238_v38  ;;  %v6676_v27 = vshrl.u32 %v10137_v52, 16  ;;  %v14722_v35 = vsel %vm1082_vm0, %v14175_v46, 0 }
 0x1f4   :  { %11240 = vmatprep.mubr.msk.bf16.mxu0 %vm985_vm4, %v12030_v11  ;;  %v10130_v11 = vld [vmem:[%s16311_s0 + $0x30] sm:$0xf]  ;;  %v6574_v39 = vrot.slane %v6573_v15, 4  ;;  %v6634_v15 = vshll.u32 %v10132_v40, 16  ;;  %v6658_v46 = vshll.u32 %v10135_v28, 16 }
 0x1f5   :  { %v6615_v24 = vshrl.u32 %v10130_v11, 16  ;;  %v6618_v61 = vshll.u32 %v10130_v11, 16  ;;  %v6648_v11 = vshll.u32 %v10134_v54, 16  ;;  %v6678_v38 = vrot.slane %v6676_v27, 4  ;;  %v10146_v54 = vld [vmem:[%s16311_s0 + $0x70] sm:$0xf] }
 0x1f6   :  { %v6579_v25 = vsel %vm12384_vm3, %v6574_v39, %v14573_v23  ;;  %v12036_v23 = vld [vmem:[%s16311_s0 + $0x180] sm:$0xff]   ;;  %v14724_v33 = vrot.slane %v6634_v15, 5  ;;  %v6696_v39 = vshll.u32 %v10140_v18, 16  ;;  %v10144_v28 = vld [vmem:[%s16311_s0 + $0x68] sm:$0x1] }
 0x1f7   :  { %v6620_v22 = vrot.slane %v6618_v61, 5  ;;  %v14686_v63 = vcombine.low %v6579_v25, %v6589_v10  ;;  %v6672_v61 = vshll.u32 %v10137_v52, 16  ;;  %v10148_v52 = vld [vmem:[%s16311_s0 + $0x78] sm:$0xf]  ;;  %v10147_v27 = vld [vmem:[%s16311_s0 + $0x74] sm:$0x1] }
 0x1f8   :  { %10977 = vmatmul.mubr.msk.bf16.gmra.mrb[44].mxu1 %vm985_vm4, %v9535_v19  ;;  %v10129_v19 = vld [vmem:[%s16311_s0 + $0x2c] sm:$0x1] }
 0x1f9   :  { %10980 = vmatprep.mubr.msk.bf16.mxu1 %vm985_vm4, %v9536_v16  ;;  %v14621_v16 = vrot.slane %v6600_v47, 5  ;;  %v14755_v57 = vrot.slane %v6672_v61, 5 }
 0x1fb   :  { %11241 = vmatmul.mubr.msk.bf16.gmra.mrb[44].mxu0 %vm985_vm4, %v12031_v41  ;;  %v14633_v41 = vsel %vm13327_vm7, %v9508_v4, %v2227_v43  ;;  %v6607_v42 = vor.u32 %v6606_v2, %v14621_v16  ;;  %v2231_v43 = vsel %vm13327_vm7, %v2229_v13, %v2230_v59  ;;  %v6630_v13 = vrot.slane %v6628_v44, 4 }
 0x1fc   :  { %11244 = vmatprep.mubr.msk.bf16.mxu0 %vm985_vm4, %v12032_v1  ;;  %v6610_v1 = vshll.u32 %v10129_v19, 16  ;;  %v9541_v62 = vcombine.low %v14633_v41, %v2231_v43  ;;  %v6603_v60 = vsel %vm12384_vm3, %v6598_v36, %v14621_v16  ;;  %v14705_v19 = vrot.slane %v6642_v5, 5  ;;  %v10145_v43 = vld [vmem:[%s16311_s0 + $0x6c] sm:$0xf] }
 0x1fd   :  { %v14713_v16 = vrot.slane %v6648_v11, 5  ;;  %v14715_v2 = vrot.slane %v6652_v34, 4  ;;  %v14764_v36 = vrot.slane %v6696_v39, 5  ;;  %v12040_v5 = vld [vmem:[%s16311_s0 + $0xc] sm:$0xff]   ;;  %v14774_v34 = vrot.slane %v6658_v46, 5 }
 0x1fe   :  { %v6612_v59 = vrot.slane %v6610_v1, 5  ;;  %v6730_v46 = vshll.u32 %v10144_v28, 16 }
 0x200   :  { %10981 = vmatmul.mubr.msk.bf16.gmra.mrb[48].mxu1 %vm985_vm4, %v9537_v9  ;;  %v6624_v9 = vshll.u32 %v10131_v0, 16  ;;  %v6663_v0 = vshrl.u32 %v10136_v14, 16 }
 0x201   :  { %10984 = vmatprep.mubr.msk.bf16.mxu1 %vm985_vm4, %v9538_v21  ;;  %v6617_v21 = vrot.slane %v6615_v24, 4  ;;  %v6666_v24 = vshll.u32 %v10136_v14, 16 }
 0x202   :  { %v14666_v47 = vrot.slane %v6624_v9, 5  ;;  %v10142_v9 = vld [vmem:[%s16311_s0 + $0x60] sm:$0xf]  ;;  %v6665_v44 = vrot.slane %v6663_v0, 4 }
 0x203   :  { %11245 = vmatmul.mubr.msk.bf16.gmra.mrb[48].mxu0 %vm985_vm4, %v12033_v56  ;;  %v6608_v56 = vrot.slane %v6607_v42, 4  ;;  %v6621_v4 = vor.u32 %v6620_v22, %v6617_v21  ;;  %v6645_v42 = vor.u32 %v14705_v19, %v14691_v3  ;;  %v6655_v21 = vor.u32 %v14715_v2, %v14713_v16  ;;  %v10138_v22 = vld [vmem:[%s16311_s0 + $0x50] sm:$0x1] }
 0x204   :  { %11248 = vmatprep.mubr.msk.bf16.mxu0 %vm985_vm4, %v12034_v12  ;;  %v10139_v12 = vld [vmem:[%s16311_s0 + $0x54] sm:$0xf]  ;;  %v6631_v48 = vor.u32 %v6630_v13, %v14666_v47  ;;  %v6668_v49 = vrot.slane %v6666_v24, 5  ;;  %v6711_v26 = vshrl.u32 %v10142_v9, 16  ;;  %v6738_v13 = vshll.u32 %v10145_v43, 16 }
 0x205   :  { %v6613_v6 = vsel %vm12384_vm3, %v6608_v56, %v6612_v59  ;;  %v14702_v7 = vrot.slane %v6621_v4, 4  ;;  %v6687_v51 = vshrl.u32 %v10139_v12, 16  ;;  %v6690_v32 = vshll.u32 %v10139_v12, 16  ;;  %v12039_v12 = vld [vmem:[%s16311_s0 + $0x1a4] sm:$0xff]  }
 0x206   :  { %v14730_v41 = vcombine.low %v6603_v60, %v6613_v6  ;;  %v14736_v1 = vrot.slane %v6631_v48, 4  ;;  %v6702_v59 = vrot.slane %v6700_v58, 4  ;;  %v6735_v4 = vshrl.u32 %v10145_v43, 16 }
 0x207   :  { %v6627_v8 = vsel %vm12384_vm3, %v14702_v7, %v14666_v47  ;;  %v6689_v25 = vrot.slane %v6687_v51, 4  ;;  %v6692_v10 = vrot.slane %v6690_v32, 5  ;;  %v6669_v14 = vor.u32 %v6668_v49, %v6665_v44  ;;  %v12042_v49 = vld [vmem:[%s16311_s0 + $0x24] sm:$0xff]  }
 0x208   :  { %10985 = vmatmul.mubr.msk.bf16.gmra.mrb[52].mxu1 %vm985_vm4, %v9539_v31  ;;  %v9543_v31 = vcombine.low %v14649_v30, %v14653_v50  ;;  %v6637_v11 = vsel %vm12384_vm3, %v14736_v1, %v14724_v33  ;;  %v6679_v60 = vor.u32 %v6678_v38, %v14755_v57  ;;  %v6682_v15 = vshll.u32 %v10138_v22, 16 }
 0x209   :  { %10988 = vmatprep.mubr.msk.bf16.mxu1 %vm985_vm4, %v9540_v45  ;;  %v10143_v45 = vld [vmem:[%s16311_s0 + $0x64] sm:$0xf]  ;;  %v6693_v6 = vor.u32 %v6692_v10, %v6689_v25  ;;  %v6703_v48 = vor.u32 %v6702_v59, %v14764_v36  ;;  %v6713_v19 = vrot.slane %v6711_v26, 4  ;;  %v6737_v24 = vrot.slane %v6735_v4, 4 }
 0x20a   :  { %v6720_v56 = vshll.u32 %v10143_v45, 16  ;;  %v6724_v40 = vshrl.u32 %v10143_v45, 16  ;;  %v6740_v61 = vrot.slane %v6738_v13, 5  ;;  %v6759_v50 = vshrl.u32 %v10148_v52, 16 }
 0x20b   :  { %11249 = vmatmul.mubr.msk.bf16.gmra.mrb[52].mxu0 %vm985_vm4, %v12035_v20  ;;  %v10141_v20 = vld [vmem:[%s16311_s0 + $0x5c] sm:$0x1]  ;;  %v6646_v32 = vrot.slane %v6645_v42, 4  ;;  %v6670_v33 = vrot.slane %v6669_v14, 4  ;;  %v6684_v39 = vrot.slane %v6682_v15, 5  ;;  %v6680_v58 = vrot.slane %v6679_v60, 4 }
 0x20c   :  { %11252 = vmatprep.mubr.msk.bf16.mxu0 %vm985_vm4, %v12036_v23  ;;  %v6714_v23 = vshll.u32 %v10142_v9, 16  ;;  %v6706_v3 = vshll.u32 %v10141_v20, 16  ;;  %v14791_v2 = vrot.slane %v6720_v56, 5  ;;  %v6726_v0 = vrot.slane %v6724_v40, 4  ;;  %v12041_v9 = vld [vmem:[%s16311_s0 + $0x18] sm:$0xff]  }
 0x20d   :  { %v6704_v22 = vrot.slane %v6703_v48, 4  ;;  %v6741_v45 = vor.u32 %v6740_v61, %v6737_v24  ;;  %v6761_v38 = vrot.slane %v6759_v50, 4  ;;  %v10223_v10 = vcombine.low %v6627_v8, %v6637_v11  ;;  %v10155_v61 = vld [vmem:[%s16311_s0 + $0x94] sm:$0xf] }
 0x20e   :  { %v6716_v18 = vrot.slane %v6714_v23, 5  ;;  %v6708_v44 = vrot.slane %v6706_v3, 5  ;;  %v6727_v42 = vor.u32 %v6726_v0, %v14791_v2  ;;  %v6675_v59 = vsel %vm12384_vm3, %v6670_v33, %v14755_v57  ;;  %v10152_v23 = vld [vmem:[%s16311_s0 + $0x88] sm:$0xf] }
 0x20f   :  { %v6685_v26 = vsel %vm12384_vm3, %v6680_v58, %v6684_v39  ;;  %v6732_v8 = vrot.slane %v6730_v46, 5  ;;  %v6742_v13 = vrot.slane %v6741_v45, 4  ;;  %v6792_v14 = vshll.u32 %v10152_v23, 16  ;;  %v10153_v39 = vld [vmem:[%s16311_s0 + $0x8c] sm:$0x1] }
 0x210   :  { %10989 = vmatmul.mubr.msk.bf16.gmra.mrb[56].mxu1 %vm985_vm4, %v9541_v62  ;;  %v6744_v62 = vshll.u32 %v10146_v54, 16  ;;  %v6717_v1 = vor.u32 %v6716_v18, %v6713_v19  ;;  %v6709_v57 = vsel %vm12384_vm3, %v6704_v22, %v6708_v44  ;;  %v6728_v56 = vrot.slane %v6727_v42, 4  ;;  %v12044_v18 = vld [vmem:[%s16311_s0 + $0x3c] sm:$0xff]   ;;  %v10160_v44 = vld [vmem:[%s16311_s0 + $0xa8] sm:$0xf] }
 0x211   :  { %10992 = vmatprep.mubr.msk.bf16.mxu1 %vm985_vm4, %v9542_v17  ;;  %v6748_v17 = vshrl.u32 %v10146_v54, 16  ;;  %v6651_v54 = vsel %vm12384_vm3, %v6646_v32, %v14713_v16  ;;  %v10151_v16 = vld [vmem:[%s16311_s0 + $0x84] sm:$0xf]  ;;  %v6796_v60 = vshrl.u32 %v10152_v23, 16  ;;  %v10225_v3 = vcombine.low %v6675_v59, %v6685_v26  ;;  %v10161_v42 = vld [vmem:[%s16311_s0 + $0xac] sm:$0xf] }
 0x212   :  { %v14797_v51 = vrot.slane %v6744_v62, 5  ;;  %v6718_v7 = vrot.slane %v6717_v1, 4  ;;  %v6783_v62 = vshrl.u32 %v10151_v16, 16  ;;  %v6733_v48 = vsel %vm12384_vm3, %v6728_v56, %v6732_v8  ;;  %v10156_v8 = vld [vmem:[%s16311_s0 + $0x98] sm:$0x1] }
 0x213   :  { %11253 = vmatmul.mubr.msk.bf16.gmra.mrb[56].mxu0 %vm985_vm4, %v12037_v55  ;;  %v6750_v30 = vrot.slane %v6748_v17, 4  ;;  %v6656_v55 = vrot.slane %v6655_v21, 4  ;;  %v6754_v21 = vshll.u32 %v10147_v27, 16  ;;  %v6786_v17 = vshll.u32 %v10151_v16, 16  ;;  %v10157_v27 = vld [vmem:[%s16311_s0 + $0x9c] sm:$0xf] }
 0x214   :  { %11256 = vmatprep.mubr.msk.bf16.mxu0 %vm985_vm4, %v12038_v37  ;;  %v6694_v37 = vrot.slane %v6693_v6, 4  ;;  %v6723_v6 = vsel %vm12384_vm3, %v6718_v7, %v14791_v2  ;;  %v6747_v2 = vsel %vm12384_vm3, %v6742_v13, %v14797_v51  ;;  %v6798_v32 = vrot.slane %v6796_v60, 4 }
 0x215   :  { %v6751_v43 = vor.u32 %v6750_v30, %v14797_v51  ;;  %v6661_v20 = vsel %vm12384_vm3, %v6656_v55, %v14774_v34  ;;  %v6756_v11 = vrot.slane %v6754_v21, 5  ;;  %v6785_v30 = vrot.slane %v6783_v62, 4  ;;  %v10158_v51 = vld [vmem:[%s16311_s0 + $0xa0] sm:$0xf] }
 0x216   :  { %v6699_v47 = vsel %vm12384_vm3, %v6694_v37, %v14764_v36  ;;  %v10150_v36 = vld [vmem:[%s16311_s0 + $0x80] sm:$0x1]  ;;  %v10224_v15 = vcombine.low %v6651_v54, %v6661_v20  ;;  %v6788_v50 = vrot.slane %v6786_v17, 5  ;;  %v14885_v55 = vcombine.low %v6723_v6, %v6733_v48  ;;  %v12045_v54 = vld [vmem:[%s16311_s0 + $0x48] sm:$0xff]   ;;  %v12046_v20 = vld [vmem:[%s16311_s0 + $0x54] sm:$0xff]  }
 0x217   :  { %v14865_v28 = vcombine.low %v6699_v47, %v6709_v57  ;;  %v6820_v22 = vshrl.u32 %v10155_v61, 16  ;;  %v6831_v21 = vshrl.u32 %v10157_v27, 16  ;;  %v6840_v45 = vshll.u32 %v10158_v51, 16 }
 0x218   :  { %10993 = vmatmul.mubr.msk.bf16.gmra.mrb[60].mxu1 %vm985_vm4, %v9543_v31  ;;  %v6762_v31 = vshll.u32 %v10148_v52, 16  ;;  %v6778_v52 = vshll.u32 %v10150_v36, 16  ;;  %v6855_v59 = vshrl.u32 %v10160_v44, 16  ;;  %v6858_v26 = vshll.u32 %v10160_v44, 16 }
 0x219   :  { %10998 = vmatprep.mubr.msk.bf16.mxu1 %vm985_vm4, %v12040_v5  ;;  %v6752_v5 = vrot.slane %v6751_v43, 4  ;;  %v6844_v43 = vshrl.u32 %v10158_v51, 16  ;;  %v6864_v47 = vshll.u32 %v10161_v42, 16  ;;  %v6868_v7 = vshrl.u32 %v10161_v42, 16 }
 0x21a   :  { %v6764_v25 = vrot.slane %v6762_v31, 5  ;;  %v14880_v31 = vrot.slane %v6792_v14, 5  ;;  %v14887_v33 = vrot.slane %v6778_v52, 5  ;;  %v6822_v56 = vrot.slane %v6820_v22, 4  ;;  %v10159_v14 = vld [vmem:[%s16311_s0 + $0xa4] sm:$0x1] }
 0x21b   :  { %11257 = vmatmul.mubr.msk.bf16.gmra.mrb[60].mxu0 %vm985_vm4, %v12039_v12  ;;  %v12043_v12 = vld [vmem:[%s16311_s0 + $0x30] sm:$0xff]   ;;  %v6757_v0 = vsel %vm12384_vm3, %v6752_v5, %v6756_v11  ;;  %v6833_v36 = vrot.slane %v6831_v21, 4  ;;  %v6846_v13 = vrot.slane %v6844_v43, 4  ;;  %v6857_v60 = vrot.slane %v6855_v59, 4  ;;  %v10165_v22 = vld [vmem:[%s16311_s0 + $0xbc] sm:$0x1] }
 0x21c   :  { %11262 = vmatprep.mubr.msk.bf16.mxu0 %vm985_vm4, %v14686_v63  ;;  %v10149_v63 = vld [vmem:[%s16311_s0 + $0x7c] sm:$0xf]  ;;  %v6765_v34 = vor.u32 %v6764_v25, %v6761_v38  ;;  %v14893_v1 = vcombine.low %v6747_v2, %v6757_v0  ;;  %v6789_v38 = vor.u32 %v6788_v50, %v6785_v30  ;;  %v6799_v25 = vor.u32 %v6798_v32, %v14880_v31  ;;  %v10163_v5 = vld [vmem:[%s16311_s0 + $0xb4] sm:$0xf]  ;;  %v12048_v21 = vld [vmem:[%s16311_s0 + $0x6c] sm:$0xff]  }
 0x21d   :  { %v6768_v40 = vshll.u32 %v10149_v63, 16  ;;  %v6772_v4 = vshrl.u32 %v10149_v63, 16  ;;  %v6870_v52 = vrot.slane %v6868_v7, 4  ;;  %v6826_v48 = vshll.u32 %v10156_v8, 16 }
 0x21e   :  { %v14872_v24 = vrot.slane %v6765_v34, 4  ;;  %v6790_v34 = vrot.slane %v6789_v38, 4  ;;  %v6800_v62 = vrot.slane %v6799_v25, 4  ;;  %v6898_v7 = vshll.u32 %v10165_v22, 16 }
 0x21f   :  { %v14857_v19 = vrot.slane %v6768_v40, 5 }
 0x220   :  { %10999 = vmatmul.mubr.msk.bf16.vlgmr.msra.gmra.mrb[0].mxu1 %vm985_vm4, %v12041_v9  ;;  %v6816_v9 = vshll.u32 %v10155_v61, 16  ;;  %v6795_v50 = vsel %vm12384_vm3, %v6790_v34, %v14880_v31  ;;  %v10166_v31 = vld [vmem:[%s16311_s0 + $0xc0] sm:$0xf]  ;;  %v10170_v34 = vld [vmem:[%s16311_s0 + $0xd0] sm:$0xf] }
 0x221   :  { %11002 = vmatprep.mubr.msk.bf16.mxu1 %vm985_vm4, %v12042_v49  ;;  %v6834_v49 = vshll.u32 %v10157_v27, 16  ;;  %v6771_v63 = vsel %vm12384_vm3, %v14872_v24, %v14857_v19  ;;  %v6850_v27 = vshll.u32 %v10159_v14, 16 }
 0x222   :  { %v14919_v57 = vrot.slane %v6816_v9, 5 }
 0x223   :  { %11263 = vmatmul.mubr.msk.bf16.vlgmr.msra.gmra.mrb[0].mxu0 %vm985_vm4, %v14730_v41  ;;  %v6774_v41 = vrot.slane %v6772_v4, 4  ;;  %v6836_v40 = vrot.slane %v6834_v49, 5  ;;  %v14921_v4 = vrot.slane %v6840_v45, 5  ;;  %v6852_v38 = vrot.slane %v6850_v27, 5 }
 0x224   :  { %11327 = vmatpush3.bf16.msra.mxu0 %v14722_v35  ;;  %11266 = vmatprep.mubr.msk.bf16.mxu0 %vm985_vm4, %v10223_v10  ;;  %v10154_v35 = vld [vmem:[%s16311_s0 + $0x90] sm:$0xf]  ;;  %v6802_v10 = vshll.u32 %v10153_v39, 16  ;;  %v6823_v2 = vor.u32 %v6822_v56, %v14919_v57  ;;  %v12047_v39 = vld [vmem:[%s16311_s0 + $0x60] sm:$0xff]  }
 0x225   :  { %v6807_v58 = vshrl.u32 %v10154_v35, 16  ;;  %v6810_v37 = vshll.u32 %v10154_v35, 16  ;;  %v6775_v46 = vor.u32 %v6774_v41, %v14857_v19  ;;  %v10162_v41 = vld [vmem:[%s16311_s0 + $0xb0] sm:$0x1]  ;;  %v6879_v35 = vshrl.u32 %v10163_v5, 16 }
 0x226   :  { %v6804_v17 = vrot.slane %v6802_v10, 5  ;;  %v6837_v0 = vor.u32 %v6836_v40, %v6833_v36  ;;  %v6847_v61 = vor.u32 %v6846_v13, %v14921_v4  ;;  %v6824_v49 = vrot.slane %v6823_v2, 4  ;;  %v10168_v40 = vld [vmem:[%s16311_s0 + $0xc8] sm:$0x1]  ;;  %v10169_v19 = vld [vmem:[%s16311_s0 + $0xcc] sm:$0xf] }
 0x227   :  { %v6809_v16 = vrot.slane %v6807_v58, 4  ;;  %v6812_v23 = vrot.slane %v6810_v37, 5  ;;  %v6776_v11 = vrot.slane %v6775_v46, 4  ;;  %v6881_v44 = vrot.slane %v6879_v35, 4 }
 0x228   :  { %11003 = vmatmul.mubr.msk.bf16.gmra.mrb[4].mxu1 %vm985_vm4, %v12043_v12  ;;  %v10164_v12 = vld [vmem:[%s16311_s0 + $0xb8] sm:$0xf]  ;;  %v6805_v58 = vsel %vm12384_vm3, %v6800_v62, %v6804_v17  ;;  %v6838_v45 = vrot.slane %v6837_v0, 4  ;;  %v6848_v43 = vrot.slane %v6847_v61, 4  ;;  %v6940_v2 = vshrl.u32 %v10170_v34, 16 }
 0x229   :  { %11006 = vmatprep.mubr.msk.bf16.mxu1 %vm985_vm4, %v12044_v18  ;;  %v6813_v6 = vor.u32 %v6812_v23, %v6809_v16  ;;  %v6882_v18 = vshll.u32 %v10163_v5, 16  ;;  %v6781_v30 = vsel %vm12384_vm3, %v6776_v11, %v14887_v33  ;;  %v6888_v32 = vshll.u32 %v10164_v12, 16  ;;  %v12049_v62 = vld [vmem:[%s16311_s0 + $0x78] sm:$0xff]  }
 0x22a   :  { %v6892_v51 = vshrl.u32 %v10164_v12, 16  ;;  %v6874_v33 = vshll.u32 %v10162_v41, 16  ;;  %v10229_v8 = vcombine.low %v6771_v63, %v6781_v30  ;;  %v10230_v16 = vcombine.low %v6795_v50, %v6805_v58 }
 0x22b   :  { %11267 = vmatmul.mubr.msk.bf16.gmra.mrb[4].mxu0 %vm985_vm4, %v10224_v15  ;;  %v6860_v15 = vrot.slane %v6858_v26, 5  ;;  %v6814_v9 = vrot.slane %v6813_v6, 4  ;;  %v6884_v42 = vrot.slane %v6882_v18, 5  ;;  %v14966_v25 = vrot.slane %v6888_v32, 5 }
 0x22c   :  { %11270 = vmatprep.mubr.msk.bf16.mxu0 %vm985_vm4, %v10225_v3  ;;  %v14929_v3 = vrot.slane %v6864_v47, 5  ;;  %v6894_v10 = vrot.slane %v6892_v51, 4  ;;  %v6876_v47 = vrot.slane %v6874_v33, 5  ;;  %v6843_v24 = vsel %vm12384_vm3, %v6838_v45, %v14921_v4 }
 0x22d   :  { %v6861_v37 = vor.u32 %v6860_v15, %v6857_v60  ;;  %v6885_v23 = vor.u32 %v6884_v42, %v6881_v44  ;;  %v6819_v56 = vsel %vm12384_vm3, %v6814_v9, %v14919_v57  ;;  %v6853_v17 = vsel %vm12384_vm3, %v6848_v43, %v6852_v38  ;;  %v10175_v9 = vld [vmem:[%s16311_s0 + $0xfc] sm:$0xf]  ;;  %v10174_v38 = vld [vmem:[%s16311_s0 + $0xf8] sm:$0x1] }
 0x22e   :  { %v6871_v46 = vor.u32 %v6870_v52, %v14929_v3  ;;  %v6895_v63 = vor.u32 %v6894_v10, %v14966_v25  ;;  %v15008_v60 = vrot.slane %v6898_v7, 5  ;;  %v6922_v52 = vshll.u32 %v10168_v40, 16 }
 0x22f   :  { %v6862_v59 = vrot.slane %v6861_v37, 4  ;;  %v15014_v15 = vrot.slane %v6885_v23, 4  ;;  %v6927_v12 = vshrl.u32 %v10169_v19, 16  ;;  %v6930_v6 = vshll.u32 %v10169_v19, 16 }
 0x230   :  { %11007 = vmatmul.mubr.msk.bf16.gmra.mrb[8].mxu1 %vm985_vm4, %v12045_v54  ;;  %v6903_v54 = vshrl.u32 %v10166_v31, 16  ;;  %v6872_v26 = vrot.slane %v6871_v46, 4  ;;  %v6936_v18 = vshll.u32 %v10170_v34, 16  ;;  %v15024_v0 = vrot.slane %v6895_v63, 4  ;;  %v10171_v46 = vld [vmem:[%s16311_s0 + $0xd4] sm:$0x1] }
 0x231   :  { %11010 = vmatprep.mubr.msk.bf16.mxu1 %vm985_vm4, %v12046_v20  ;;  %v6906_v20 = vshll.u32 %v10166_v31, 16  ;;  %v6867_v4 = vsel %vm12384_vm3, %v6862_v59, %v14929_v3  ;;  %v10173_v3 = vld [vmem:[%s16311_s0 + $0xf4] sm:$0xf]  ;;  %v15026_v32 = vcombine.low %v6843_v24, %v6853_v17  ;;  %v15031_v37 = vrot.slane %v6922_v52, 5 }
 0x232   :  { %v6905_v57 = vrot.slane %v6903_v54, 4  ;;  %v6877_v14 = vsel %vm12384_vm3, %v6872_v26, %v6876_v47  ;;  %v6960_v51 = vshll.u32 %v10173_v3, 16  ;;  %v6929_v33 = vrot.slane %v6927_v12, 4  ;;  %v10179_v26 = vld [vmem:[%s16311_s0 + $0x10c] sm:$0xf]  ;;  %v12051_v47 = vld [vmem:[%s16311_s0 + $0x90] sm:$0xff]  }
 0x233   :  { %11271 = vmatmul.mubr.msk.bf16.gmra.mrb[8].mxu0 %vm985_vm4, %v14865_v28  ;;  %v6828_v28 = vrot.slane %v6826_v48, 5  ;;  %v6908_v11 = vrot.slane %v6906_v20, 5  ;;  %v12050_v48 = vld [vmem:[%s16311_s0 + $0x84] sm:$0xff]   ;;  %v15029_v58 = vcombine.low %v6867_v4, %v6877_v14  ;;  %v6932_v31 = vrot.slane %v6930_v6, 5 }
 0x234   :  { %11274 = vmatprep.mubr.msk.bf16.mxu0 %vm985_vm4, %v14885_v55  ;;  %v10167_v55 = vld [vmem:[%s16311_s0 + $0xc4] sm:$0xf]  ;;  %v15045_v44 = vrot.slane %v6936_v18, 5  ;;  %v6942_v42 = vrot.slane %v6940_v2, 4  ;;  %v6901_v45 = vsel %vm12384_vm3, %v15024_v0, %v15008_v60  ;;  %v6975_v20 = vshrl.u32 %v10175_v9, 16 }
 0x235   :  { %v6829_v36 = vsel %vm12384_vm3, %v6824_v49, %v6828_v28  ;;  %v6912_v13 = vshll.u32 %v10167_v55, 16  ;;  %v6916_v5 = vshrl.u32 %v10167_v55, 16  ;;  %v6909_v61 = vor.u32 %v6908_v11, %v6905_v57  ;;  %v10178_v49 = vld [vmem:[%s16311_s0 + $0x108] sm:$0xf]  ;;  %v10177_v4 = vld [vmem:[%s16311_s0 + $0x104] sm:$0x1] }
 0x236   :  { %v10231_v50 = vcombine.low %v6819_v56, %v6829_v36  ;;  %v6891_v28 = vsel %vm12384_vm3, %v15014_v15, %v14966_v25  ;;  %v15061_v55 = vrot.slane %v6960_v51, 5  ;;  %v6978_v59 = vshll.u32 %v10175_v9, 16  ;;  %v12053_v51 = vld [vmem:[%s16311_s0 + $0xa8] sm:$0xff]  }
 0x237   :  { %v15022_v41 = vrot.slane %v6912_v13, 5  ;;  %v6918_v35 = vrot.slane %v6916_v5, 4  ;;  %v6910_v43 = vrot.slane %v6909_v61, 4  ;;  %v6999_v23 = vshrl.u32 %v10178_v49, 16 }
 0x238   :  { %11011 = vmatmul.mubr.msk.bf16.gmra.mrb[12].mxu1 %vm985_vm4, %v12047_v39  ;;  %v6964_v39 = vshrl.u32 %v10173_v3, 16  ;;  %v7002_v56 = vshll.u32 %v10178_v49, 16  ;;  %v6933_v40 = vor.u32 %v6932_v31, %v6929_v33  ;;  %v6943_v13 = vor.u32 %v6942_v42, %v15045_v44  ;;  %v12054_v33 = vld [vmem:[%s16311_s0 + $0xb4] sm:$0xff]  }
 0x239   :  { %11014 = vmatprep.mubr.msk.bf16.mxu1 %vm985_vm4, %v12048_v21  ;;  %v6919_v22 = vor.u32 %v6918_v35, %v15022_v41  ;;  %v10176_v21 = vld [vmem:[%s16311_s0 + $0x100] sm:$0xf]  ;;  %v6946_v5 = vshll.u32 %v10171_v46, 16  ;;  %v6915_v19 = vsel %vm12384_vm3, %v6910_v43, %v15022_v41  ;;  %v6970_v24 = vshll.u32 %v10174_v38, 16  ;;  %v15094_v35 = vld [vmem:[%s16311_s0 + $0x110] sm:$0x1] }
 0x23a   :  { %v6966_v54 = vrot.slane %v6964_v39, 4  ;;  %v6984_v7 = vshll.u32 %v10176_v21, 16  ;;  %v7008_v63 = vshll.u32 %v10179_v26, 16  ;;  %v7012_v57 = vshrl.u32 %v10179_v26, 16 }
 0x23b   :  { %11275 = vmatmul.mubr.msk.bf16.gmra.mrb[12].mxu0 %vm985_vm4, %v14893_v1  ;;  %v10172_v1 = vld [vmem:[%s16311_s0 + $0xf0] sm:$0xf]  ;;  %v6920_v36 = vrot.slane %v6919_v22, 4  ;;  %v6980_v17 = vrot.slane %v6978_v59, 5  ;;  %v7004_v15 = vrot.slane %v7002_v56, 5  ;;  %v6934_v12 = vrot.slane %v6933_v40, 4 }
 0x23c   :  { %11278 = vmatprep.mubr.msk.bf16.mxu0 %vm985_vm4, %v10229_v8  ;;  %v6951_v27 = vshrl.u32 %v10172_v1, 16  ;;  %v6954_v30 = vshll.u32 %v10172_v1, 16  ;;  %v6988_v8 = vshrl.u32 %v10176_v21, 16  ;;  %v6967_v34 = vor.u32 %v6966_v54, %v15061_v55  ;;  %v15143_v56 = vld [vmem:[%s16311_s0 + $0x11c] sm:$0x1] }
 0x23d   :  { %v15082_v14 = vrot.slane %v6984_v7, 5  ;;  %v7001_v1 = vrot.slane %v6999_v23, 4  ;;  %v6925_v52 = vsel %vm12384_vm3, %v6920_v36, %v15031_v37  ;;  %v6944_v6 = vrot.slane %v6943_v13, 4  ;;  %v12055_v13 = vld [vmem:[%s16311_s0 + $0xc0] sm:$0xff]  }
 0x23e   :  { %v6953_v25 = vrot.slane %v6951_v27, 4  ;;  %v6956_v10 = vrot.slane %v6954_v30, 5  ;;  %v6990_v60 = vrot.slane %v6988_v8, 4  ;;  %v6948_v3 = vrot.slane %v6946_v5, 5 }
 0x23f   :  { %v6972_v41 = vrot.slane %v6970_v24, 5  ;;  %v15096_v18 = vrot.slane %v7008_v63, 5  ;;  %v7014_v2 = vrot.slane %v7012_v57, 4  ;;  %v6968_v61 = vrot.slane %v6967_v34, 4  ;;  %v15161_v57 = vld [vmem:[%s16311_s0 + $0x128] sm:$0x1] }
 0x240   :  { %11015 = vmatmul.mubr.msk.bf16.gmra.mrb[16].mxu1 %vm985_vm4, %v12049_v62  ;;  %v6957_v11 = vor.u32 %v6956_v10, %v6953_v25  ;;  %v6977_v62 = vrot.slane %v6975_v20, 4  ;;  %v6994_v30 = vshll.u32 %v10177_v4, 16  ;;  %v10234_v39 = vcombine.low %v6891_v28, %v6901_v45  ;;  %v10184_v28 = vld [vmem:[%s16311_s0 + $0x120] sm:$0xf] }
 0x241   :  { %11018 = vmatprep.mubr.msk.bf16.mxu1 %vm985_vm4, %v12050_v48  ;;  %v10181_v48 = vld [vmem:[%s16311_s0 + $0x114] sm:$0xf]  ;;  %v10235_v37 = vcombine.low %v6915_v19, %v6925_v52  ;;  %v7005_v46 = vor.u32 %v7004_v15, %v7001_v1  ;;  %v6939_v31 = vsel %vm12384_vm3, %v6934_v12, %v15045_v44  ;;  %v7018_v9 = vshll.u32 %v15094_v35, 16  ;;  %v15129_v44 = vld [vmem:[%s16311_s0 + $0x124] sm:$0xf] }
 0x242   :  { %v6958_v0 = vrot.slane %v6957_v11, 4  ;;  %v6981_v27 = vor.u32 %v6980_v17, %v6977_v62  ;;  %v7023_v22 = vshrl.u32 %v10181_v48, 16  ;;  %v7015_v42 = vor.u32 %v7014_v2, %v15096_v18  ;;  %v10187_v19 = vld [vmem:[%s16311_s0 + $0x12c] sm:$0xf]  ;;  %v15166_v62 = vld [vmem:[%s16311_s0 + $0x130] sm:$0xf] }
 0x243   :  { %11279 = vmatmul.mubr.msk.bf16.gmra.mrb[16].mxu0 %vm985_vm4, %v10230_v16  ;;  %v12052_v16 = vld [vmem:[%s16311_s0 + $0x9c] sm:$0xff]   ;;  %v7026_v21 = vshll.u32 %v10181_v48, 16  ;;  %v6973_v38 = vsel %vm12384_vm3, %v6968_v61, %v6972_v41  ;;  %v6996_v10 = vrot.slane %v6994_v30, 5  ;;  %v7006_v20 = vrot.slane %v7005_v46, 4  ;;  %v12056_v17 = vld [vmem:[%s16311_s0 + $0xe4] sm:$0xff]  }
 0x244   :  { %11282 = vmatprep.mubr.msk.bf16.mxu0 %vm985_vm4, %v10231_v50  ;;  %v15103_v50 = vld [vmem:[%s16311_s0 + $0x118] sm:$0xf]  ;;  %v6963_v43 = vsel %vm12384_vm3, %v6958_v0, %v15061_v55  ;;  %v6982_v25 = vrot.slane %v6981_v27, 4  ;;  %v7047_v59 = vshrl.u32 %v10184_v28, 16  ;;  %v7050_v26 = vshll.u32 %v10184_v28, 16 }
 0x245   :  { %v7032_v49 = vshll.u32 %v15103_v50, 16  ;;  %v7036_v45 = vshrl.u32 %v15103_v50, 16  ;;  %v7025_v7 = vrot.slane %v7023_v22, 4  ;;  %v7056_v8 = vshll.u32 %v15129_v44, 16  ;;  %v10190_v15 = vld [vmem:[%s16311_s0 + $0x138] sm:$0xf] }
 0x246   :  { %v7060_v23 = vshrl.u32 %v15129_v44, 16  ;;  %v7016_v55 = vrot.slane %v7015_v42, 4  ;;  %v10237_v24 = vcombine.low %v6963_v43, %v6973_v38  ;;  %v6987_v63 = vsel %vm12384_vm3, %v6982_v25, %v15082_v14  ;;  %v15188_v48 = vld [vmem:[%s16311_s0 + $0x13c] sm:$0xf]  ;;  %v15201_v46 = vld [vmem:[%s16311_s0 + $0x134] sm:$0x1] }
 0x247   :  { %v15145_v36 = vrot.slane %v7032_v49, 5  ;;  %v7038_v40 = vrot.slane %v7036_v45, 4  ;;  %v7049_v11 = vrot.slane %v7047_v59, 4  ;;  %v7052_v34 = vrot.slane %v7050_v26, 5  ;;  %v10193_v42 = vld [vmem:[%s16311_s0 + $0x144] sm:$0xf] }
 0x248   :  { %11019 = vmatmul.mubr.msk.bf16.gmra.mrb[20].mxu1 %vm985_vm4, %v12051_v47  ;;  %v7020_v47 = vrot.slane %v7018_v9, 5  ;;  %v7062_v1 = vrot.slane %v7060_v23, 4  ;;  %v7011_v52 = vsel %vm12384_vm3, %v7006_v20, %v15096_v18  ;;  %v7071_v41 = vshrl.u32 %v10187_v19, 16  ;;  %v15224_v25 = vld [vmem:[%s16311_s0 + $0x148] sm:$0xf] }
 0x249   :  { %11022 = vmatprep.mubr.msk.bf16.mxu1 %vm985_vm4, %v12052_v16  ;;  %v7028_v16 = vrot.slane %v7026_v21, 5  ;;  %v7074_v2 = vshll.u32 %v10187_v19, 16  ;;  %v7080_v0 = vshll.u32 %v15166_v62, 16  ;;  %v7084_v61 = vshrl.u32 %v15166_v62, 16  ;;  %v12058_v21 = vld [vmem:[%s16311_s0 + $0xfc] sm:$0xff]  }
 0x24a   :  { %v7021_v12 = vsel %vm12384_vm3, %v7016_v55, %v7020_v47  ;;  %v7053_v18 = vor.u32 %v7052_v34, %v7049_v11  ;;  %v7066_v27 = vshll.u32 %v15161_v57, 16  ;;  %v7095_v30 = vshrl.u32 %v10190_v15, 16  ;;  %v15230_v20 = vld [vmem:[%s16311_s0 + $0x140] sm:$0x1]  ;;  %v10196_v55 = vld [vmem:[%s16311_s0 + $0x150] sm:$0xf] }
 0x24b   :  { %11283 = vmatmul.mubr.msk.bf16.gmra.mrb[20].mxu0 %vm985_vm4, %v15026_v32  ;;  %v6991_v32 = vor.u32 %v6990_v60, %v15082_v14  ;;  %v7042_v14 = vshll.u32 %v15143_v56, 16  ;;  %v15174_v60 = vrot.slane %v7056_v8, 5  ;;  %v7108_v28 = vshrl.u32 %v15188_v48, 16 }
 0x24c   :  { %11286 = vmatprep.mubr.msk.bf16.mxu0 %vm985_vm4, %v15029_v58  ;;  %v6949_v58 = vsel %vm12384_vm3, %v6944_v6, %v6948_v3  ;;  %v7029_v6 = vor.u32 %v7028_v16, %v7025_v7  ;;  %v7039_v3 = vor.u32 %v7038_v40, %v15145_v36  ;;  %v7073_v49 = vrot.slane %v7071_v41, 4 }
 0x24d   :  { %v6992_v54 = vrot.slane %v6991_v32, 4  ;;  %v10236_v5 = vcombine.low %v6939_v31, %v6949_v58  ;;  %v7063_v32 = vor.u32 %v7062_v1, %v15174_v60  ;;  %v12057_v31 = vld [vmem:[%s16311_s0 + $0xf0] sm:$0xff]   ;;  %v10239_v58 = vcombine.low %v7011_v52, %v7021_v12 }
 0x24e   :  { %v15207_v9 = vrot.slane %v7029_v6, 4  ;;  %v15209_v22 = vrot.slane %v7039_v3, 4  ;;  %v7076_v45 = vrot.slane %v7074_v2, 5  ;;  %v15219_v43 = vrot.slane %v7080_v0, 5  ;;  %v10199_v6 = vld [vmem:[%s16311_s0 + $0x15c] sm:$0xf] }
 0x24f   :  { %v6997_v4 = vsel %vm12384_vm3, %v6992_v54, %v6996_v10  ;;  %v7086_v38 = vrot.slane %v7084_v61, 4  ;;  %v7054_v10 = vrot.slane %v7053_v18, 4  ;;  %v7068_v54 = vrot.slane %v7066_v27, 5  ;;  %v15279_v27 = vld [vmem:[%s16311_s0 + $0x14c] sm:$0x1] }
 0x250   :  { %11023 = vmatmul.mubr.msk.bf16.gmra.mrb[24].mxu1 %vm985_vm4, %v12053_v51  ;;  %v7098_v51 = vshll.u32 %v10190_v15, 16  ;;  %v7097_v59 = vrot.slane %v7095_v30, 4  ;;  %v7064_v47 = vrot.slane %v7063_v32, 4  ;;  %v7090_v7 = vshll.u32 %v15201_v46, 16 }
 0x251   :  { %11026 = vmatprep.mubr.msk.bf16.mxu1 %vm985_vm4, %v12054_v33  ;;  %v7104_v33 = vshll.u32 %v15188_v48, 16  ;;  %v7119_v23 = vshrl.u32 %v10193_v42, 16  ;;  %v7110_v16 = vrot.slane %v7108_v28, 4  ;;  %v7122_v40 = vshll.u32 %v10193_v42, 16 }
 0x252   :  { %v7100_v26 = vrot.slane %v7098_v51, 5  ;;  %v7035_v19 = vsel %vm12384_vm3, %v15207_v9, %v15145_v36  ;;  %v7087_v11 = vor.u32 %v7086_v38, %v15219_v43  ;;  %v7146_v36 = vshll.u32 %v10196_v55, 16  ;;  %v12060_v9 = vld [vmem:[%s16311_s0 + $0x114] sm:$0xff]  }
 0x253   :  { %11287 = vmatmul.mubr.msk.bf16.gmra.mrb[24].mxu0 %vm985_vm4, %v10234_v39  ;;  %v10238_v39 = vcombine.low %v6987_v63, %v6997_v4  ;;  %v15233_v8 = vrot.slane %v7104_v33, 5  ;;  %v7077_v63 = vor.u32 %v7076_v45, %v7073_v49  ;;  %v15254_v4 = vld [vmem:[%s16311_s0 + $0x154] sm:$0xf]  ;;  %v7059_v1 = vsel %vm12384_vm3, %v7054_v10, %v15174_v60  ;;  %v15273_v60 = vld [vmem:[%s16311_s0 + $0x160] sm:$0xf] }
 0x254   :  { %11290 = vmatprep.mubr.msk.bf16.mxu0 %vm985_vm4, %v10235_v37  ;;  %v15195_v37 = vrot.slane %v7042_v14, 5  ;;  %v7101_v34 = vor.u32 %v7100_v26, %v7097_v59  ;;  %v7143_v14 = vshrl.u32 %v10196_v55, 16  ;;  %v7069_v15 = vsel %vm12384_vm3, %v7064_v47, %v7068_v54  ;;  %v15309_v55 = vld [vmem:[%s16311_s0 + $0x158] sm:$0x1] }
 0x255   :  { %v15262_v52 = vrot.slane %v7090_v7, 5  ;;  %v7121_v12 = vrot.slane %v7119_v23, 4  ;;  %v7111_v3 = vor.u32 %v7110_v16, %v15233_v8  ;;  %v7124_v41 = vrot.slane %v7122_v40, 5  ;;  %v10202_v40 = vld [vmem:[%s16311_s0 + $0x168] sm:$0xf] }
 0x256   :  { %v7078_v61 = vrot.slane %v7077_v63, 4  ;;  %v7088_v18 = vrot.slane %v7087_v11, 4  ;;  %v7152_v30 = vshll.u32 %v15254_v4, 16  ;;  %v7156_v51 = vshrl.u32 %v15254_v4, 16 }
 0x257   :  { %v7102_v32 = vrot.slane %v7101_v34, 4  ;;  %v7170_v28 = vshll.u32 %v10199_v6, 16  ;;  %v7176_v42 = vshll.u32 %v15273_v60, 16  ;;  %v7112_v49 = vrot.slane %v7111_v3, 4  ;;  %v12062_v3 = vld [vmem:[%s16311_s0 + $0x12c] sm:$0xff]  }
 0x258   :  { %11027 = vmatmul.mubr.msk.bf16.gmra.mrb[28].mxu1 %vm985_vm4, %v12055_v13  ;;  %v7128_v13 = vshll.u32 %v15224_v25, 16  ;;  %v7138_v38 = vshll.u32 %v15279_v27, 16  ;;  %v10241_v54 = vcombine.low %v7059_v1, %v7069_v15  ;;  %v15294_v59 = vrot.slane %v7152_v30, 5  ;;  %v10205_v30 = vld [vmem:[%s16311_s0 + $0x174] sm:$0xf] }
 0x259   :  { %11030 = vmatprep.mubr.msk.bf16.mxu1 %vm985_vm4, %v12056_v17  ;;  %v7114_v17 = vshll.u32 %v15230_v20, 16  ;;  %v7158_v26 = vrot.slane %v7156_v51, 4  ;;  %v7083_v47 = vsel %vm12384_vm3, %v7078_v61, %v15219_v43  ;;  %v7093_v7 = vsel %vm12384_vm3, %v7088_v18, %v15262_v52  ;;  %v12061_v52 = vld [vmem:[%s16311_s0 + $0x120] sm:$0xff]  }
 0x25a   :  { %v15268_v2 = vrot.slane %v7128_v13, 5  ;;  %v7107_v23 = vsel %vm12384_vm3, %v7102_v32, %v15233_v8  ;;  %v7172_v13 = vrot.slane %v7170_v28, 5  ;;  %v15320_v8 = vld [vmem:[%s16311_s0 + $0x16c] sm:$0xf]  ;;  %v7140_v34 = vrot.slane %v7138_v38, 5 }
 0x25b   :  { %11291 = vmatmul.mubr.msk.bf16.gmra.mrb[28].mxu0 %vm985_vm4, %v10236_v5  ;;  %v7132_v5 = vshrl.u32 %v15224_v25, 16  ;;  %v7116_v33 = vrot.slane %v7114_v17, 5  ;;  %v15327_v17 = vld [vmem:[%s16311_s0 + $0x164] sm:$0x1]  ;;  %v7191_v1 = vshrl.u32 %v10202_v40, 16  ;;  %v7194_v15 = vshll.u32 %v10202_v40, 16 }
 0x25c   :  { %11294 = vmatprep.mubr.msk.bf16.mxu0 %vm985_vm4, %v10237_v24  ;;  %v7045_v24 = vsel %vm12384_vm3, %v15209_v22, %v15195_v37  ;;  %v12059_v37 = vld [vmem:[%s16311_s0 + $0x108] sm:$0xff]   ;;  %v7167_v22 = vshrl.u32 %v10199_v6, 16  ;;  %v7204_v6 = vshrl.u32 %v15320_v8, 16  ;;  %v7186_v18 = vshll.u32 %v15327_v17, 16 }
 0x25d   :  { %v7134_v0 = vrot.slane %v7132_v5, 4  ;;  %v10240_v10 = vcombine.low %v7035_v19, %v7045_v24  ;;  %v15315_v5 = vrot.slane %v7176_v42, 5  ;;  %v7117_v24 = vsel %vm12384_vm3, %v7112_v49, %v7116_v33  ;;  %v10208_v42 = vld [vmem:[%s16311_s0 + $0x180] sm:$0xf] }
 0x25e   :  { %v7169_v43 = vrot.slane %v7167_v22, 4  ;;  %v10242_v51 = vcombine.low %v7083_v47, %v7093_v7  ;;  %v7193_v22 = vrot.slane %v7191_v1, 4  ;;  %v7196_v28 = vrot.slane %v7194_v15, 5  ;;  %v15374_v47 = vld [vmem:[%s16311_s0 + $0x170] sm:$0x1]  ;;  %v12064_v1 = vld [vmem:[%s16311_s0 + $0x144] sm:$0xff]  }
 0x25f   :  { %v7135_v45 = vor.u32 %v7134_v0, %v15268_v2  ;;  %v7215_v49 = vshrl.u32 %v10205_v30, 16  ;;  %v7242_v40 = vshll.u32 %v10208_v42, 16 }
 0x260   :  { %11031 = vmatmul.mubr.msk.bf16.gmra.mrb[32].mxu1 %vm985_vm4, %v12057_v31  ;;  %v7148_v31 = vrot.slane %v7146_v36, 5  ;;  %v7162_v36 = vshll.u32 %v15309_v55, 16  ;;  %v7173_v0 = vor.u32 %v7172_v13, %v7169_v43 }
 0x261   :  { %11034 = vmatprep.mubr.msk.bf16.mxu1 %vm985_vm4, %v12058_v21  ;;  %v7180_v21 = vshrl.u32 %v15273_v60, 16  ;;  %v7136_v11 = vrot.slane %v7135_v45, 4  ;;  %v15365_v45 = vld [vmem:[%s16311_s0 + $0x184] sm:$0xf] }
 0x262   :  { %v7248_v13 = vshll.u32 %v15365_v45, 16 }
 0x263   :  { %11295 = vmatmul.mubr.msk.bf16.gmra.mrb[32].mxu0 %vm985_vm4, %v10238_v39  ;;  %v7145_v39 = vrot.slane %v7143_v14, 4  ;;  %v7182_v19 = vrot.slane %v7180_v21, 4  ;;  %v7159_v14 = vor.u32 %v7158_v26, %v15294_v59  ;;  %v7141_v33 = vsel %vm12384_vm3, %v7136_v11, %v7140_v34 }
 0x264   :  { %11298 = vmatprep.mubr.msk.bf16.mxu0 %vm985_vm4, %v10239_v58  ;;  %v7125_v58 = vor.u32 %v7124_v41, %v7121_v12  ;;  %v7200_v12 = vshll.u32 %v15320_v8, 16  ;;  %v7188_v26 = vrot.slane %v7186_v18, 5  ;;  %v7210_v11 = vshll.u32 %v15374_v47, 16 }
 0x265   :  { %v7149_v16 = vor.u32 %v7148_v31, %v7145_v39  ;;  %v7183_v61 = vor.u32 %v7182_v19, %v15315_v5  ;;  %v15354_v39 = vld [vmem:[%s16311_s0 + $0x178] sm:$0xf]  ;;  %v7160_v31 = vrot.slane %v7159_v14, 4  ;;  %v7252_v19 = vshrl.u32 %v15365_v45, 16 }
 0x266   :  { %v7126_v63 = vrot.slane %v7125_v58, 4  ;;  %v15360_v21 = vrot.slane %v7200_v12, 5  ;;  %v7218_v58 = vshll.u32 %v10205_v30, 16  ;;  %v7224_v7 = vshll.u32 %v15354_v39, 16  ;;  %v15400_v12 = vld [vmem:[%s16311_s0 + $0x17c] sm:$0x1] }
 0x267   :  { %v7150_v41 = vrot.slane %v7149_v16, 4  ;;  %v7239_v16 = vshrl.u32 %v10208_v42, 16  ;;  %v7217_v34 = vrot.slane %v7215_v49, 4 }
 0x268   :  { %11035 = vmatmul.mubr.msk.bf16.gmra.mrb[36].mxu1 %vm985_vm4, %v12059_v37  ;;  %v10243_v37 = vcombine.low %v7107_v23, %v7117_v24  ;;  %v7131_v32 = vsel %vm12384_vm3, %v7126_v63, %v15268_v2  ;;  %v7206_v2 = vrot.slane %v7204_v6, 4  ;;  %v7228_v23 = vshrl.u32 %v15354_v39, 16  ;;  %v12063_v24 = vld [vmem:[%s16311_s0 + $0x138] sm:$0xff]  }
 0x269   :  { %11038 = vmatprep.mubr.msk.bf16.mxu1 %vm985_vm4, %v12060_v9  ;;  %v7164_v9 = vrot.slane %v7162_v36, 5  ;;  %v7155_v38 = vsel %vm12384_vm3, %v7150_v41, %v15294_v59  ;;  %v7197_v59 = vor.u32 %v7196_v28, %v7193_v22  ;;  %v7220_v14 = vrot.slane %v7218_v58, 5  ;;  %v15419_v22 = vld [vmem:[%s16311_s0 + $0x190] sm:$0xf] }
 0x26a   :  { %v7207_v63 = vor.u32 %v7206_v2, %v15360_v21  ;;  %v10244_v36 = vcombine.low %v7131_v32, %v7141_v33  ;;  %v15402_v6 = vrot.slane %v7224_v7, 5  ;;  %v7241_v41 = vrot.slane %v7239_v16, 4  ;;  %v12065_v16 = vld [vmem:[%s16311_s0 + $0x150] sm:$0xff]  }
 0x26b   :  { %11299 = vmatmul.mubr.msk.bf16.gmra.mrb[36].mxu0 %vm985_vm4, %v10240_v10  ;;  %v7174_v10 = vrot.slane %v7173_v0, 4  ;;  %v7165_v43 = vsel %vm12384_vm3, %v7160_v31, %v7164_v9  ;;  %v7244_v0 = vrot.slane %v7242_v40, 5  ;;  %v7198_v30 = vrot.slane %v7197_v59, 4 }
 0x26c   :  { %11302 = vmatprep.mubr.msk.bf16.mxu0 %vm985_vm4, %v10241_v54  ;;  %v7184_v54 = vrot.slane %v7183_v61, 4  ;;  %v10211_v61 = vld [vmem:[%s16311_s0 + $0x18c] sm:$0xf]  ;;  %v10245_v18 = vcombine.low %v7155_v38, %v7165_v43  ;;  %v7208_v32 = vrot.slane %v7207_v63, 4  ;;  %v7212_v33 = vrot.slane %v7210_v11, 5 }
 0x26d   :  { %v7179_v15 = vsel %vm12384_vm3, %v7174_v10, %v15315_v5  ;;  %v15410_v5 = vld [vmem:[%s16311_s0 + $0x188] sm:$0x1]  ;;  %v7221_v31 = vor.u32 %v7220_v14, %v7217_v34  ;;  %v7234_v9 = vshll.u32 %v15400_v12, 16  ;;  %v7245_v2 = vor.u32 %v7244_v0, %v7241_v41  ;;  %v10214_v38 = vld [vmem:[%s16311_s0 + $0x198] sm:$0xf] }
 0x26e   :  { %v7258_v49 = vshll.u32 %v15410_v5, 16  ;;  %v7263_v58 = vshrl.u32 %v10211_v61, 16  ;;  %v15430_v10 = vld [vmem:[%s16311_s0 + $0x19c] sm:$0xf]  ;;  %v7272_v7 = vshll.u32 %v15419_v22, 16  ;;  %v7203_v40 = vsel %vm12384_vm3, %v7198_v30, %v15360_v21 }
 0x26f   :  { %v7213_v43 = vsel %vm12384_vm3, %v7208_v32, %v7212_v33  ;;  %v7222_v59 = vrot.slane %v7221_v31, 4  ;;  %v7290_v63 = vshll.u32 %v10214_v38, 16  ;;  %v7296_v11 = vshll.u32 %v15430_v10, 16  ;;  %v15463_v31 = vld [vmem:[%s16311_s0 + $0x1a8] sm:$0xf] }
 0x270   :  { %11039 = vmatmul.mubr.msk.bf16.gmra.mrb[40].mxu1 %vm985_vm4, %v12061_v52  ;;  %v7189_v52 = vsel %vm12384_vm3, %v7184_v54, %v7188_v26  ;;  %v7266_v26 = vshll.u32 %v10211_v61, 16  ;;  %v7300_v34 = vshrl.u32 %v15430_v10, 16  ;;  %v7274_v41 = vrot.slane %v7272_v7, 5 }
 0x271   :  { %11042 = vmatprep.mubr.msk.bf16.mxu1 %vm985_vm4, %v12062_v3  ;;  %v7230_v3 = vrot.slane %v7228_v23, 4  ;;  %v10246_v28 = vcombine.low %v7179_v15, %v7189_v52  ;;  %v7276_v23 = vshrl.u32 %v15419_v22, 16  ;;  %v7265_v15 = vrot.slane %v7263_v58, 4  ;;  %v15453_v52 = vld [vmem:[%s16311_s0 + $0x194] sm:$0x1] }
 0x272   :  { %v10247_v61 = vcombine.low %v7203_v40, %v7213_v43  ;;  %v7298_v32 = vrot.slane %v7296_v11, 5  ;;  %v7302_v33 = vrot.slane %v7300_v34, 4 }
 0x273   :  { %11303 = vmatmul.mubr.msk.bf16.gmra.mrb[40].mxu0 %vm985_vm4, %v10242_v51  ;;  %v15412_v51 = vrot.slane %v7248_v13, 5  ;;  %v7231_v42 = vor.u32 %v7230_v3, %v15402_v6  ;;  %v7236_v13 = vrot.slane %v7234_v9, 5  ;;  %v7268_v3 = vrot.slane %v7266_v26, 5  ;;  %v12067_v26 = vld [vmem:[%s16311_s0 + $0x168] sm:$0xff]  }
 0x274   :  { %11306 = vmatprep.mubr.msk.bf16.mxu0 %vm985_vm4, %v10243_v37  ;;  %v7254_v37 = vrot.slane %v7252_v19, 4  ;;  %v12066_v19 = vld [vmem:[%s16311_s0 + $0x15c] sm:$0xff]   ;;  %v7278_v0 = vrot.slane %v7276_v23, 4  ;;  %v7227_v9 = vsel %vm12384_vm3, %v7222_v59, %v15402_v6  ;;  %v7303_v43 = vor.u32 %v7302_v33, %v7298_v32 }
 0x275   :  { %v7232_v14 = vrot.slane %v7231_v42, 4  ;;  %v7269_v6 = vor.u32 %v7268_v3, %v7265_v15 }
 0x276   :  { %v7255_v54 = vor.u32 %v7254_v37, %v15412_v51  ;;  %v7292_v37 = vrot.slane %v7290_v63, 5 }
 0x277   :  { %v7237_v42 = vsel %vm12384_vm3, %v7232_v14, %v7236_v13 }
 0x278   :  { %11043 = vmatmul.mubr.msk.bf16.gmra.mrb[44].mxu1 %vm985_vm4, %v12063_v24  ;;  %v7287_v24 = vshrl.u32 %v10214_v38, 16  ;;  %v7256_v21 = vrot.slane %v7255_v54, 4  ;;  %v7279_v54 = vor.u32 %v7278_v0, %v7274_v41  ;;  %v10248_v13 = vcombine.low %v7227_v9, %v7237_v42  ;;  %v15497_v0 = vld [vmem:[%s16311_s0 + $0x1ac] sm:$0x1] }
 0x279   :  { %11046 = vmatprep.mubr.msk.bf16.mxu1 %vm985_vm4, %v12064_v1  ;;  %v7260_v1 = vrot.slane %v7258_v49, 5  ;;  %v15474_v49 = vld [vmem:[%s16311_s0 + $0x1a0] sm:$0x1]  ;;  %v7330_v9 = vshll.u32 %v15497_v0, 16  ;;  %v12070_v42 = vld [vmem:[%s16311_s0 + $0x18c] sm:$0xff]  }
 0x27a   :  { %v7289_v30 = vrot.slane %v7287_v24, 4  ;;  %v7306_v59 = vshll.u32 %v15474_v49, 16  ;;  %v7270_v24 = vrot.slane %v7269_v6, 4  ;;  %v7280_v63 = vrot.slane %v7279_v54, 4  ;;  %v10285_v6 = vld [vmem:[%s16311_s0 + $0x18] sm:$0xe] }
 0x27b   :  { %11307 = vmatmul.mubr.msk.bf16.gmra.mrb[44].mxu0 %vm985_vm4, %v10244_v36  ;;  %v7246_v36 = vrot.slane %v7245_v2, 4  ;;  %v7282_v2 = vshll.u32 %v15453_v52, 16  ;;  %v7261_v38 = vsel %vm12384_vm3, %v7256_v21, %v7260_v1  ;;  %v7304_v21 = vrot.slane %v7303_v43, 4  ;;  %v12071_v43 = vld [vmem:[%s16311_s0 + $0x198] sm:$0xff]  }
 0x27c   :  { %11310 = vmatprep.mubr.msk.bf16.mxu0 %vm985_vm4, %v10245_v18  ;;  %v10217_v18 = vld [vmem:[%s16311_s0 + $0x1a4] sm:$0xf]  ;;  %v7293_v40 = vor.u32 %v7292_v37, %v7289_v30  ;;  %v7308_v3 = vrot.slane %v7306_v59, 5 }
 0x27d   :  { %v7251_v58 = vsel %vm12384_vm3, %v7246_v36, %v15412_v51  ;;  %v7311_v7 = vshrl.u32 %v10217_v18, 16  ;;  %v7314_v23 = vshll.u32 %v10217_v18, 16  ;;  %v12068_v51 = vld [vmem:[%s16311_s0 + $0x174] sm:$0xff]   ;;  %v7284_v11 = vrot.slane %v7282_v2, 5  ;;  %v12069_v18 = vld [vmem:[%s16311_s0 + $0x180] sm:$0xff]  }
 0x27e   :  { %v7294_v15 = vrot.slane %v7293_v40, 4  ;;  %v7309_v2 = vsel %vm12384_vm3, %v7304_v21, %v7308_v3 }
 0x27f   :  { %v7313_v34 = vrot.slane %v7311_v7, 4  ;;  %v7316_v14 = vrot.slane %v7314_v23, 5  ;;  %v7285_v30 = vsel %vm12384_vm3, %v7280_v63, %v7284_v11 }
 0x280   :  { %11047 = vmatmul.mubr.msk.bf16.gmra.mrb[48].mxu1 %vm985_vm4, %v12065_v16  ;;  %v7320_v16 = vshll.u32 %v15463_v31, 16 }
 0x281   :  { %11050 = vmatprep.mubr.msk.bf16.mxu1 %vm985_vm4, %v12066_v19  ;;  %v10249_v19 = vcombine.low %v7251_v58, %v7261_v38  ;;  %v7317_v37 = vor.u32 %v7316_v14, %v7313_v34  ;;  %v12248_v58 = vld [vmem:[%s16311_s0 + $0x1c] sm:$0xf]  ;;  %v10286_v34 = vld [vmem:[%s16311_s0 + $0x24] sm:$0xe]  ;;  %v8028_v14 = vrot.slane %v12251_v29, 5 }
 0x282   :  { %v7322_v36 = vrot.slane %v7320_v16, 5  ;;  %v8014_v38 = vrot.slane %v12248_v58, 5  ;;  %v7332_v16 = vrot.slane %v7330_v9, 5  ;;  %v10318_v21 = vrot.slane %v10286_v34, 9  ;;  %v12258_v34 = vld [vmem:[%s16311_s0 + $0x58] sm:$0xf] }
 0x283   :  { %11311 = vmatmul.mubr.msk.bf16.gmra.mrb[48].mxu0 %vm985_vm4, %v10246_v28  ;;  %v7324_v28 = vshrl.u32 %v15463_v31, 16  ;;  %v7318_v7 = vrot.slane %v7317_v37, 4  ;;  %v8030_v37 = vrot.slane %v8028_v14, 4  ;;  %v8049_v29 = vrot.slane %v12258_v34, 5  ;;  %v12265_v34 = vld [vmem:[%s16311_s0 + $0x80] sm:$0x1] }
 0x284   :  { %11314 = vmatprep.mubr.msk.bf16.mxu0 %vm985_vm4, %v10247_v61  ;;  %v7275_v61 = vsel %vm12384_vm3, %v7270_v24, %v7274_v41  ;;  %v7299_v41 = vsel %vm12384_vm3, %v7294_v15, %v7298_v32  ;;  %v10317_v32 = vrot.slane %v10285_v6, 9 }
 0x285   :  { %v7326_v1 = vrot.slane %v7324_v28, 4  ;;  %v10250_v54 = vcombine.low %v7275_v61, %v7285_v30  ;;  %v8016_v28 = vrot.slane %v8014_v38, 4  ;;  %v7323_v59 = vsel %vm12384_vm3, %v7318_v7, %v7322_v36  ;;  %v12252_v61 = vld [vmem:[%s16311_s0 + $0x2c] sm:$0x1] }
 0x286   :  { %v8015_v63 = vsel %vm13327_vm7, %v10317_v32, %v8014_v38 }
 0x287   :  { %v7327_v33 = vor.u32 %v7326_v1, %v7322_v36  ;;  %v10287_v36 = vld [vmem:[%s16311_s0 + $0x30] sm:$0xe] }
 0x288   :  { %11051 = vmatmul.mubr.msk.bf16.gmra.mrb[52].mxu1 %vm985_vm4, %v12067_v26  ;;  %v10251_v26 = vcombine.low %v7299_v41, %v7309_v2  ;;  %v10319_v30 = vrot.slane %v10287_v36, 9  ;;  %v12254_v2 = vld [vmem:[%s16311_s0 + $0x40] sm:$0xf] }
 0x289   :  { %11054 = vmatprep.mubr.msk.bf16.mxu1 %vm985_vm4, %v12068_v51  ;;  %v7328_v23 = vrot.slane %v7327_v33, 4  ;;  %v12249_v51 = vld [vmem:[%s16311_s0 + $0x20] sm:$0x1]  ;;  %v12253_v33 = vld [vmem:[%s16311_s0 + $0x38] sm:$0x1]  ;;  %v8035_v58 = vrot.slane %v12254_v2, 5 }
 0x28a   :  { %v8017_v40 = vrot.slane %v12249_v51, 5  ;;  %v8031_v9 = vrot.slane %v12253_v33, 5  ;;  %v8029_v38 = vsel %vm13327_vm7, %v10319_v30, %v8028_v14  ;;  %v12260_v33 = vld [vmem:[%s16311_s0 + $0x5c] sm:$0x1]  ;;  %v12261_v2 = vld [vmem:[%s16311_s0 + $0x68] sm:$0x1] }
 0x28b   :  { %11315 = vmatmul.mubr.msk.bf16.gmra.mrb[52].mxu0 %vm985_vm4, %v10248_v13  ;;  %v7333_v13 = vsel %vm12384_vm3, %v7328_v23, %v7332_v16  ;;  %v10289_v23 = vld [vmem:[%s16311_s0 + $0x48] sm:$0xe]  ;;  %v8037_v51 = vrot.slane %v8035_v58, 4 }
 0x28c   :  { %11318 = vmatprep.mubr.msk.bf16.mxu0 %vm985_vm4, %v10249_v19  ;;  %v12250_v19 = vld [vmem:[%s16311_s0 + $0x28] sm:$0xf]  ;;  %v8018_v11 = vsel %vm13327_vm7, %v8016_v28, %v8017_v40  ;;  %v10252_v1 = vcombine.low %v7323_v59, %v7333_v13  ;;  %v8032_v6 = vsel %vm13327_vm7, %v8030_v37, %v8031_v9  ;;  %v12256_v40 = vld [vmem:[%s16311_s0 + $0x44] sm:$0x1]  ;;  %v10321_v59 = vrot.slane %v10289_v23, 9 }
 0x28d   :  { %v8021_v24 = vrot.slane %v12250_v19, 5  ;;  %v10350_v15 = vcombine.low %v8015_v63, %v8018_v11  ;;  %v10352_v32 = vcombine.low %v8029_v38, %v8032_v6  ;;  %v12257_v19 = vld [vmem:[%s16311_s0 + $0x50] sm:$0x1]  ;;  %v8051_v37 = vrot.slane %v8049_v29, 4 }
 0x28e   :  { %v8052_v9 = vrot.slane %v12260_v33, 5 }
 0x28f   :  { %v8023_v3 = vrot.slane %v8021_v24, 4 }
 0x290   :  { %11055 = vmatmul.mubr.msk.bf16.gmra.mrb[56].mxu1 %vm985_vm4, %v12069_v18  ;;  %v8024_v18 = vrot.slane %v12252_v61, 5  ;;  %v8053_v6 = vsel %vm13327_vm7, %v8051_v37, %v8052_v9  ;;  %v10295_v37 = vld [vmem:[%s16311_s0 + $0x90] sm:$0xe] }
 0x291   :  { %11058 = vmatprep.mubr.msk.bf16.mxu1 %vm985_vm4, %v12070_v42  ;;  %v8022_v42 = vsel %vm13327_vm7, %v10318_v21, %v8021_v24  ;;  %v8045_v24 = vrot.slane %v12257_v19, 5  ;;  %v12264_v19 = vld [vmem:[%s16311_s0 + $0x74] sm:$0x1] }
 0x292   :  { %v8025_v41 = vsel %vm13327_vm7, %v8023_v3, %v8024_v18  ;;  %v10291_v3 = vld [vmem:[%s16311_s0 + $0x60] sm:$0xe] }
 0x293   :  { %11319 = vmatmul.mubr.msk.bf16.gmra.mrb[56].mxu0 %vm985_vm4, %v10250_v54  ;;  %v10288_v54 = vld [vmem:[%s16311_s0 + $0x3c] sm:$0xe]  ;;  %v10351_v16 = vcombine.low %v8022_v42, %v8025_v41  ;;  %v10323_v42 = vrot.slane %v10291_v3, 9 }
 0x294   :  { %11322 = vmatprep.mubr.msk.bf16.mxu0 %vm985_vm4, %v10251_v26  ;;  %v12255_v26 = vld [vmem:[%s16311_s0 + $0x4c] sm:$0xf]  ;;  %v10320_v28 = vrot.slane %v10288_v54, 9  ;;  %v12262_v54 = vld [vmem:[%s16311_s0 + $0x70] sm:$0xf] }
 0x295   :  { %v8042_v7 = vrot.slane %v12255_v26, 5  ;;  %v8063_v26 = vrot.slane %v12262_v54, 5  ;;  %v12269_v54 = vld [vmem:[%s16311_s0 + $0x98] sm:$0x1] }
 0x296   :  { %v8036_v63 = vsel %vm13327_vm7, %v10320_v28, %v8035_v58  ;;  %v8059_v58 = vrot.slane %v12261_v2, 5  ;;  %v12268_v2 = vld [vmem:[%s16311_s0 + $0x8c] sm:$0x1] }
 0x297   :  { %v8044_v13 = vrot.slane %v8042_v7, 4  ;;  %v8043_v14 = vsel %vm13327_vm7, %v10321_v59, %v8042_v7 }
 0x298   :  { %11059 = vmatmul.mubr.msk.bf16.gmra.mrb[60].mxu1 %vm985_vm4, %v12071_v43  ;;  %v8038_v43 = vrot.slane %v12256_v40, 5 }
 0x299   :  { %v8046_v36 = vsel %vm13327_vm7, %v8044_v13, %v8045_v24  ;;  %v8065_v13 = vrot.slane %v8063_v26, 4  ;;  %v8066_v24 = vrot.slane %v12264_v19, 5 }
 0x29a   :  { %v8039_v11 = vsel %vm13327_vm7, %v8037_v51, %v8038_v43  ;;  %v10354_v18 = vcombine.low %v8043_v14, %v8046_v36  ;;  %v10293_v51 = vld [vmem:[%s16311_s0 + $0x78] sm:$0xe] }
 0x29b   :  { %11323 = vmatmul.mubr.msk.bf16.gmra.mrb[60].mxu0 %vm985_vm4, %v10252_v1  ;;  %v10290_v1 = vld [vmem:[%s16311_s0 + $0x54] sm:$0xe]  ;;  %v10353_v61 = vcombine.low %v8036_v63, %v8039_v11  ;;  %v10325_v63 = vrot.slane %v10293_v51, 9  ;;  %v8067_v36 = vsel %vm13327_vm7, %v8065_v13, %v8066_v24  ;;  %v10297_v13 = vld [vmem:[%s16311_s0 + $0xa8] sm:$0xe] }
 0x29c   :  { %11328 = vmatprep.mubr.msk.bf16.mxu0 %vm985_vm4, %v10350_v15  ;;  %v12259_v15 = vld [vmem:[%s16311_s0 + $0x64] sm:$0xf]  ;;  %v10322_v30 = vrot.slane %v10290_v1, 9  ;;  %v12266_v1 = vld [vmem:[%s16311_s0 + $0x88] sm:$0xf] }
 0x29d   :  { %v8056_v21 = vrot.slane %v12259_v15, 5  ;;  %v8077_v15 = vrot.slane %v12266_v1, 5  ;;  %v12273_v1 = vld [vmem:[%s16311_s0 + $0xb0] sm:$0x1] }
 0x29e   :  { %v8050_v38 = vsel %vm13327_vm7, %v10322_v30, %v8049_v29  ;;  %v8073_v29 = vrot.slane %v12265_v34, 5  ;;  %v12272_v34 = vld [vmem:[%s16311_s0 + $0xa4] sm:$0x1] }
 0x29f   :  { %v8058_v41 = vrot.slane %v8056_v21, 4  ;;  %v8057_v7 = vsel %vm13327_vm7, %v10323_v42, %v8056_v21  ;;  %v10355_v40 = vcombine.low %v8050_v38, %v8053_v6  ;;  %v10327_v38 = vrot.slane %v10295_v37, 9 }
 0x2a1   :  { %v8060_v23 = vsel %vm13327_vm7, %v8058_v41, %v8059_v58  ;;  %v8079_v41 = vrot.slane %v8077_v15, 4  ;;  %v8080_v58 = vrot.slane %v12268_v2, 5 }
 0x2a2   :  { %v10356_v43 = vcombine.low %v8057_v7, %v8060_v23 }
 0x2a3   :  { %11329 = vmatmul.mubr.msk.bf16.vlgmr.msra.gmra.mrb[0].mxu0 %vm985_vm4, %v10351_v16  ;;  %v10292_v16 = vld [vmem:[%s16311_s0 + $0x6c] sm:$0xe]  ;;  %v8081_v23 = vsel %vm13327_vm7, %v8079_v41, %v8080_v58  ;;  %v10299_v41 = vld [vmem:[%s16311_s0 + $0xc0] sm:$0xe] }
 0x2a4   :  { %11332 = vmatprep.mubr.msk.bf16.mxu0 %vm985_vm4, %v10352_v32  ;;  %v12263_v32 = vld [vmem:[%s16311_s0 + $0x7c] sm:$0xf]  ;;  %v10324_v59 = vrot.slane %v10292_v16, 9  ;;  %v12270_v16 = vld [vmem:[%s16311_s0 + $0xa0] sm:$0xf] }
 0x2a5   :  { %v8070_v28 = vrot.slane %v12263_v32, 5  ;;  %v8091_v32 = vrot.slane %v12270_v16, 5  ;;  %v12277_v16 = vld [vmem:[%s16311_s0 + $0xc8] sm:$0x1] }
 0x2a6   :  { %v8064_v14 = vsel %vm13327_vm7, %v10324_v59, %v8063_v26  ;;  %v8087_v26 = vrot.slane %v12269_v54, 5  ;;  %v12276_v54 = vld [vmem:[%s16311_s0 + $0xbc] sm:$0x1] }
 0x2a7   :  { %v8072_v11 = vrot.slane %v8070_v28, 4  ;;  %v8071_v21 = vsel %vm13327_vm7, %v10325_v63, %v8070_v28  ;;  %v10357_v33 = vcombine.low %v8064_v14, %v8067_v36  ;;  %v10329_v14 = vrot.slane %v10297_v13, 9 }
 0x2a9   :  { %v8074_v3 = vsel %vm13327_vm7, %v8072_v11, %v8073_v29  ;;  %v8093_v11 = vrot.slane %v8091_v32, 4  ;;  %v8094_v29 = vrot.slane %v12272_v34, 5 }
 0x2aa   :  { %v10358_v9 = vcombine.low %v8071_v21, %v8074_v3 }
 0x2ab   :  { %11333 = vmatmul.mubr.msk.bf16.gmra.mrb[4].mxu0 %vm985_vm4, %v10353_v61  ;;  %v10294_v61 = vld [vmem:[%s16311_s0 + $0x84] sm:$0xe]  ;;  %v8095_v3 = vsel %vm13327_vm7, %v8093_v11, %v8094_v29  ;;  %v10301_v11 = vld [vmem:[%s16311_s0 + $0xf0] sm:$0xe] }
 0x2ac   :  { %11336 = vmatprep.mubr.msk.bf16.mxu0 %vm985_vm4, %v10354_v18  ;;  %v12267_v18 = vld [vmem:[%s16311_s0 + $0x94] sm:$0xf]  ;;  %v10326_v42 = vrot.slane %v10294_v61, 9  ;;  %v12274_v61 = vld [vmem:[%s16311_s0 + $0xb8] sm:$0xf] }
 0x2ad   :  { %v8084_v30 = vrot.slane %v12267_v18, 5  ;;  %v8105_v18 = vrot.slane %v12274_v61, 5  ;;  %v12281_v61 = vld [vmem:[%s16311_s0 + $0xf8] sm:$0x1] }
 0x2ae   :  { %v8078_v7 = vsel %vm13327_vm7, %v10326_v42, %v8077_v15  ;;  %v8101_v15 = vrot.slane %v12273_v1, 5  ;;  %v12280_v1 = vld [vmem:[%s16311_s0 + $0xd4] sm:$0x1] }
 0x2af   :  { %v8086_v6 = vrot.slane %v8084_v30, 4  ;;  %v8085_v28 = vsel %vm13327_vm7, %v10327_v38, %v8084_v30  ;;  %v10359_v19 = vcombine.low %v8078_v7, %v8081_v23  ;;  %v10331_v7 = vrot.slane %v10299_v41, 9 }
 0x2b1   :  { %v8088_v51 = vsel %vm13327_vm7, %v8086_v6, %v8087_v26  ;;  %v8107_v6 = vrot.slane %v8105_v18, 4  ;;  %v8108_v26 = vrot.slane %v12276_v54, 5 }
 0x2b2   :  { %v10360_v24 = vcombine.low %v8085_v28, %v8088_v51 }
 0x2b3   :  { %11337 = vmatmul.mubr.msk.bf16.gmra.mrb[8].mxu0 %vm985_vm4, %v10355_v40  ;;  %v10296_v40 = vld [vmem:[%s16311_s0 + $0x9c] sm:$0xe]  ;;  %v8109_v51 = vsel %vm13327_vm7, %v8107_v6, %v8108_v26  ;;  %v10303_v6 = vld [vmem:[%s16311_s0 + $0x108] sm:$0xe] }
 0x2b4   :  { %11340 = vmatprep.mubr.msk.bf16.mxu0 %vm985_vm4, %v10356_v43  ;;  %v12271_v43 = vld [vmem:[%s16311_s0 + $0xac] sm:$0xf]  ;;  %v10328_v63 = vrot.slane %v10296_v40, 9  ;;  %v12278_v40 = vld [vmem:[%s16311_s0 + $0xd0] sm:$0xf] }
 0x2b5   :  { %v8098_v59 = vrot.slane %v12271_v43, 5  ;;  %v8119_v43 = vrot.slane %v12278_v40, 5  ;;  %v8143_v40 = vrot.slane %v15094_v35, 5  ;;  %v10304_v35 = vld [vmem:[%s16311_s0 + $0x114] sm:$0xe] }
 0x2b6   :  { %v8092_v21 = vsel %vm13327_vm7, %v10328_v63, %v8091_v32  ;;  %v8115_v32 = vrot.slane %v12277_v16, 5  ;;  %v12284_v16 = vld [vmem:[%s16311_s0 + $0x104] sm:$0x1] }
 0x2b7   :  { %v8100_v36 = vrot.slane %v8098_v59, 4  ;;  %v8099_v30 = vsel %vm13327_vm7, %v10329_v14, %v8098_v59  ;;  %v10361_v2 = vcombine.low %v8092_v21, %v8095_v3  ;;  %v10333_v21 = vrot.slane %v10301_v11, 9  ;;  %v10305_v11 = vld [vmem:[%s16311_s0 + $0x120] sm:$0xe] }
 0x2b9   :  { %v8102_v37 = vsel %vm13327_vm7, %v8100_v36, %v8101_v15  ;;  %v8121_v36 = vrot.slane %v8119_v43, 4  ;;  %v8122_v15 = vrot.slane %v12280_v1, 5  ;;  %v10337_v1 = vrot.slane %v10305_v11, 9  ;;  %v10310_v11 = vld [vmem:[%s16311_s0 + $0x15c] sm:$0xe] }
 0x2ba   :  { %v10362_v58 = vcombine.low %v8099_v30, %v8102_v37 }
 0x2bb   :  { %11341 = vmatmul.mubr.msk.bf16.gmra.mrb[12].mxu0 %vm985_vm4, %v10357_v33  ;;  %v10298_v33 = vld [vmem:[%s16311_s0 + $0xb4] sm:$0xe]  ;;  %v8123_v37 = vsel %vm13327_vm7, %v8121_v36, %v8122_v15  ;;  %v8150_v36 = vrot.slane %v15143_v56, 5 }
 0x2bc   :  { %11344 = vmatprep.mubr.msk.bf16.mxu0 %vm985_vm4, %v10358_v9  ;;  %v12275_v9 = vld [vmem:[%s16311_s0 + $0xc4] sm:$0xf]  ;;  %v10330_v38 = vrot.slane %v10298_v33, 9  ;;  %v12282_v33 = vld [vmem:[%s16311_s0 + $0x100] sm:$0xf] }
 0x2bd   :  { %v8112_v42 = vrot.slane %v12275_v9, 5  ;;  %v8133_v9 = vrot.slane %v12282_v33, 5 }
 0x2be   :  { %v8106_v28 = vsel %vm13327_vm7, %v10330_v38, %v8105_v18  ;;  %v8129_v18 = vrot.slane %v12281_v61, 5  ;;  %v8161_v61 = vrot.slane %v15166_v62, 5 }
 0x2bf   :  { %v8114_v23 = vrot.slane %v8112_v42, 4  ;;  %v8113_v59 = vsel %vm13327_vm7, %v10331_v7, %v8112_v42  ;;  %v10363_v34 = vcombine.low %v8106_v28, %v8109_v51  ;;  %v10335_v28 = vrot.slane %v10303_v6, 9 }
 0x2c0   :  { %v8163_v62 = vrot.slane %v8161_v61, 4 }
 0x2c1   :  { %v8116_v13 = vsel %vm13327_vm7, %v8114_v23, %v8115_v32  ;;  %v8135_v23 = vrot.slane %v8133_v9, 4  ;;  %v8136_v32 = vrot.slane %v12284_v16, 5 }
 0x2c2   :  { %v10364_v29 = vcombine.low %v8113_v59, %v8116_v13  ;;  %v8147_v13 = vrot.slane %v15103_v50, 5 }
 0x2c3   :  { %11345 = vmatmul.mubr.msk.bf16.gmra.mrb[16].mxu0 %vm985_vm4, %v10359_v19  ;;  %v10300_v19 = vld [vmem:[%s16311_s0 + $0xcc] sm:$0xe]  ;;  %v8137_v59 = vsel %vm13327_vm7, %v8135_v23, %v8136_v32  ;;  %v10309_v23 = vld [vmem:[%s16311_s0 + $0x150] sm:$0xe] }
 0x2c4   :  { %11348 = vmatprep.mubr.msk.bf16.mxu0 %vm985_vm4, %v10360_v24  ;;  %v12279_v24 = vld [vmem:[%s16311_s0 + $0xf4] sm:$0xf]  ;;  %v10332_v14 = vrot.slane %v10300_v19, 9  ;;  %v8149_v50 = vrot.slane %v8147_v13, 4 }
 0x2c5   :  { %v8126_v63 = vrot.slane %v12279_v24, 5 }
 0x2c6   :  { %v8120_v30 = vsel %vm13327_vm7, %v10332_v14, %v8119_v43  ;;  %v10336_v14 = vrot.slane %v10304_v35, 9 }
 0x2c7   :  { %v8128_v3 = vrot.slane %v8126_v63, 4  ;;  %v8127_v42 = vsel %vm13327_vm7, %v10333_v21, %v8126_v63  ;;  %v10365_v54 = vcombine.low %v8120_v30, %v8123_v37  ;;  %v8154_v63 = vrot.slane %v15129_v44, 5  ;;  %v10307_v37 = vld [vmem:[%s16311_s0 + $0x138] sm:$0xe] }
 0x2c8   :  { %v8157_v21 = vrot.slane %v15161_v57, 5  ;;  %v8148_v44 = vsel %vm13327_vm7, %v10336_v14, %v8147_v13  ;;  %v10306_v57 = vld [vmem:[%s16311_s0 + $0x12c] sm:$0xe]  ;;  %v8168_v30 = vrot.slane %v15188_v48, 5 }
 0x2c9   :  { %v8130_v41 = vsel %vm13327_vm7, %v8128_v3, %v8129_v18  ;;  %v8156_v15 = vrot.slane %v8154_v63, 4  ;;  %v8151_v3 = vsel %vm13327_vm7, %v8149_v50, %v8150_v36  ;;  %v8155_v18 = vsel %vm13327_vm7, %v10337_v1, %v8154_v63 }
 0x2ca   :  { %v10366_v26 = vcombine.low %v8127_v42, %v8130_v41  ;;  %v10369_v33 = vcombine.low %v8148_v44, %v8151_v3  ;;  %v10338_v42 = vrot.slane %v10306_v57, 9  ;;  %v8164_v41 = vrot.slane %v15201_v46, 5 }
 0x2cb   :  { %11349 = vmatmul.mubr.msk.bf16.gmra.mrb[20].mxu0 %vm985_vm4, %v10361_v2  ;;  %v10302_v2 = vld [vmem:[%s16311_s0 + $0xfc] sm:$0xe]  ;;  %v8158_v56 = vsel %vm13327_vm7, %v8156_v15, %v8157_v21  ;;  %v10342_v36 = vrot.slane %v10310_v11, 9  ;;  %v8192_v15 = vrot.slane %v15327_v17, 5  ;;  %v8199_v3 = vrot.slane %v15374_v47, 5 }
 0x2cc   :  { %11352 = vmatprep.mubr.msk.bf16.mxu0 %vm985_vm4, %v10362_v58  ;;  %v12283_v58 = vld [vmem:[%s16311_s0 + $0x10c] sm:$0xf]  ;;  %v10334_v7 = vrot.slane %v10302_v2, 9  ;;  %v10339_v2 = vrot.slane %v10307_v37, 9  ;;  %v8162_v48 = vsel %vm13327_vm7, %v10338_v42, %v8161_v61  ;;  %v8165_v6 = vsel %vm13327_vm7, %v8163_v62, %v8164_v41  ;;  %v10312_v37 = vld [vmem:[%s16311_s0 + $0x174] sm:$0xe] }
 0x2cd   :  { %v8140_v38 = vrot.slane %v12283_v58, 5  ;;  %v8170_v58 = vrot.slane %v8168_v30, 4  ;;  %v10371_v16 = vcombine.low %v8162_v48, %v8165_v6  ;;  %v8203_v17 = vrot.slane %v15354_v39, 5  ;;  %v10313_v39 = vld [vmem:[%s16311_s0 + $0x180] sm:$0xe] }
 0x2ce   :  { %v8134_v43 = vsel %vm13327_vm7, %v10334_v7, %v8133_v9  ;;  %v10370_v9 = vcombine.low %v8155_v18, %v8158_v56  ;;  %v8182_v7 = vrot.slane %v15254_v4, 5  ;;  %v10344_v41 = vrot.slane %v10312_v37, 9 }
 0x2cf   :  { %v8142_v51 = vrot.slane %v8140_v38, 4  ;;  %v8141_v19 = vsel %vm13327_vm7, %v10335_v28, %v8140_v38  ;;  %v8171_v38 = vrot.slane %v15230_v20, 5  ;;  %v10308_v20 = vld [vmem:[%s16311_s0 + $0x144] sm:$0xe]  ;;  %v8213_v6 = vrot.slane %v15410_v5, 5 }
 0x2d0   :  { %v10340_v28 = vrot.slane %v10308_v20, 9 }
 0x2d1   :  { %v8144_v24 = vsel %vm13327_vm7, %v8142_v51, %v8143_v40  ;;  %v8172_v46 = vsel %vm13327_vm7, %v8170_v58, %v8171_v38  ;;  %v8178_v51 = vrot.slane %v15279_v27, 5  ;;  %v10341_v40 = vrot.slane %v10309_v23, 9  ;;  %v10314_v23 = vld [vmem:[%s16311_s0 + $0x18c] sm:$0xe] }
 0x2d2   :  { %v8189_v27 = vrot.slane %v15273_v60, 5  ;;  %v10311_v60 = vld [vmem:[%s16311_s0 + $0x168] sm:$0xe]  ;;  %v8206_v58 = vrot.slane %v15400_v12, 5  ;;  %v10345_v38 = vrot.slane %v10313_v39, 9  ;;  %v8217_v12 = vrot.slane %v15419_v22, 5 }
 0x2d3   :  { %11353 = vmatmul.mubr.msk.bf16.gmra.mrb[24].mxu0 %vm985_vm4, %v10363_v34  ;;  %v10367_v34 = vcombine.low %v8134_v43, %v8137_v59  ;;  %v8184_v43 = vrot.slane %v8182_v7, 4  ;;  %v8185_v59 = vrot.slane %v15309_v55, 5  ;;  %v8183_v55 = vsel %vm13327_vm7, %v10341_v40, %v8182_v7  ;;  %v10315_v22 = vld [vmem:[%s16311_s0 + $0x198] sm:$0xe] }
 0x2d4   :  { %11356 = vmatprep.mubr.msk.bf16.mxu0 %vm985_vm4, %v10364_v29  ;;  %v10368_v29 = vcombine.low %v8141_v19, %v8144_v24  ;;  %v8191_v1 = vrot.slane %v8189_v27, 4  ;;  %v10343_v21 = vrot.slane %v10311_v60, 9  ;;  %v8190_v18 = vsel %vm13327_vm7, %v10342_v36, %v8189_v27  ;;  %v10316_v60 = vld [vmem:[%s16311_s0 + $0x1a4] sm:$0xe]  ;;  %s12311_s0 = smov [#allocation2]  }
 0x2d5   :  { %v8186_v63 = vsel %vm13327_vm7, %v8184_v43, %v8185_v59  ;;  %v8219_v40 = vrot.slane %v8217_v12, 4  ;;  %v8220_v43 = vrot.slane %v15453_v52, 5  ;;  %v10347_v59 = vrot.slane %v10315_v22, 9  ;;  %s9342_s12 = sshll.u32 %s12311_s0, 4  ;;  %s9343_s12 = int_to_ptr.vmem [resolvable:$true] %s9342_s12 }
 0x2d6   :  { %v10374_v50 = vcombine.low %v8183_v55, %v8186_v63  ;;  %v8193_v56 = vsel %vm13327_vm7, %v8191_v1, %v8192_v15  ;;  %v8231_v52 = vrot.slane %v15463_v31, 5  ;;  %v10348_v1 = vrot.slane %v10316_v60, 9  ;;  %p12290_p1 = scmp.lt.s32.totalorder %s9343_s12, %s9343_s12 }
 0x2d7   :  { %v10375_v42 = vcombine.low %v8190_v18, %v8193_v56  ;;  %v8221_v63 = vsel %vm13327_vm7, %v8219_v40, %v8220_v43  ;;  %v8234_v31 = vrot.slane %v15497_v0, 5  ;;  %v16316_v0 = vmov 0.0  }
 0x2d8   :  { %v8233_v15 = vrot.slane %v8231_v52, 4  ;;  %11392 = vmatprep.subr.bf16.mxu1 %v16316_v0 }
 0x2da   :  { %v8235_v18 = vsel %vm13327_vm7, %v8233_v15, %v8234_v31 }
 0x2db   :  { %11357 = vmatmul.mubr.msk.bf16.gmra.mrb[28].mxu0 %vm985_vm4, %v10365_v54  ;;  %v8175_v54 = vrot.slane %v15224_v25, 5 }
 0x2dc   :  { %11360 = vmatprep.mubr.msk.bf16.mxu0 %vm985_vm4, %v10366_v26  ;;  %v8169_v26 = vsel %vm13327_vm7, %v10339_v2, %v8168_v30  ;;  %v8205_v2 = vrot.slane %v8203_v17, 4 }
 0x2dd   :  { %v10372_v32 = vcombine.low %v8169_v26, %v8172_v46  ;;  %v8177_v25 = vrot.slane %v8175_v54, 4  ;;  %v8176_v4 = vsel %vm13327_vm7, %v10340_v28, %v8175_v54  ;;  %v8204_v26 = vsel %vm13327_vm7, %v10344_v41, %v8203_v17 }
 0x2de   :  { %v8207_v46 = vsel %vm13327_vm7, %v8205_v2, %v8206_v58  ;;  %v12073_v58 = vld [vmem:[%s16313_s2 + $0x8] sm:$0xff]  }
 0x2df   :  { %v8179_v24 = vsel %vm13327_vm7, %v8177_v25, %v8178_v51  ;;  %v10377_v28 = vcombine.low %v8204_v26, %v8207_v46  ;;  %v10346_v51 = vrot.slane %v10314_v23, 9 }
 0x2e0   :  { %v10373_v14 = vcombine.low %v8176_v4, %v8179_v24  ;;  %v8227_v24 = vrot.slane %v15474_v49, 5 }
 0x2e1   :  { %v8218_v55 = vsel %vm13327_vm7, %v10346_v51, %v8217_v12 }
 0x2e3   :  { %11361 = vmatmul.mubr.msk.bf16.gmra.mrb[32].mxu0 %vm985_vm4, %v10367_v34  ;;  %v8196_v34 = vrot.slane %v15320_v8, 5 }
 0x2e4   :  { %11364 = vmatprep.mubr.msk.bf16.mxu0 %vm985_vm4, %v10368_v29 }
 0x2e5   :  { %v8198_v44 = vrot.slane %v8196_v34, 4  ;;  %v8197_v47 = vsel %vm13327_vm7, %v10343_v21, %v8196_v34 }
 0x2e7   :  { %v8200_v30 = vsel %vm13327_vm7, %v8198_v44, %v8199_v3  ;;  %v8232_v3 = vsel %vm13327_vm7, %v10348_v1, %v8231_v52  ;;  %v12075_v52 = vld [vmem:[%s16313_s2 + $0x18] sm:$0xff]  }
 0x2e8   :  { %v10376_v62 = vcombine.low %v8197_v47, %v8200_v30  ;;  %v10381_v47 = vcombine.low %v8232_v3, %v8235_v18  ;;  %v12072_v30 = vld [vmem:[%s16313_s2] sm:$0xff]  }
 0x2e9   :  { %11393 = vmatpush3.bf16.msra.mxu1 %v12072_v30 }
 0x2ea   :  { %11394 = vmatprep.subr.bf16.mxu1 %v16316_v0 }
 0x2eb   :  { %11365 = vmatmul.mubr.msk.bf16.gmra.mrb[36].mxu0 %vm985_vm4, %v10369_v33  ;;  %v8210_v33 = vrot.slane %v15365_v45, 5 }
 0x2ec   :  { %11368 = vmatprep.mubr.msk.bf16.mxu0 %vm985_vm4, %v10370_v9 }
 0x2ed   :  { %v8212_v48 = vrot.slane %v8210_v33, 4  ;;  %v8211_v5 = vsel %vm13327_vm7, %v10345_v38, %v8210_v33  ;;  %11395 = vmatpush3.bf16.msra.mxu1 %v12073_v58 }
 0x2ee   :  { %11396 = vmatprep.subr.bf16.mxu1 %v16316_v0 }
 0x2ef   :  { %v8214_v7 = vsel %vm13327_vm7, %v8212_v48, %v8213_v6 }
 0x2f0   :  { %v10378_v25 = vcombine.low %v8211_v5, %v8214_v7 }
 0x2f3   :  { %11369 = vmatmul.mubr.msk.bf16.gmra.mrb[40].mxu0 %vm985_vm4, %v10371_v16  ;;  %v15842_v13 = vpop.f32.mrb[0].mxu1  ;;  %v8224_v16 = vrot.slane %v15430_v10, 5 }
 0x2f4   :  { %v15844_v19 = vpop.f32.mrb[1].mxu1  ;;  %11372 = vmatprep.mubr.msk.bf16.mxu0 %vm985_vm4, %v10372_v32 }
 0x2f5   :  { %v15852_v35 = vpop.f32.mrb[2].mxu1  ;;  %v8226_v4 = vrot.slane %v8224_v16, 4  ;;  %v8225_v49 = vsel %vm13327_vm7, %v10347_v59, %v8224_v16 }
 0x2f6   :  { %v15862_v29 = vpop.f32.mrb[3].mxu1 }
 0x2f7   :  { %v8228_v34 = vsel %vm13327_vm7, %v8226_v4, %v8227_v24  ;;  %v12074_v24 = vld [vmem:[%s16313_s2 + $0x10] sm:$0xff]  }
 0x2f8   :  { %v10380_v36 = vcombine.low %v8225_v49, %v8228_v34  ;;  %11397 = vmatpush3.bf16.msra.mxu1 %v12074_v24  ;;  %v12077_v24 = vld [vmem:[%s16313_s2 + $0x28] sm:$0xff]  }
 0x2f9   :  { %11398 = vmatprep.subr.bf16.mxu1 %v16316_v0 }
 0x2fb   :  { %11373 = vmatmul.mubr.msk.bf16.gmra.mrb[44].mxu0 %vm985_vm4, %v10373_v14  ;;  %v15870_v61 = vpop.f32.mrb[4].mxu1 }
 0x2fc   :  { %v15872_v8 = vpop.f32.mrb[5].mxu1  ;;  %11376 = vmatprep.mubr.msk.bf16.mxu0 %vm985_vm4, %v10374_v50  ;;  %v10379_v50 = vcombine.low %v8218_v55, %v8221_v63  ;;  %11399 = vmatpush3.bf16.msra.mxu1 %v12075_v52 }
 0x2fd   :  { %v15880_v57 = vpop.f32.mrb[6].mxu1  ;;  %11400 = vmatprep.subr.bf16.mxu1 %v16316_v0 }
 0x2fe   :  { %v15890_v9 = vpop.f32.mrb[7].mxu1 }
 0x303   :  { %11377 = vmatmul.mubr.msk.bf16.gmra.mrb[48].mxu0 %vm985_vm4, %v10375_v42  ;;  %v15898_v54 = vpop.f32.mrb[8].mxu1 }
 0x304   :  { %v15900_v45 = vpop.f32.mrb[9].mxu1  ;;  %11380 = vmatprep.mubr.msk.bf16.mxu0 %vm985_vm4, %v10376_v62 }
 0x305   :  { %v15908_v20 = vpop.f32.mrb[10].mxu1 }
 0x306   :  { %v15918_v32 = vpop.f32.mrb[11].mxu1 }
 0x30b   :  { %11381 = vmatmul.mubr.msk.bf16.gmra.mrb[52].mxu0 %vm985_vm4, %v10377_v28  ;;  %v15926_v27 = vpop.f32.mrb[12].mxu1 }
 0x30c   :  { %v15928_v10 = vpop.f32.mrb[13].mxu1  ;;  %11384 = vmatprep.mubr.msk.bf16.mxu0 %vm985_vm4, %v10378_v25 }
 0x30d   :  { %v15936_v11 = vpop.f32.mrb[14].mxu1 }
 0x30e   :  { %v15945_v14 = vpop.f32.mrb[15].mxu1 }
 0x313   :  { %11385 = vmatmul.mubr.msk.bf16.gmra.mrb[56].mxu0 %vm985_vm4, %v10379_v50  ;;  %v15949_v21 = vpop.f32.mrb[16].mxu1 }
 0x314   :  { %v15951_v44 = vpop.f32.mrb[17].mxu1  ;;  %11388 = vmatprep.mubr.msk.bf16.mxu0 %vm985_vm4, %v10380_v36  ;;  %v12076_v36 = vld [vmem:[%s16313_s2 + $0x20] sm:$0xff]  }
 0x315   :  { %v15958_v56 = vpop.f32.mrb[18].mxu1  ;;  %11401 = vmatpush3.bf16.msra.mxu1 %v12076_v36 }
 0x316   :  { %v15960_v17 = vpop.f32.mrb[19].mxu1  ;;  %11402 = vmatprep.subr.bf16.mxu1 %v16316_v0 }
 0x319   :  { %11403 = vmatpush3.bf16.msra.mxu1 %v12077_v24 }
 0x31b   :  { %11389 = vmatmul.mubr.msk.bf16.gmra.mrb[60].mxu0 %vm985_vm4, %v10381_v47  ;;  %v15967_v37 = vpop.f32.mrb[20].mxu1 }
 0x31c   :  { %v15969_v33 = vpop.f32.mrb[21].mxu1 }
 0x31d   :  { %v15971_v53 = vpop.f32.mrb[22].mxu1 }
 0x31e   :  { %v15974_v39 = vpop.f32.mrb[23].mxu1 }
 0x323   :  { %v15976_v42 = vpop.f32.mrb[24].mxu1 }
 0x324   :  { %v15978_v62 = vpop.f32.mrb[25].mxu1 }
 0x325   :  { %v15980_v41 = vpop.f32.mrb[26].mxu1 }
 0x326   :  { %v15982_v2 = vpop.f32.mrb[27].mxu1 }
 0x32b   :  { %v15987_v38 = vpop.f32.mrb[28].mxu1 }
 0x32c   :  { %v15989_v48 = vpop.f32.mrb[29].mxu1 }
 0x32d   :  { %v15991_v6 = vpop.f32.mrb[30].mxu1 }
 0x32e   :  { %v15994_v26 = vpop.f32.mrb[31].mxu1 }
 0x333   :  { %v15996_v46 = vpop.f32.mrb[32].mxu1 }
 0x334   :  { %v15998_v12 = vpop.f32.mrb[33].mxu1 }
 0x335   :  { %v16000_v5 = vpop.f32.mrb[34].mxu1 }
 0x336   :  { %v16002_v7 = vpop.f32.mrb[35].mxu1 }
 0x33b   :  { %v16004_v23 = vpop.f32.mrb[36].mxu1 }
 0x33c   :  { %v16006_v16 = vpop.f32.mrb[37].mxu1 }
 0x33d   :  { %v16008_v22 = vpop.f32.mrb[38].mxu1 }
 0x33e   :  { %v16010_v28 = vpop.f32.mrb[39].mxu1 }
 0x343   :  { %v16012_v25 = vpop.f32.mrb[40].mxu1 }
 0x344   :  { %v16014_v51 = vpop.f32.mrb[41].mxu1 }
 0x345   :  { %v16016_v40 = vpop.f32.mrb[42].mxu1 }
 0x346   :  { %v16018_v43 = vpop.f32.mrb[43].mxu1 }
 0x34b   :  { %v16020_v59 = vpop.f32.mrb[44].mxu1 }
 0x34c   :  { %v16022_v4 = vpop.f32.mrb[45].mxu1 }
 0x34d   :  { %v16027_v55 = vpop.f32.mrb[46].mxu1 }
 0x34e   :  { %16322 = vst [vmem:[#allocation5_spill] sm:$0xff] %v16027_v55  ;;  %v16029_v63 = vpop.f32.mrb[47].mxu1 }
 0x34f   :  { %16323 = vst [vmem:[#allocation6_spill] sm:$0xff] %v16029_v63 }
 0x353   :  { %v16035_v49 = vpop.f32.mrb[48].mxu1 }
 0x354   :  { %16324 = vst [vmem:[#allocation7_spill] sm:$0xff] %v16035_v49  ;;  %v16038_v34 = vpop.f32.mrb[49].mxu1 }
 0x355   :  { %16325 = vst [vmem:[#allocation8_spill] sm:$0xff] %v16038_v34  ;;  %v16040_v60 = vpop.f32.mrb[50].mxu1 }
 0x356   :  { %16326 = vst [vmem:[#allocation9_spill] sm:$0xff] %v16040_v60  ;;  %v16042_v50 = vpop.f32.mrb[51].mxu1 }
 0x357   :  { %16327 = vst [vmem:[#allocation10_spill] sm:$0xff] %v16042_v50 }
 0x35b   :  { %v16047_v1 = vpop.f32.mrb[52].mxu1 }
 0x35c   :  { %16328 = vst [vmem:[#allocation11_spill] sm:$0xff] %v16047_v1  ;;  %v16049_v15 = vpop.f32.mrb[53].mxu1 }
 0x35d   :  { %16329 = vst [vmem:[#allocation12_spill] sm:$0xff] %v16049_v15  ;;  %v16051_v31 = vpop.f32.mrb[54].mxu1 }
 0x35e   :  { %16330 = vst [vmem:[#allocation13_spill] sm:$0xff] %v16051_v31  ;;  %v16054_v3 = vpop.f32.mrb[55].mxu1 }
 0x35f   :  { %16331 = vst [vmem:[#allocation14_spill] sm:$0xff] %v16054_v3  ;;  %v16339_v3 = vmov 0.0  }
 0x360   :  { %11404 = vmatprep.subr.bf16.mxu1 %v16339_v3  ;;  %11408 = vmatprep.mubr.msk.bf16.mxu1 %vm12310_vm8, %v16339_v3 }
 0x363   :  { %v16056_v18 = vpop.f32.mrb[56].mxu1 }
 0x364   :  { %16332 = vst [vmem:[#allocation15_spill] sm:$0xff] %v16056_v18  ;;  %v16058_v47 = vpop.f32.mrb[57].mxu1 }
 0x365   :  { %16333 = vst [vmem:[#allocation16_spill] sm:$0xff] %v16058_v47  ;;  %v16060_v30 = vpop.f32.mrb[58].mxu1 }
 0x366   :  { %16334 = vst [vmem:[#allocation17_spill] sm:$0xff] %v16060_v30  ;;  %v16062_v58 = vpop.f32.mrb[59].mxu1 }
 0x367   :  { %16335 = vst [vmem:[#allocation18_spill] sm:$0xff] %v16062_v58  ;;  %v16080_v58 = vld [vmem:[%s16314_s3] ss:$0 sm:$0xff] }
 0x36b   :  { %v16067_v52 = vpop.f32.mrb[60].mxu1 }
 0x36c   :  { %16336 = vst [vmem:[#allocation19_spill] sm:$0xff] %v16067_v52  ;;  %v16069_v36 = vpop.f32.mrb[61].mxu1 }
 0x36d   :  { %16337 = vst [vmem:[#allocation20_spill] sm:$0xff] %v16069_v36  ;;  %v16071_v0 = vpop.f32.mrb[62].mxu1 }
 0x36e   :  { %16338 = vst [vmem:[#allocation21_spill] sm:$0xff] %v16071_v0  ;;  %v16074_v18 = vpop.f32.mrb[63].mxu1 }
 0x36f   :  { %16340 = vst [vmem:[#allocation22_spill] sm:$0xff] %v16074_v18 }
 0x376   :  { %v11330_v47 = vpop.f32.mrb[0].mxu0 }
 0x377   :  { %v11452_v30 = vadd.f32 %v11330_v47, %v15842_v13  ;;  %v8467_v31 = vpop.f32.mrb[1].mxu0 }
 0x378   :  { %v11453_v52 = vadd.f32 %v8467_v31, %v15844_v19  ;;  %v11331_v15 = vpop.f32.mrb[2].mxu0 }
 0x379   :  { %v11454_v24 = vadd.f32 %v11331_v15, %v15852_v35  ;;  %v8470_v36 = vpop.f32.mrb[3].mxu0  ;;  %v8793_v18 = vadd.f32 %v11452_v30, %v16080_v58 }
 0x37a   :  { %v8791_v0 = vadd.f32 %v11453_v52, %v16080_v58  ;;  %v11455_v1 = vadd.f32 %v8470_v36, %v15862_v29 }
 0x37b   :  { %v8794_v50 = vadd.f32 %v11454_v24, %v16080_v58  ;;  %v8857_v31 = vmax.f32 %v8793_v18, 0.0 }
 0x37c   :  { %v8792_v13 = vadd.f32 %v11455_v1, %v16080_v58  ;;  %v8855_v47 = vmax.f32 %v8791_v0, 0.0 }
 0x37d   :  { %v8858_v36 = vmax.f32 %v8794_v50, 0.0 }
 0x37e   :  { %v8856_v60 = vmax.f32 %v8792_v13, 0.0  ;;  %v11334_v34 = vpop.f32.mrb[4].mxu0 }
 0x37f   :  { %v11456_v49 = vadd.f32 %v11334_v34, %v15870_v61  ;;  %v8483_v19 = vpop.f32.mrb[5].mxu0 }
 0x380   :  { %v8919_v63 = vadd.f32 %v8856_v60, %v8855_v47  ;;  %v11457_v35 = vadd.f32 %v8483_v19, %v15872_v8  ;;  %v11335_v15 = vpop.f32.mrb[6].mxu0 }
 0x381   :  { %v11458_v52 = vadd.f32 %v11335_v15, %v15880_v57  ;;  %v8486_v29 = vpop.f32.mrb[7].mxu0  ;;  %v8797_v24 = vadd.f32 %v11456_v49, %v16080_v58 }
 0x382   :  { %v8920_v30 = vadd.f32 %v8919_v63, %v8857_v31  ;;  %v8795_v1 = vadd.f32 %v11457_v35, %v16080_v58  ;;  %v11459_v0 = vadd.f32 %v8486_v29, %v15890_v9  ;;  %v12078_v9 = vld [vmem:[%s16313_s2 + $0x30] sm:$0xff]  }
 0x383   :  { %v8798_v60 = vadd.f32 %v11458_v52, %v16080_v58  ;;  %v8861_v50 = vmax.f32 %v8797_v24, 0.0  ;;  %11405 = vmatpush3.bf16.msra.mxu1 %v12078_v9 }
 0x384   :  { %v8859_v13 = vmax.f32 %v8795_v1, 0.0  ;;  %v8921_v55 = vadd.f32 %v8920_v30, %v8858_v36  ;;  %v8796_v61 = vadd.f32 %v11459_v0, %v16080_v58  ;;  %11406 = vmatprep.subr.bf16.mxu1 %v16339_v3 }
 0x386   :  { %v8922_v34 = vadd.f32 %v8921_v55, %v8859_v13  ;;  %v8860_v8 = vmax.f32 %v8796_v61, 0.0  ;;  %v11338_v18 = vpop.f32.mrb[8].mxu0  ;;  %v8862_v55 = vmax.f32 %v8798_v60, 0.0 }
 0x387   :  { %v11460_v57 = vadd.f32 %v11338_v18, %v15898_v54  ;;  %v8499_v47 = vpop.f32.mrb[9].mxu0 }
 0x388   :  { %v8923_v63 = vadd.f32 %v8922_v34, %v8860_v8  ;;  %v11461_v19 = vadd.f32 %v8499_v47, %v15900_v45  ;;  %v11339_v31 = vpop.f32.mrb[10].mxu0 }
 0x389   :  { %v11462_v49 = vadd.f32 %v11339_v31, %v15908_v20  ;;  %v8502_v35 = vpop.f32.mrb[11].mxu0  ;;  %v8801_v54 = vadd.f32 %v11460_v57, %v16080_v58  ;;  %v12079_v20 = vld [vmem:[%s16313_s2 + $0x38] sm:$0xff]  }
 0x38a   :  { %v8924_v15 = vadd.f32 %v8923_v63, %v8861_v50  ;;  %v8799_v52 = vadd.f32 %v11461_v19, %v16080_v58  ;;  %v11463_v29 = vadd.f32 %v8502_v35, %v15918_v32  ;;  %11407 = vmatpush3.bf16.msra.mxu1 %v12079_v20 }
 0x38b   :  { %v8802_v32 = vadd.f32 %v11462_v49, %v16080_v58  ;;  %11412 = vmatprep.subr.bf16.mxu1 %v16339_v3  ;;  %v8865_v34 = vmax.f32 %v8801_v54, 0.0 }
 0x38c   :  { %v8863_v45 = vmax.f32 %v8799_v52, 0.0  ;;  %v8925_v36 = vadd.f32 %v8924_v15, %v8862_v55  ;;  %v8800_v30 = vadd.f32 %v11463_v29, %v16080_v58 }
 0x38d   :  { %v8866_v50 = vmax.f32 %v8802_v32, 0.0 }
 0x38e   :  { %v8926_v1 = vadd.f32 %v8925_v36, %v8863_v45  ;;  %v8864_v0 = vmax.f32 %v8800_v30, 0.0  ;;  %v11342_v24 = vpop.f32.mrb[12].mxu0 }
 0x38f   :  { %v11464_v13 = vadd.f32 %v11342_v24, %v15926_v27  ;;  %v8515_v61 = vpop.f32.mrb[13].mxu0 }
 0x390   :  { %v8927_v60 = vadd.f32 %v8926_v1, %v8864_v0  ;;  %v11465_v8 = vadd.f32 %v8515_v61, %v15928_v10  ;;  %v11343_v18 = vpop.f32.mrb[14].mxu0 }
 0x391   :  { %v11466_v57 = vadd.f32 %v11343_v18, %v15936_v11  ;;  %v8518_v47 = vpop.f32.mrb[15].mxu0  ;;  %v8805_v9 = vadd.f32 %v11464_v13, %v16080_v58 }
 0x392   :  { %v8928_v63 = vadd.f32 %v8927_v60, %v8865_v34  ;;  %v8803_v19 = vadd.f32 %v11465_v8, %v16080_v58  ;;  %v11467_v31 = vadd.f32 %v8518_v47, %v15945_v14 }
 0x393   :  { %v8806_v15 = vadd.f32 %v11466_v57, %v16080_v58  ;;  %v8869_v54 = vmax.f32 %v8805_v9, 0.0 }
 0x394   :  { %v8867_v27 = vmax.f32 %v8803_v19, 0.0  ;;  %v8929_v49 = vadd.f32 %v8928_v63, %v8866_v50  ;;  %v8804_v35 = vadd.f32 %v11467_v31, %v16080_v58 }
 0x395   :  { %v8870_v1 = vmax.f32 %v8806_v15, 0.0 }
 0x396   :  { %v8930_v55 = vadd.f32 %v8929_v49, %v8867_v27  ;;  %v8868_v10 = vmax.f32 %v8804_v35, 0.0  ;;  %v11346_v52 = vpop.f32.mrb[16].mxu0 }
 0x397   :  { %v11468_v11 = vadd.f32 %v11346_v52, %v15949_v21  ;;  %v8531_v29 = vpop.f32.mrb[17].mxu0 }
 0x398   :  { %v8931_v45 = vadd.f32 %v8930_v55, %v8868_v10  ;;  %v11469_v36 = vadd.f32 %v8531_v29, %v15951_v44  ;;  %v11347_v30 = vpop.f32.mrb[18].mxu0 }
 0x399   :  { %v11470_v14 = vadd.f32 %v11347_v30, %v15958_v56  ;;  %v8534_v20 = vpop.f32.mrb[19].mxu0  ;;  %v8809_v13 = vadd.f32 %v11468_v11, %v16080_v58 }
 0x39a   :  { %v8932_v32 = vadd.f32 %v8931_v45, %v8869_v54  ;;  %v8807_v0 = vadd.f32 %v11469_v36, %v16080_v58  ;;  %v11471_v24 = vadd.f32 %v8534_v20, %v15960_v17 }
 0x39b   :  { %v8810_v8 = vadd.f32 %v11470_v14, %v16080_v58  ;;  %v8873_v47 = vmax.f32 %v8809_v13, 0.0 }
 0x39c   :  { %v8871_v61 = vmax.f32 %v8807_v0, 0.0  ;;  %v8933_v34 = vadd.f32 %v8932_v32, %v8870_v1  ;;  %v8808_v21 = vadd.f32 %v11471_v24, %v16080_v58 }
 0x39d   :  { %v8874_v9 = vmax.f32 %v8810_v8, 0.0 }
 0x39e   :  { %v8934_v60 = vadd.f32 %v8933_v34, %v8871_v61  ;;  %v8872_v44 = vmax.f32 %v8808_v21, 0.0  ;;  %v11350_v18 = vpop.f32.mrb[20].mxu0 }
 0x39f   :  { %v11472_v56 = vadd.f32 %v11350_v18, %v15967_v37  ;;  %v8547_v57 = vpop.f32.mrb[21].mxu0 }
 0x3a0   :  { %v8935_v50 = vadd.f32 %v8934_v60, %v8872_v44  ;;  %v11473_v63 = vadd.f32 %v8547_v57, %v15969_v33  ;;  %v11351_v19 = vpop.f32.mrb[22].mxu0 }
 0x3a1   :  { %v11474_v17 = vadd.f32 %v11351_v19, %v15971_v53  ;;  %v8550_v31 = vpop.f32.mrb[23].mxu0  ;;  %v8813_v55 = vadd.f32 %v11472_v56, %v16080_v58 }
 0x3a2   :  { %v8936_v27 = vadd.f32 %v8935_v50, %v8873_v47  ;;  %v8811_v49 = vadd.f32 %v11473_v63, %v16080_v58  ;;  %v11475_v35 = vadd.f32 %v8550_v31, %v15974_v39 }
 0x3a3   :  { %v8814_v11 = vadd.f32 %v11474_v17, %v16080_v58  ;;  %v8877_v45 = vmax.f32 %v8813_v55, 0.0 }
 0x3a4   :  { %v8875_v15 = vmax.f32 %v8811_v49, 0.0  ;;  %v8937_v10 = vadd.f32 %v8936_v27, %v8874_v9  ;;  %v8812_v37 = vadd.f32 %v11475_v35, %v16080_v58 }
 0x3a5   :  { %v8878_v1 = vmax.f32 %v8814_v11, 0.0 }
 0x3a6   :  { %v8938_v52 = vadd.f32 %v8937_v10, %v8875_v15  ;;  %v8876_v33 = vmax.f32 %v8812_v37, 0.0  ;;  %v11354_v29 = vpop.f32.mrb[24].mxu0 }
 0x3a7   :  { %v11476_v53 = vadd.f32 %v11354_v29, %v15976_v42  ;;  %v8563_v54 = vpop.f32.mrb[25].mxu0 }
 0x3a8   :  { %v8939_v36 = vadd.f32 %v8938_v52, %v8876_v33  ;;  %v11477_v30 = vadd.f32 %v8563_v54, %v15978_v62  ;;  %v11355_v14 = vpop.f32.mrb[26].mxu0 }
 0x3a9   :  { %v11478_v39 = vadd.f32 %v11355_v14, %v15980_v41  ;;  %v8566_v20 = vpop.f32.mrb[27].mxu0  ;;  %v8817_v13 = vadd.f32 %v11476_v53, %v16080_v58 }
 0x3aa   :  { %v8940_v32 = vadd.f32 %v8939_v36, %v8877_v45  ;;  %v8815_v0 = vadd.f32 %v11477_v30, %v16080_v58  ;;  %v11479_v24 = vadd.f32 %v8566_v20, %v15982_v2 }
 0x3ab   :  { %v8818_v60 = vadd.f32 %v11478_v39, %v16080_v58  ;;  %v8881_v18 = vmax.f32 %v8817_v13, 0.0 }
 0x3ac   :  { %v8879_v61 = vmax.f32 %v8815_v0, 0.0  ;;  %v8941_v34 = vadd.f32 %v8940_v32, %v8878_v1  ;;  %v8816_v42 = vadd.f32 %v11479_v24, %v16080_v58 }
 0x3ad   :  { %v8882_v63 = vmax.f32 %v8818_v60, 0.0 }
 0x3ae   :  { %v8942_v21 = vadd.f32 %v8941_v34, %v8879_v61  ;;  %v8880_v62 = vmax.f32 %v8816_v42, 0.0  ;;  %v11358_v8 = vpop.f32.mrb[28].mxu0 }
 0x3af   :  { %v11480_v41 = vadd.f32 %v11358_v8, %v15987_v38  ;;  %v8579_v44 = vpop.f32.mrb[29].mxu0 }
 0x3b0   :  { %v8943_v56 = vadd.f32 %v8942_v21, %v8880_v62  ;;  %v11481_v57 = vadd.f32 %v8579_v44, %v15989_v48  ;;  %v11359_v47 = vpop.f32.mrb[30].mxu0 }
 0x3b1   :  { %v11482_v2 = vadd.f32 %v11359_v47, %v15991_v6  ;;  %v8582_v50 = vpop.f32.mrb[31].mxu0  ;;  %v8821_v9 = vadd.f32 %v11480_v41, %v16080_v58 }
 0x3b2   :  { %v8944_v19 = vadd.f32 %v8943_v56, %v8881_v18  ;;  %v8819_v17 = vadd.f32 %v11481_v57, %v16080_v58  ;;  %v11483_v31 = vadd.f32 %v8582_v50, %v15994_v26 }
 0x3b3   :  { %v8822_v55 = vadd.f32 %v11482_v2, %v16080_v58  ;;  %v8885_v37 = vmax.f32 %v8821_v9, 0.0 }
 0x3b4   :  { %v8883_v27 = vmax.f32 %v8819_v17, 0.0  ;;  %v8945_v49 = vadd.f32 %v8944_v19, %v8882_v63  ;;  %v8820_v38 = vadd.f32 %v11483_v31, %v16080_v58 }
 0x3b5   :  { %v8886_v53 = vmax.f32 %v8822_v55, 0.0 }
 0x3b6   :  { %v8946_v35 = vadd.f32 %v8945_v49, %v8883_v27  ;;  %v8884_v48 = vmax.f32 %v8820_v38, 0.0  ;;  %v11362_v15 = vpop.f32.mrb[32].mxu0 }
 0x3b7   :  { %v11484_v6 = vadd.f32 %v11362_v15, %v15996_v46  ;;  %v8595_v10 = vpop.f32.mrb[33].mxu0 }
 0x3b8   :  { %v8947_v52 = vadd.f32 %v8946_v35, %v8884_v48  ;;  %v11485_v11 = vadd.f32 %v8595_v10, %v15998_v12  ;;  %v11363_v33 = vpop.f32.mrb[34].mxu0 }
 0x3b9   :  { %v11486_v26 = vadd.f32 %v11363_v33, %v16000_v5  ;;  %v8598_v29 = vpop.f32.mrb[35].mxu0  ;;  %v8825_v14 = vadd.f32 %v11484_v6, %v16080_v58 }
 0x3ba   :  { %v8948_v54 = vadd.f32 %v8947_v52, %v8885_v37  ;;  %v8823_v45 = vadd.f32 %v11485_v11, %v16080_v58  ;;  %v11487_v36 = vadd.f32 %v8598_v29, %v16002_v7 }
 0x3bb   :  { %v8826_v20 = vadd.f32 %v11486_v26, %v16080_v58  ;;  %v8889_v0 = vmax.f32 %v8825_v14, 0.0 }
 0x3bc   :  { %v16160_v30 = vadd.f32 %v8948_v54, %v8886_v53  ;;  %v8824_v46 = vadd.f32 %v11487_v36, %v16080_v58  ;;  %v8887_v39 = vmax.f32 %v8823_v45, 0.0  ;;  %v16342_v36 = vld [vmem:[#allocation6_spill] sm:$0xff] }
 0x3bd   :  { %v8890_v42 = vmax.f32 %v8826_v20, 0.0 }
 0x3be   :  { %v8888_v12 = vmax.f32 %v8824_v46, 0.0  ;;  %v11366_v1 = vpop.f32.mrb[36].mxu0 }
 0x3bf   :  { %v11488_v5 = vadd.f32 %v11366_v1, %v16004_v23  ;;  %v8611_v32 = vpop.f32.mrb[37].mxu0 }
 0x3c0   :  { %v8956_v24 = vadd.f32 %v8888_v12, %v8887_v39  ;;  %v11489_v13 = vadd.f32 %v8611_v32, %v16006_v16  ;;  %v11367_v61 = vpop.f32.mrb[38].mxu0  ;;  %v16343_v32 = vld [vmem:[#allocation7_spill] sm:$0xff] }
 0x3c1   :  { %v11490_v7 = vadd.f32 %v11367_v61, %v16008_v22  ;;  %v8614_v34 = vpop.f32.mrb[39].mxu0  ;;  %v8829_v8 = vadd.f32 %v11488_v5, %v16080_v58 }
 0x3c2   :  { %v8957_v21 = vadd.f32 %v8956_v24, %v8889_v0  ;;  %v8827_v60 = vadd.f32 %v11489_v13, %v16080_v58  ;;  %v11491_v62 = vadd.f32 %v8614_v34, %v16010_v28 }
 0x3c3   :  { %v8830_v56 = vadd.f32 %v11490_v7, %v16080_v58  ;;  %v8893_v2 = vmax.f32 %v8829_v8, 0.0  ;;  %v16344_v7 = vld [vmem:[#allocation8_spill] sm:$0xff] }
 0x3c4   :  { %v8891_v41 = vmax.f32 %v8827_v60, 0.0  ;;  %v8958_v44 = vadd.f32 %v8957_v21, %v8890_v42  ;;  %v8828_v23 = vadd.f32 %v11491_v62, %v16080_v58  ;;  %v16345_v21 = vld [vmem:[#allocation9_spill] sm:$0xff] }
 0x3c5   :  { %v8894_v31 = vmax.f32 %v8830_v56, 0.0 }
 0x3c6   :  { %v8959_v18 = vadd.f32 %v8958_v44, %v8891_v41  ;;  %v8892_v16 = vmax.f32 %v8828_v23, 0.0  ;;  %v11370_v57 = vpop.f32.mrb[40].mxu0  ;;  %v16346_v23 = vld [vmem:[#allocation10_spill] sm:$0xff] }
 0x3c7   :  { %v11492_v22 = vadd.f32 %v11370_v57, %v16012_v25  ;;  %v8627_v47 = vpop.f32.mrb[41].mxu0 }
 0x3c8   :  { %v8960_v50 = vadd.f32 %v8959_v18, %v8892_v16  ;;  %v11493_v63 = vadd.f32 %v8627_v47, %v16014_v51  ;;  %v11371_v19 = vpop.f32.mrb[42].mxu0 }
 0x3c9   :  { %v11494_v28 = vadd.f32 %v11371_v19, %v16016_v40  ;;  %v8630_v17 = vpop.f32.mrb[43].mxu0  ;;  %v8833_v38 = vadd.f32 %v11492_v22, %v16080_v58  ;;  %v16347_v19 = vld [vmem:[#allocation11_spill] sm:$0xff] }
 0x3ca   :  { %v8961_v9 = vadd.f32 %v8960_v50, %v8893_v2  ;;  %v8831_v27 = vadd.f32 %v11493_v63, %v16080_v58  ;;  %v11495_v49 = vadd.f32 %v8630_v17, %v16018_v43  ;;  %v16341_v43 = vld [vmem:[#allocation5_spill] sm:$0xff] }
 0x3cb   :  { %v8834_v15 = vadd.f32 %v11494_v28, %v16080_v58  ;;  %v8897_v37 = vmax.f32 %v8833_v38, 0.0 }
 0x3cc   :  { %v8895_v35 = vmax.f32 %v8831_v27, 0.0  ;;  %v8962_v55 = vadd.f32 %v8961_v9, %v8894_v31  ;;  %v8832_v25 = vadd.f32 %v11495_v49, %v16080_v58  ;;  %v16348_v27 = vld [vmem:[#allocation12_spill] sm:$0xff] }
 0x3cd   :  { %v8898_v53 = vmax.f32 %v8834_v15, 0.0 }
 0x3ce   :  { %v8963_v48 = vadd.f32 %v8962_v55, %v8895_v35  ;;  %v8896_v51 = vmax.f32 %v8832_v25, 0.0  ;;  %v11374_v6 = vpop.f32.mrb[44].mxu0  ;;  %v16349_v35 = vld [vmem:[#allocation13_spill] sm:$0xff] }
 0x3cf   :  { %v11496_v40 = vadd.f32 %v11374_v6, %v16020_v59  ;;  %v8643_v10 = vpop.f32.mrb[45].mxu0  ;;  %v16350_v6 = vld [vmem:[#allocation14_spill] sm:$0xff] }
 0x3d0   :  { %v8964_v52 = vadd.f32 %v8963_v48, %v8896_v51  ;;  %v11497_v11 = vadd.f32 %v8643_v10, %v16022_v4  ;;  %v11375_v33 = vpop.f32.mrb[46].mxu0 }
 0x3d1   :  { %v11498_v26 = vadd.f32 %v11375_v33, %v16341_v43  ;;  %v8646_v29 = vpop.f32.mrb[47].mxu0  ;;  %v8837_v46 = vadd.f32 %v11496_v40, %v16080_v58 }
 0x3d2   :  { %v8965_v54 = vadd.f32 %v8964_v52, %v8897_v37  ;;  %v8835_v45 = vadd.f32 %v11497_v11, %v16080_v58  ;;  %v11499_v14 = vadd.f32 %v8646_v29, %v16342_v36 }
 0x3d3   :  { %v8838_v1 = vadd.f32 %v11498_v26, %v16080_v58  ;;  %v8901_v13 = vmax.f32 %v8837_v46, 0.0  ;;  %v16352_v46 = vld [vmem:[#allocation16_spill] sm:$0xff] }
 0x3d4   :  { %v8899_v39 = vmax.f32 %v8835_v45, 0.0  ;;  %v8966_v20 = vadd.f32 %v8965_v54, %v8898_v53  ;;  %v8836_v59 = vadd.f32 %v11499_v14, %v16080_v58  ;;  %v16351_v53 = vld [vmem:[#allocation15_spill] sm:$0xff] }
 0x3d5   :  { %v8902_v8 = vmax.f32 %v8838_v1, 0.0 }
 0x3d6   :  { %v8967_v12 = vadd.f32 %v8966_v20, %v8899_v39  ;;  %v8900_v4 = vmax.f32 %v8836_v59, 0.0  ;;  %v11378_v5 = vpop.f32.mrb[48].mxu0  ;;  %v16353_v59 = vld [vmem:[#allocation17_spill] sm:$0xff] }
 0x3d7   :  { %v11500_v0 = vadd.f32 %v11378_v5, %v16343_v32  ;;  %v8659_v24 = vpop.f32.mrb[49].mxu0 }
 0x3d8   :  { %v8968_v61 = vadd.f32 %v8967_v12, %v8900_v4  ;;  %v11501_v34 = vadd.f32 %v8659_v24, %v16344_v7  ;;  %v11379_v42 = vpop.f32.mrb[50].mxu0 }
 0x3d9   :  { %v11502_v60 = vadd.f32 %v11379_v42, %v16345_v21  ;;  %v8662_v62 = vpop.f32.mrb[51].mxu0  ;;  %v8841_v56 = vadd.f32 %v11500_v0, %v16080_v58  ;;  %v16354_v0 = vld [vmem:[#allocation18_spill] sm:$0xff] }
 0x3da   :  { %v8969_v41 = vadd.f32 %v8968_v61, %v8901_v13  ;;  %v8839_v44 = vadd.f32 %v11501_v34, %v16080_v58  ;;  %v11503_v18 = vadd.f32 %v8662_v62, %v16346_v23 }
 0x3db   :  { %v8842_v2 = vadd.f32 %v11502_v60, %v16080_v58  ;;  %v8905_v31 = vmax.f32 %v8841_v56, 0.0 }
 0x3dc   :  { %v8903_v16 = vmax.f32 %v8839_v44, 0.0  ;;  %v8970_v57 = vadd.f32 %v8969_v41, %v8902_v8  ;;  %v8840_v22 = vadd.f32 %v11503_v18, %v16080_v58  ;;  %v8950_v8 = vrot.slane %v16160_v30, 4  ;;  %v16355_v41 = vld [vmem:[#allocation19_spill] sm:$0xff] }
 0x3dd   :  { %v8906_v48 = vmax.f32 %v8842_v2, 0.0 }
 0x3de   :  { %v8971_v47 = vadd.f32 %v8970_v57, %v8903_v16  ;;  %v8904_v50 = vmax.f32 %v8840_v22, 0.0  ;;  %v11382_v63 = vpop.f32.mrb[52].mxu0  ;;  %v16356_v16 = vld [vmem:[#allocation20_spill] sm:$0xff] }
 0x3df   :  { %v11504_v28 = vadd.f32 %v11382_v63, %v16347_v19  ;;  %v8675_v17 = vpop.f32.mrb[53].mxu0 }
 0x3e0   :  { %v8972_v9 = vadd.f32 %v8971_v47, %v8904_v50  ;;  %v11505_v49 = vadd.f32 %v8675_v17, %v16348_v27  ;;  %v11383_v38 = vpop.f32.mrb[54].mxu0  ;;  %v16357_v47 = vld [vmem:[#allocation21_spill] sm:$0xff]  ;;  %v16358_v17 = vld [vmem:[#allocation22_spill] sm:$0xff] }
 0x3e1   :  { %v11506_v55 = vadd.f32 %v11383_v38, %v16349_v35  ;;  %v8678_v25 = vpop.f32.mrb[55].mxu0  ;;  %v8845_v10 = vadd.f32 %v11504_v28, %v16080_v58 }
 0x3e2   :  { %v8973_v15 = vadd.f32 %v8972_v9, %v8905_v31  ;;  %v8843_v51 = vadd.f32 %v11505_v49, %v16080_v58  ;;  %v11507_v40 = vadd.f32 %v8678_v25, %v16350_v6  ;;  %v8951_v9 = vadd.f32 %v8950_v8, %v16160_v30  ;;  %v12090_v8 = vld [vmem:[%s16313_s2 + $0x90] sm:$0xff]  }
 0x3e3   :  { %v8846_v43 = vadd.f32 %v11506_v55, %v16080_v58  ;;  %v8909_v36 = vmax.f32 %v8845_v10, 0.0 }
 0x3e4   :  { %v8907_v37 = vmax.f32 %v8843_v51, 0.0  ;;  %v8974_v52 = vadd.f32 %v8973_v15, %v8906_v48  ;;  %v8844_v11 = vadd.f32 %v11507_v40, %v16080_v58  ;;  %v8952_v15 = vrot.slane %v8951_v9, 2 }
 0x3e5   :  { %v8910_v4 = vmax.f32 %v8846_v43, 0.0 }
 0x3e6   :  { %v8975_v33 = vadd.f32 %v8974_v52, %v8907_v37  ;;  %v8908_v26 = vmax.f32 %v8844_v11, 0.0  ;;  %v11386_v29 = vpop.f32.mrb[56].mxu0  ;;  %v8953_v37 = vadd.f32 %v8952_v15, %v8951_v9 }
 0x3e7   :  { %v11508_v54 = vadd.f32 %v11386_v29, %v16351_v53  ;;  %v8691_v45 = vpop.f32.mrb[57].mxu0 }
 0x3e8   :  { %v8976_v14 = vadd.f32 %v8975_v33, %v8908_v26  ;;  %v11509_v39 = vadd.f32 %v8691_v45, %v16352_v46  ;;  %v11387_v20 = vpop.f32.mrb[58].mxu0  ;;  %v8954_v33 = vrot.slane %v8953_v37, 1 }
 0x3e9   :  { %v11510_v12 = vadd.f32 %v11387_v20, %v16353_v59  ;;  %v8694_v1 = vpop.f32.mrb[59].mxu0  ;;  %v8849_v13 = vadd.f32 %v11508_v54, %v16080_v58  ;;  %v12081_v59 = vld [vmem:[%s16313_s2 + $0x48] sm:$0xff]  }
 0x3ea   :  { %v8977_v5 = vadd.f32 %v8976_v14, %v8909_v36  ;;  %v8847_v32 = vadd.f32 %v11509_v39, %v16080_v58  ;;  %v11511_v24 = vadd.f32 %v8694_v1, %v16354_v0  ;;  %v8955_v26 = vadd.f32 %v8954_v33, %v8953_v37  ;;  %v12080_v39 = vld [vmem:[%s16313_s2 + $0x40] sm:$0xff]   ;;  %v12083_v1 = vld [vmem:[%s16313_s2 + $0x58] sm:$0xff]  }
 0x3eb   :  { %v8850_v21 = vadd.f32 %v11510_v12, %v16080_v58  ;;  %v8913_v18 = vmax.f32 %v8849_v13, 0.0  ;;  %v12082_v12 = vld [vmem:[%s16313_s2 + $0x50] sm:$0xff]   ;;  %v12087_v0 = vld [vmem:[%s16313_s2 + $0x78] sm:$0xff]  }
 0x3ec   :  { %v8911_v61 = vmax.f32 %v8847_v32, 0.0  ;;  %v8978_v7 = vadd.f32 %v8977_v5, %v8910_v4  ;;  %v8848_v34 = vadd.f32 %v11511_v24, %v16080_v58  ;;  %v8993_v54 = vpack.c.bf16 %v8955_v26, %v8955_v26  ;;  %v12084_v4 = vld [vmem:[%s16313_s2 + $0x60] sm:$0xff]   ;;  %v12085_v5 = vld [vmem:[%s16313_s2 + $0x68] sm:$0xff]   ;;  %v12086_v32 = vld [vmem:[%s16313_s2 + $0x70] sm:$0xff]  }
 0x3ed   :  { %v8914_v63 = vmax.f32 %v8850_v21, 0.0  ;;  %v10415_v24 = vld [vmem:[%s16314_s3 + $0x1] ss:$0 sm:$0xff] }
 0x3ee   :  { %v8979_v42 = vadd.f32 %v8978_v7, %v8911_v61  ;;  %v8912_v60 = vmax.f32 %v8848_v34, 0.0  ;;  %v11390_v62 = vpop.f32.mrb[60].mxu0 }
 0x3ef   :  { %v11512_v44 = vadd.f32 %v11390_v62, %v16355_v41  ;;  %v8707_v23 = vpop.f32.mrb[61].mxu0  ;;  %v12089_v62 = vld [vmem:[%s16313_s2 + $0x88] sm:$0xff]   ;;  %v12091_v41 = vld [vmem:[%s16313_s2 + $0x98] sm:$0xff]  }
 0x3f0   :  { %v8980_v56 = vadd.f32 %v8979_v42, %v8912_v60  ;;  %v11513_v57 = vadd.f32 %v8707_v23, %v16356_v16  ;;  %v11391_v22 = vpop.f32.mrb[62].mxu0  ;;  %v12088_v42 = vld [vmem:[%s16313_s2 + $0x80] sm:$0xff]   ;;  %v12093_v23 = vld [vmem:[%s16313_s2 + $0xa8] sm:$0xff]  }
 0x3f1   :  { %v11514_v2 = vadd.f32 %v11391_v22, %v16357_v47  ;;  %v8710_v50 = vpop.f32.mrb[63].mxu0  ;;  %v8853_v27 = vadd.f32 %v11512_v44, %v16080_v58  ;;  %v12092_v44 = vld [vmem:[%s16313_s2 + $0xa0] sm:$0xff]  }
 0x3f2   :  { %v8981_v19 = vadd.f32 %v8980_v56, %v8913_v18  ;;  %v8851_v28 = vadd.f32 %v11513_v57, %v16080_v58  ;;  %v11515_v31 = vadd.f32 %v8710_v50, %v16358_v17  ;;  %v12094_v18 = vld [vmem:[%s16313_s2 + $0xb0] sm:$0xff]   ;;  %v12095_v56 = vld [vmem:[%s16313_s2 + $0xb8] sm:$0xff]   ;;  %v10440_v16 = vld [vmem:[%s16314_s3 + $0x2] ss:$0 sm:$0xff]  ;;  %s12285_s2 = scalar_lea.vmem %s9343_s12, 32 }
 0x3f3   :  { %v8854_v25 = vadd.f32 %v11514_v2, %v16080_v58  ;;  %v8917_v51 = vmax.f32 %v8853_v27, 0.0  ;;  %p12286_p0 = scmp.ne.s32.totalorder %s9343_s12, %s12285_s2  ;;  %p12291_p2 = scmp.lt.s32.totalorder %s12285_s2, %s12285_s2 }
 0x3f4   :  { %v8915_v49 = vmax.f32 %v8851_v28, 0.0  ;;  %v8982_v38 = vadd.f32 %v8981_v19, %v8914_v63  ;;  %v8852_v35 = vadd.f32 %v11515_v31, %v16080_v58  ;;  %v9018_v58 = vunpack.c.l.b16 %v8993_v54 }
 0x3f5   :  { %v8918_v40 = vmax.f32 %v8854_v25, 0.0  ;;  %p12292_p3 = por %p12291_p2, %p12290_p1 }
 0x3f6   :  { %v8983_v55 = vadd.f32 %v8982_v38, %v8915_v49  ;;  %v8916_v48 = vmax.f32 %v8852_v35, 0.0 }
 0x3f7   :  { %p12293_p4 = pnand %p12292_p3, %p12286_p0 }
 0x3f8   :  { %v8984_v6 = vadd.f32 %v8983_v55, %v8916_v48 }
 0x3fa   :  { %v8985_v10 = vadd.f32 %v8984_v6, %v8917_v51 }
 0x3fc   :  { %v8986_v52 = vadd.f32 %v8985_v10, %v8918_v40 }
 0x3fe   :  { %v8987_v11 = vrot.slane %v8986_v52, 4 }
 0x400   :  { %v8988_v30 = vadd.f32 %v8987_v11, %v8986_v52 }
 0x402   :  { %v8989_v43 = vrot.slane %v8988_v30, 2 }
 0x404   :  { %v8990_v29 = vadd.f32 %v8989_v43, %v8988_v30 }
 0x406   :  { %v8991_v53 = vrot.slane %v8990_v29, 1 }
 0x408   :  { %v8992_v45 = vadd.f32 %v8991_v53, %v8990_v29 }
 0x40a   :  { %v8994_v36 = vpack.c.bf16 %v8992_v45, %v8992_v45 }
 0x40c   :  { %v9019_v14 = vunpack.c.l.b16 %v8994_v36 }
 0x40e   :  { %v9021_v46 = vsel %vm9020_vm9, %v9019_v14, %v9018_v58 }
 0x40f   :  { %v9022_v20 = vpack.c.b16 %v9021_v46, %v9021_v46 }
 0x411   :  { %11409 = vmatmul.mubr.bf16.vlgmr.msra.gmra.mrb[64].mxu1 %v9022_v20 }
 0x412   :  { %11413 = vmatpush3.bf16.msra.mxu1 %v12080_v39  ;;  %11428 = vmatprep.mubr.msk.bf16.mxu1 %vm12310_vm8, %v16339_v3 }
 0x413   :  { %11414 = vmatprep.subr.bf16.mxu1 %v16339_v3 }
 0x416   :  { %11415 = vmatpush3.bf16.msra.mxu1 %v12081_v59 }
 0x417   :  { %11416 = vmatprep.subr.bf16.mxu1 %v16339_v3 }
 0x41a   :  { %11417 = vmatpush3.bf16.msra.mxu1 %v12082_v12 }
 0x41b   :  { %11418 = vmatprep.subr.bf16.mxu1 %v16339_v3 }
 0x41e   :  { %11419 = vmatpush3.bf16.msra.mxu1 %v12083_v1 }
 0x41f   :  { %11420 = vmatprep.subr.bf16.mxu1 %v16339_v3 }
 0x422   :  { %11421 = vmatpush3.bf16.msra.mxu1 %v12084_v4 }
 0x423   :  { %11422 = vmatprep.subr.bf16.mxu1 %v16339_v3 }
 0x426   :  { %11423 = vmatpush3.bf16.msra.mxu1 %v12085_v5 }
 0x427   :  { %11424 = vmatprep.subr.bf16.mxu1 %v16339_v3 }
 0x42a   :  { %11425 = vmatpush3.bf16.msra.mxu1 %v12086_v32 }
 0x42b   :  { %11426 = vmatprep.subr.bf16.mxu1 %v16339_v3 }
 0x42e   :  { %11427 = vmatpush3.bf16.msra.mxu1 %v12087_v0 }
 0x42f   :  { %11432 = vmatprep.subr.bf16.mxu1 %v16339_v3 }
 0x4e4   :  { %v9106_v13 = vpop.f32.mrb[64].mxu1 }
 0x4e5   :  { %v9107_v61 = vadd.f32 %v10415_v24, %v9106_v13  ;;  %v11410_v7 = vpop.f32.mrb[65].mxu1 }
 0x4e6   :  { %v9109_v34 = vpop.f32.mrb[66].mxu1 }
 0x4e7   :  { %v9112_v21 = vpack.c.bf16 %v9107_v61, %v9107_v61  ;;  %v11411_v60 = vpop.f32.mrb[67].mxu1 }
 0x4e9   :  { %11429 = vmatmul.mubr.bf16.vlgmr.msra.gmra.mrb[68].mxu1 %v9112_v21 }
 0x4ea   :  { %11433 = vmatpush3.bf16.msra.mxu1 %v12088_v42  ;;  %11448 = vmatprep.mubr.msk.bf16.mxu1 %vm12310_vm8, %v16339_v3 }
 0x4eb   :  { %11434 = vmatprep.subr.bf16.mxu1 %v16339_v3 }
 0x4ee   :  { %11435 = vmatpush3.bf16.msra.mxu1 %v12089_v62 }
 0x4ef   :  { %11436 = vmatprep.subr.bf16.mxu1 %v16339_v3 }
 0x4f2   :  { %11437 = vmatpush3.bf16.msra.mxu1 %v12090_v8 }
 0x4f3   :  { %11438 = vmatprep.subr.bf16.mxu1 %v16339_v3 }
 0x4f6   :  { %11439 = vmatpush3.bf16.msra.mxu1 %v12091_v41 }
 0x4f7   :  { %11440 = vmatprep.subr.bf16.mxu1 %v16339_v3 }
 0x4fa   :  { %11441 = vmatpush3.bf16.msra.mxu1 %v12092_v44 }
 0x4fb   :  { %11442 = vmatprep.subr.bf16.mxu1 %v16339_v3 }
 0x4fe   :  { %11443 = vmatpush3.bf16.msra.mxu1 %v12093_v23 }
 0x4ff   :  { %11444 = vmatprep.subr.bf16.mxu1 %v16339_v3 }
 0x502   :  { %11445 = vmatpush3.bf16.msra.mxu1 %v12094_v18 }
 0x503   :  { %11446 = vmatprep.subr.bf16.mxu1 %v16339_v3  ;;  %v10465_v3 = vld [vmem:[%s16314_s3 + $0x3] ss:$0 sm:$0xff] }
 0x506   :  { %11447 = vmatpush3.bf16.msra.mxu1 %v12095_v56 }
 0x5bc   :  { %v9217_v57 = vpop.f32.mrb[68].mxu1 }
 0x5bd   :  { %v9218_v22 = vadd.f32 %v10440_v16, %v9217_v57  ;;  %v11430_v47 = vpop.f32.mrb[69].mxu1 }
 0x5be   :  { %v9220_v2 = vpop.f32.mrb[70].mxu1 }
 0x5bf   :  { %v9223_v50 = vmax.f32 %v9218_v22, 0.0  ;;  %v11431_v63 = vpop.f32.mrb[71].mxu1 }
 0x5c1   :  { %v9224_v19 = vpack.c.bf16 %v9223_v50, %v9223_v50 }
 0x5c3   :  { %11449 = vmatmul.mubr.bf16.vlgmr.msra.gmra.mrb[72].mxu1 %v9224_v19 }
 0x696   :  { %v9329_v28 = vpop.f32.mrb[72].mxu1 }
 0x697   :  { %v9330_v17 = vadd.f32 %v10465_v3, %v9329_v28  ;;  %v11450_v31 = vpop.f32.mrb[73].mxu1 }
 0x698   :  { %v9332_v9 = vpop.f32.mrb[74].mxu1 }
 0x699   :  { %9335 = vst [vmem:[#allocation2] sm:$0x3] %v9330_v17  ;;  %v11451_v27 = vpop.f32.mrb[75].mxu1 }
 0x69a   :  { %12296 = shalt.err (!%p12293_p4)
}
 0x69b   :  { %s12297_s3 = scalar_lea.hbm %s16315_s4, 32 }
 0x69c   :  { %p12298_p5 = scmp.ne.s32.totalorder %s16315_s4, %s12297_s3  ;;  %p12301_p6 = scmp.lt.u32.totalorder %s12297_s3, %s16315_s4 }
 0x69e   :  { %p12303_p7 = pnand %p12301_p6, %p12298_p5 }
 0x6a0   :  { %12306 = shalt.err (!%p12303_p7)
}
 0x6a1   :  { %9345 = dma.vmem_to_hbm [thread:$0]  %s9343_s12, 32, %s16315_s4, [#allocation3]  }
 0x6a2   :  { %12307 = dma.done.wait [#allocation3], 32  }
 0x6a3   :  { %12308 = vsyncadd [#allocation3], 4294967264 }
 0x6a4   :  { %9349 = vsyncpa [#allocation3], 1 }

</bundles_post_ra>
